<compile_context>
chip_gen: v7x
topology: tpu7x:2x2x1
jax: 0.10.0
libtpu: 0.0.40
codegen_flags: <defaults>
</compile_context>

<pallas_src>
import functools

import jax
import jax.numpy as jnp
from jax.experimental import pallas as pl
from jax.experimental.pallas import tpu as pltpu

LANE = 128
ROW_PAD = 512          # node count padded to a multiple of this
TM = 256               # output-row tile (multiple of 256 for v7x MXU / 2-TC sharding)
TK = 512               # reduction (source-node) tile


def _round_up(x, m):
    return (x + m - 1) // m * m


# ---------------------------------------------------------------------------
# Kernels
# ---------------------------------------------------------------------------

def _proj_kernel(x_ref, w_ref, o_ref):
    """Row-tiled projection: O = X @ W (bf16 in, f32 accumulate, bf16 out)."""
    o_ref[...] = jnp.dot(
        x_ref[...], w_ref[...], preferred_element_type=jnp.float32
    ).astype(o_ref.dtype)


def _sage_agg_kernel(a_ref, xk_ref, xi_ref, wa_ref, wr_ref, b_ref, o_ref, acc_ref,
                     *, project_first, activation, valid_out):
    """Tiled aggregation + finalize for one SAGE layer.

    Grid = (row tiles i, reduction tiles k).  acc accumulates A[i,k] @ XK[k]
    across k; on the last k the root term, bias and activation are applied.
    """
    k = pl.program_id(1)

    @pl.when(k == 0)
    def _():
        acc_ref[...] = jnp.zeros_like(acc_ref)

    # N^2 aggregation matmul on the MXU (bf16 x bf16 -> f32 accumulate).
    acc_ref[...] += jnp.dot(a_ref[...], xk_ref[...],
                            preferred_element_type=jnp.float32)

    @pl.when(k == pl.num_programs(1) - 1)
    def _():
        acc = acc_ref[...]
        if project_first:
            h = acc                                    # already projected to F_out
        else:
            h = jnp.dot(acc.astype(jnp.bfloat16), wa_ref[...],
                        preferred_element_type=jnp.float32)
        # root (self) term + bias
        h = h + jnp.dot(xi_ref[...], wr_ref[...],
                        preferred_element_type=jnp.float32) + b_ref[...]

        if activation == "relu":
            h = jnp.maximum(h, 0.0)
        elif activation == "log_softmax":
            # mask padded feature lanes so they do not corrupt the normalizer
            col = jax.lax.broadcasted_iota(jnp.int32, h.shape, 1)
            h = jnp.where(col < valid_out, h, -jnp.inf)
            m = jnp.max(h, axis=-1, keepdims=True)
            s = h - m
            lse = jnp.log(jnp.sum(jnp.exp(s), axis=-1, keepdims=True))
            h = s - lse
        # activation == "none" falls through
        o_ref[...] = h.astype(o_ref.dtype)


# ---------------------------------------------------------------------------
# Wrappers
# ---------------------------------------------------------------------------

def _project(x_pad, w, *, tm=512):
    n_pad, f_in_pad = x_pad.shape
    f_out_pad = w.shape[1]
    return pl.pallas_call(
        _proj_kernel,
        out_shape=jax.ShapeDtypeStruct((n_pad, f_out_pad), jnp.bfloat16),
        grid_spec=pltpu.PrefetchScalarGridSpec(
            num_scalar_prefetch=0,
            grid=(n_pad // tm,),
            in_specs=[pl.BlockSpec((tm, f_in_pad), lambda i: (i, 0)),
                      pl.BlockSpec((f_in_pad, f_out_pad), lambda i: (0, 0))],
            out_specs=pl.BlockSpec((tm, f_out_pad), lambda i: (i, 0)),
        ),
        compiler_params=pltpu.CompilerParams(
            dimension_semantics=("parallel",),
            vmem_limit_bytes=32 * 1024 * 1024,
        ),
    )(x_pad, w)


def sage_layer(a_norm, x_pad, w_agg, w_root, b, *, activation, valid_out, out_dtype):
    """One SAGEConv (+activation) layer, tiled over (rows, source nodes)."""
    n_pad = a_norm.shape[0]
    f_in_pad, f_out_pad = w_agg.shape

    # Matmul reordering: run the N^2 aggregation in the narrower feature dim.
    project_first = f_out_pad < f_in_pad
    if project_first:
        xk = _project(x_pad, w_agg)        # [n_pad, f_out_pad] bf16
        f_mid = f_out_pad
    else:
        xk = x_pad                         # aggregate first, project in finalize
        f_mid = f_in_pad

    grid = (n_pad // TM, n_pad // TK)      # reduction axis last
    kernel = functools.partial(
        _sage_agg_kernel,
        project_first=project_first,
        activation=activation,
        valid_out=valid_out,
    )
    return pl.pallas_call(
        kernel,
        out_shape=jax.ShapeDtypeStruct((n_pad, f_out_pad), out_dtype),
        grid_spec=pltpu.PrefetchScalarGridSpec(
            num_scalar_prefetch=0,
            grid=grid,
            in_specs=[
                pl.BlockSpec((TM, TK), lambda i, k: (i, k)),              # A tile
                pl.BlockSpec((TK, f_mid), lambda i, k: (k, 0)),           # X or X@W_agg (k tile)
                pl.BlockSpec((TM, f_in_pad), lambda i, k: (i, 0)),        # X (row tile, root term)
                pl.BlockSpec((f_in_pad, f_out_pad), lambda i, k: (0, 0)),  # W_agg (pinned)
                pl.BlockSpec((f_in_pad, f_out_pad), lambda i, k: (0, 0)),  # W_root (pinned)
                pl.BlockSpec((1, f_out_pad), lambda i, k: (0, 0)),         # bias
            ],
            out_specs=pl.BlockSpec((TM, f_out_pad), lambda i, k: (i, 0)),
            scratch_shapes=[pltpu.VMEM((TM, f_mid), jnp.float32)],
        ),
        compiler_params=pltpu.CompilerParams(
            dimension_semantics=("parallel", "arbitrary"),
            vmem_limit_bytes=32 * 1024 * 1024,
        ),
    )(a_norm, xk, x_pad, w_agg, w_root, b)


# ---------------------------------------------------------------------------
# Graph preprocessing / parameters (plain JAX glue)
# ---------------------------------------------------------------------------

def build_mean_adjacency(edge_index, num_nodes, n_pad):
    """Row-normalized dense adjacency in bf16: A[i, j] = 1/deg(i) for edge j->i.

    TODO(synk): for production-size graphs this O(N^2) dense matrix should be replaced
    by a scalar-prefetch sparse aggregation (per-node neighbor offsets + row gather).
    """
    del num_nodes  # edges already index < num_nodes <= n_pad
    src, dst = edge_index[0], edge_index[1]
    a = jnp.zeros((n_pad, n_pad), jnp.float32).at[dst, src].add(1.0)
    deg = jnp.zeros((n_pad, 1), jnp.float32).at[dst, 0].add(1.0)  # segment-sum degree
    a = a / jnp.maximum(deg, 1.0)
    return a.astype(jnp.bfloat16)


def init_sage_params(key, in_channels, hidden_channels, out_channels, num_layers):
    """Glorot-style init; concat=True weight (2*F_in, F_out) stored split as (W_agg, W_root)."""
    dims = [in_channels] + [hidden_channels] * (num_layers - 1) + [out_channels]
    params = []
    for li in range(num_layers):
        f_in, f_out = dims[li], dims[li + 1]
        key, k1, k2 = jax.random.split(key, 3)
        scale = jnp.sqrt(6.0 / (2 * f_in + f_out)).astype(jnp.float32)
        w_agg = jax.random.uniform(k1, (f_in, f_out), jnp.float32, -scale, scale)
        w_root = jax.random.uniform(k2, (f_in, f_out), jnp.float32, -scale, scale)
        b = jnp.zeros((1, f_out), jnp.float32)
        params.append((w_agg, w_root, b))
    return params


def pad_params(params):
    """Zero-pad every feature dim to a multiple of 128 lanes; weights in bf16, bias f32."""
    padded = []
    for w_agg, w_root, b in params:
        f_in, f_out = w_agg.shape
        f_in_p, f_out_p = _round_up(f_in, LANE), _round_up(f_out, LANE)
        wa = jnp.zeros((f_in_p, f_out_p), jnp.float32).at[:f_in, :f_out].set(w_agg)
        wr = jnp.zeros((f_in_p, f_out_p), jnp.float32).at[:f_in, :f_out].set(w_root)
        bp = jnp.zeros((1, f_out_p), jnp.float32).at[:, :f_out].set(b)
        padded.append((wa.astype(jnp.bfloat16), wr.astype(jnp.bfloat16), bp))
    return padded


# ---------------------------------------------------------------------------
# Forward pass (eval mode)
# ---------------------------------------------------------------------------

def sage_forward(params_padded, x, edge_index, *, out_channels):
    n, f_in = x.shape
    n_pad = _round_up(n, ROW_PAD)
    a_norm = build_mean_adjacency(edge_index, n, n_pad)

    f_in_pad = params_padded[0][0].shape[0]
    x_pad = jnp.zeros((n_pad, f_in_pad), jnp.bfloat16)
    x_pad = x_pad.at[:n, :f_in].set(x.astype(jnp.bfloat16))

    # TODO(synk): F.dropout is identity in eval mode; training-mode dropout would use
    # pltpu.prng_seed / pltpu.prng_random_bits inside the finalize branch.
    for w_agg, w_root, b in params_padded[:-1]:
        x_pad = sage_layer(a_norm, x_pad, w_agg, w_root, b,
                           activation="relu", valid_out=None, out_dtype=jnp.bfloat16)

    w_agg, w_root, b = params_padded[-1]
    out = sage_layer(a_norm, x_pad, w_agg, w_root, b,
                     activation="log_softmax", valid_out=out_channels,
                     out_dtype=jnp.float32)
    return out[:n, :out_channels]


def sage_reference(params, x, edge_index):
    """Pure-JAX f32 dense reference (unpadded) for numerical validation."""
    n = x.shape[0]
    a = jnp.zeros((n, n), jnp.float32).at[edge_index[1], edge_index[0]].add(1.0)
    a = a / jnp.maximum(jnp.sum(a, axis=1, keepdims=True), 1.0)
    h = x
    for li, (w_agg, w_root, b) in enumerate(params):
        h = (a @ h) @ w_agg + h @ w_root + b
        if li < len(params) - 1:
            h = jnp.maximum(h, 0.0)
    return jax.nn.log_softmax(h, axis=-1)


if __name__ == "__main__":
    # Small deterministic synthetic graph (hidden=256 matches the products cluster_gcn
    # config and exercises both matmul orders: 128->256 aggregate-first, 256->128 project-first).
    num_nodes = 64
    num_edges = 256
    in_channels = 32
    hidden_channels = 256
    out_channels = 16
    num_layers = 3

    key = jax.random.PRNGKey(0)
    k_x, k_e, k_p = jax.random.split(key, 3)

    x = jax.random.normal(k_x, (num_nodes, in_channels), jnp.float32)
    edge_index = jax.random.randint(k_e, (2, num_edges), 0, num_nodes, jnp.int32)

    params = init_sage_params(k_p, in_channels, hidden_channels, out_channels, num_layers)
    params_padded = pad_params(params)

    fwd = jax.jit(functools.partial(sage_forward, out_channels=out_channels))
    out = jax.block_until_ready(fwd(params_padded, x, edge_index))

    assert out.shape == (num_nodes, out_channels)
    # log_softmax rows must exp-sum to ~1 (computed in f32 inside the kernel)
    assert bool(jnp.all(jnp.abs(jnp.sum(jnp.exp(out), axis=-1) - 1.0) < 1e-3))
    # compare against pure-JAX f32 reference (bf16 streaming tolerance)
    ref = sage_reference(params, x, edge_index)
    max_err = float(jnp.max(jnp.abs(out - ref)))
    assert max_err < 0.15, f"max abs diff vs reference: {max_err}"
    print("KERNEL_OK")
</pallas_src>

<mosaic_0001>
module attributes {stable_mosaic.version = 11 : i64} {
  func.func private @main(%arg0: i32) attributes {dimension_semantics = [#tpu.dimension_semantics<core_parallel>], iteration_bounds = array<i64: 2>, tpu.core_type = #tpu.core_type<sc_scalar_subcore>, window_params = []} {
    return
  }
}

module attributes {stable_mosaic.version = 11 : i64} {
  func.func private @main(%arg0: i32) attributes {dimension_semantics = [#tpu.dimension_semantics<core_parallel>], iteration_bounds = array<i64: 2>, tpu.core_type = #tpu.core_type<sc_scalar_subcore>, window_params = []} {
    return
  }
}

module attributes {stable_mosaic.version = 11 : i64} {
  func.func @_proj_kernel(%arg0: i32, %arg1: memref<512x256xbf16, #tpu.memory_space<vmem>>, %arg2: memref<256x128xbf16, #tpu.memory_space<vmem>>, %arg3: memref<512x128xbf16, #tpu.memory_space<vmem>>) attributes {dimension_semantics = [#tpu.dimension_semantics<parallel>], iteration_bounds = array<i64: 1>, scalar_prefetch = 0 : i64, scratch_operands = 0 : i64, tpu.core_type = #tpu.core_type<tc>, window_params = [{transform_indices = @transform_0, window_bounds = array<i64: 512, 256>}, {pipeline_mode = #tpu.pipeline_mode<synchronous>, transform_indices = @transform_1, window_bounds = array<i64: 256, 128>}, {transform_indices = @transform_2, window_bounds = array<i64: 512, 128>}]} {
    %c0 = arith.constant 0 : index
    %c0_0 = arith.constant 0 : index
    %0 = vector.load %arg1[%c0, %c0_0] : memref<512x256xbf16, #tpu.memory_space<vmem>>, vector<512x256xbf16>
    %c0_1 = arith.constant 0 : index
    %c0_2 = arith.constant 0 : index
    %1 = vector.load %arg2[%c0_1, %c0_2] : memref<256x128xbf16, #tpu.memory_space<vmem>>, vector<256x128xbf16>
    %cst = arith.constant dense<0.000000e+00> : vector<512x128xf32>
    %2 = tpu.matmul %0, %1, %cst {dimension_numbers = #tpu.dot_dimension_numbers<[1], [0], [0], [1], [0, 0, 1, 1], [], []>} : vector<512x256xbf16>, vector<256x128xbf16>, vector<512x128xf32> -> vector<512x128xf32>
    %3 = arith.truncf %2 : vector<512x128xf32> to vector<512x128xbf16>
    %c0_3 = arith.constant 0 : index
    %c0_4 = arith.constant 0 : index
    %4 = vector.load %arg3[%c0_3, %c0_4] : memref<512x128xbf16, #tpu.memory_space<vmem>>, vector<512x128xbf16>
    tpu.vector_store %arg3[%c0_3, %c0_4], %3 {strides = array<i32>} : memref<512x128xbf16, #tpu.memory_space<vmem>>, vector<512x128xbf16>,
    return
  }
  func.func @transform_0(%arg0: i32) -> (i32, i32) {
    %c0_i32 = arith.constant 0 : i32
    %c0_i32_0 = arith.constant 0 : i32
    return %arg0, %c0_i32 : i32, i32
  }
  func.func @transform_1(%arg0: i32) -> (i32, i32) {
    %c0_i32 = arith.constant 0 : i32
    %c0_i32_0 = arith.constant 0 : i32
    %c0_i32_1 = arith.constant 0 : i32
    return %c0_i32, %c0_i32_0 : i32, i32
  }
  func.func @transform_2(%arg0: i32) -> (i32, i32) {
    %c0_i32 = arith.constant 0 : i32
    %c0_i32_0 = arith.constant 0 : i32
    return %arg0, %c0_i32 : i32, i32
  }
}

module attributes {stable_mosaic.version = 11 : i64} {
  func.func @_sage_agg_kernel(%arg0: i32, %arg1: i32, %arg2: memref<256x512xbf16, #tpu.memory_space<vmem>>, %arg3: memref<512x128xbf16, #tpu.memory_space<vmem>>, %arg4: memref<256x128xbf16, #tpu.memory_space<vmem>>, %arg5: memref<128x256xbf16, #tpu.memory_space<vmem>>, %arg6: memref<128x256xbf16, #tpu.memory_space<vmem>>, %arg7: memref<1x256xf32, #tpu.memory_space<vmem>>, %arg8: memref<256x256xbf16, #tpu.memory_space<vmem>>, %arg9: memref<256x128xf32, #tpu.memory_space<vmem>>) attributes {dimension_semantics = [#tpu.dimension_semantics<parallel>, #tpu.dimension_semantics<arbitrary>], iteration_bounds = array<i64: 2, 1>, scalar_prefetch = 0 : i64, scratch_operands = 1 : i64, tpu.core_type = #tpu.core_type<tc>, window_params = [{transform_indices = @transform_0, window_bounds = array<i64: 256, 512>}, {transform_indices = @transform_1, window_bounds = array<i64: 512, 128>}, {transform_indices = @transform_2, window_bounds = array<i64: 256, 128>}, {pipeline_mode = #tpu.pipeline_mode<synchronous>, transform_indices = @transform_3, window_bounds = array<i64: 128, 256>}, {pipeline_mode = #tpu.pipeline_mode<synchronous>, transform_indices = @transform_4, window_bounds = array<i64: 128, 256>}, {pipeline_mode = #tpu.pipeline_mode<synchronous>, transform_indices = @transform_5, window_bounds = array<i64: 1, 256>}, {transform_indices = @transform_6, window_bounds = array<i64: 256, 256>}]} {
    %c0_i32 = arith.constant 0 : i32
    %0 = arith.cmpi eq, %arg1, %c0_i32 : i32
    %1 = arith.extui %0 : i1 to i32
    %c0_i32_0 = arith.constant 0 : i32
    %2 = arith.cmpi ne, %1, %c0_i32_0 : i32
    scf.if %2 {
      %cst_10 = arith.constant 0.000000e+00 : f32
      %12 = vector.broadcast %cst_10 : f32 to vector<256x128xf32>
      %c0_11 = arith.constant 0 : index
      %c0_12 = arith.constant 0 : index
      %13 = vector.load %arg9[%c0_11, %c0_12] : memref<256x128xf32, #tpu.memory_space<vmem>>, vector<256x128xf32>
      tpu.vector_store %arg9[%c0_11, %c0_12], %12 {strides = array<i32>} : memref<256x128xf32, #tpu.memory_space<vmem>>, vector<256x128xf32>,
    } else {
    }
    %c0 = arith.constant 0 : index
    %c0_1 = arith.constant 0 : index
    %3 = vector.load %arg9[%c0, %c0_1] : memref<256x128xf32, #tpu.memory_space<vmem>>, vector<256x128xf32>
    %c0_2 = arith.constant 0 : index
    %c0_3 = arith.constant 0 : index
    %4 = vector.load %arg2[%c0_2, %c0_3] : memref<256x512xbf16, #tpu.memory_space<vmem>>, vector<256x512xbf16>
    %c0_4 = arith.constant 0 : index
    %c0_5 = arith.constant 0 : index
    %5 = vector.load %arg3[%c0_4, %c0_5] : memref<512x128xbf16, #tpu.memory_space<vmem>>, vector<512x128xbf16>
    %cst = arith.constant dense<0.000000e+00> : vector<256x128xf32>
    %6 = tpu.matmul %4, %5, %cst {dimension_numbers = #tpu.dot_dimension_numbers<[1], [0], [0], [1], [0, 0, 1, 1], [], []>} : vector<256x512xbf16>, vector<512x128xbf16>, vector<256x128xf32> -> vector<256x128xf32>
    %7 = arith.addf %3, %6 : vector<256x128xf32>
    %c0_6 = arith.constant 0 : index
    %c0_7 = arith.constant 0 : index
    %8 = vector.load %arg9[%c0_6, %c0_7] : memref<256x128xf32, #tpu.memory_space<vmem>>, vector<256x128xf32>
    tpu.vector_store %arg9[%c0_6, %c0_7], %7 {strides = array<i32>} : memref<256x128xf32, #tpu.memory_space<vmem>>, vector<256x128xf32>,
    %c0_i32_8 = arith.constant 0 : i32
    %9 = arith.cmpi eq, %arg1, %c0_i32_8 : i32
    %10 = arith.extui %9 : i1 to i32
    %c0_i32_9 = arith.constant 0 : i32
    %11 = arith.cmpi ne, %10, %c0_i32_9 : i32
    scf.if %11 {
      %c0_10 = arith.constant 0 : index
      %c0_11 = arith.constant 0 : index
      %12 = vector.load %arg9[%c0_10, %c0_11] : memref<256x128xf32, #tpu.memory_space<vmem>>, vector<256x128xf32>
      %13 = arith.truncf %12 : vector<256x128xf32> to vector<256x128xbf16>
      %c0_12 = arith.constant 0 : index
      %c0_13 = arith.constant 0 : index
      %14 = vector.load %arg5[%c0_12, %c0_13] : memref<128x256xbf16, #tpu.memory_space<vmem>>, vector<128x256xbf16>
      %cst_14 = arith.constant dense<0.000000e+00> : vector<256x256xf32>
      %15 = tpu.matmul %13, %14, %cst_14 {dimension_numbers = #tpu.dot_dimension_numbers<[1], [0], [0], [1], [0, 0, 1, 1], [], []>} : vector<256x128xbf16>, vector<128x256xbf16>, vector<256x256xf32> -> vector<256x256xf32>
      %c0_15 = arith.constant 0 : index
      %c0_16 = arith.constant 0 : index
      %16 = vector.load %arg4[%c0_15, %c0_16] : memref<256x128xbf16, #tpu.memory_space<vmem>>, vector<256x128xbf16>
      %c0_17 = arith.constant 0 : index
      %c0_18 = arith.constant 0 : index
      %17 = vector.load %arg6[%c0_17, %c0_18] : memref<128x256xbf16, #tpu.memory_space<vmem>>, vector<128x256xbf16>
      %cst_19 = arith.constant dense<0.000000e+00> : vector<256x256xf32>
      %18 = tpu.matmul %16, %17, %cst_19 {dimension_numbers = #tpu.dot_dimension_numbers<[1], [0], [0], [1], [0, 0, 1, 1], [], []>} : vector<256x128xbf16>, vector<128x256xbf16>, vector<256x256xf32> -> vector<256x256xf32>
      %19 = arith.addf %15, %18 : vector<256x256xf32>
      %c0_20 = arith.constant 0 : index
      %c0_21 = arith.constant 0 : index
      %20 = vector.load %arg7[%c0_20, %c0_21] : memref<1x256xf32, #tpu.memory_space<vmem>>, vector<1x256xf32>
      %21 = vector.broadcast %20 : vector<1x256xf32> to vector<256x256xf32>
      %22 = arith.addf %19, %21 : vector<256x256xf32>
      %cst_22 = arith.constant 0.000000e+00 : f32
      %23 = vector.broadcast %cst_22 : f32 to vector<256x256xf32>
      %24 = arith.maximumf %22, %23 : vector<256x256xf32>
      %25 = arith.truncf %24 : vector<256x256xf32> to vector<256x256xbf16>
      %c0_23 = arith.constant 0 : index
      %c0_24 = arith.constant 0 : index
      %26 = vector.load %arg8[%c0_23, %c0_24] : memref<256x256xbf16, #tpu.memory_space<vmem>>, vector<256x256xbf16>
      tpu.vector_store %arg8[%c0_23, %c0_24], %25 {strides = array<i32>} : memref<256x256xbf16, #tpu.memory_space<vmem>>, vector<256x256xbf16>,
    } else {
    }
    return
  }
  func.func @transform_0(%arg0: i32, %arg1: i32) -> (i32, i32) {
    %c0_i32 = arith.constant 0 : i32
    return %arg0, %arg1 : i32, i32
  }
  func.func @transform_1(%arg0: i32, %arg1: i32) -> (i32, i32) {
    %c0_i32 = arith.constant 0 : i32
    %c0_i32_0 = arith.constant 0 : i32
    return %arg1, %c0_i32 : i32, i32
  }
  func.func @transform_2(%arg0: i32, %arg1: i32) -> (i32, i32) {
    %c0_i32 = arith.constant 0 : i32
    %c0_i32_0 = arith.constant 0 : i32
    return %arg0, %c0_i32 : i32, i32
  }
  func.func @transform_3(%arg0: i32, %arg1: i32) -> (i32, i32) {
    %c0_i32 = arith.constant 0 : i32
    %c0_i32_0 = arith.constant 0 : i32
    %c0_i32_1 = arith.constant 0 : i32
    return %c0_i32, %c0_i32_0 : i32, i32
  }
  func.func @transform_4(%arg0: i32, %arg1: i32) -> (i32, i32) {
    %c0_i32 = arith.constant 0 : i32
    %c0_i32_0 = arith.constant 0 : i32
    %c0_i32_1 = arith.constant 0 : i32
    return %c0_i32, %c0_i32_0 : i32, i32
  }
  func.func @transform_5(%arg0: i32, %arg1: i32) -> (i32, i32) {
    %c0_i32 = arith.constant 0 : i32
    %c0_i32_0 = arith.constant 0 : i32
    %c0_i32_1 = arith.constant 0 : i32
    return %c0_i32, %c0_i32_0 : i32, i32
  }
  func.func @transform_6(%arg0: i32, %arg1: i32) -> (i32, i32) {
    %c0_i32 = arith.constant 0 : i32
    %c0_i32_0 = arith.constant 0 : i32
    return %arg0, %c0_i32 : i32, i32
  }
}

module attributes {stable_mosaic.version = 11 : i64} {
  func.func @_sage_agg_kernel(%arg0: i32, %arg1: i32, %arg2: memref<256x512xbf16, #tpu.memory_space<vmem>>, %arg3: memref<512x256xbf16, #tpu.memory_space<vmem>>, %arg4: memref<256x256xbf16, #tpu.memory_space<vmem>>, %arg5: memref<256x256xbf16, #tpu.memory_space<vmem>>, %arg6: memref<256x256xbf16, #tpu.memory_space<vmem>>, %arg7: memref<1x256xf32, #tpu.memory_space<vmem>>, %arg8: memref<256x256xbf16, #tpu.memory_space<vmem>>, %arg9: memref<256x256xf32, #tpu.memory_space<vmem>>) attributes {dimension_semantics = [#tpu.dimension_semantics<parallel>, #tpu.dimension_semantics<arbitrary>], iteration_bounds = array<i64: 2, 1>, scalar_prefetch = 0 : i64, scratch_operands = 1 : i64, tpu.core_type = #tpu.core_type<tc>, window_params = [{transform_indices = @transform_0, window_bounds = array<i64: 256, 512>}, {transform_indices = @transform_1, window_bounds = array<i64: 512, 256>}, {transform_indices = @transform_2, window_bounds = array<i64: 256, 256>}, {pipeline_mode = #tpu.pipeline_mode<synchronous>, transform_indices = @transform_3, window_bounds = array<i64: 256, 256>}, {pipeline_mode = #tpu.pipeline_mode<synchronous>, transform_indices = @transform_4, window_bounds = array<i64: 256, 256>}, {pipeline_mode = #tpu.pipeline_mode<synchronous>, transform_indices = @transform_5, window_bounds = array<i64: 1, 256>}, {transform_indices = @transform_6, window_bounds = array<i64: 256, 256>}]} {
    %c0_i32 = arith.constant 0 : i32
    %0 = arith.cmpi eq, %arg1, %c0_i32 : i32
    %1 = arith.extui %0 : i1 to i32
    %c0_i32_0 = arith.constant 0 : i32
    %2 = arith.cmpi ne, %1, %c0_i32_0 : i32
    scf.if %2 {
      %cst_10 = arith.constant 0.000000e+00 : f32
      %12 = vector.broadcast %cst_10 : f32 to vector<256x256xf32>
      %c0_11 = arith.constant 0 : index
      %c0_12 = arith.constant 0 : index
      %13 = vector.load %arg9[%c0_11, %c0_12] : memref<256x256xf32, #tpu.memory_space<vmem>>, vector<256x256xf32>
      tpu.vector_store %arg9[%c0_11, %c0_12], %12 {strides = array<i32>} : memref<256x256xf32, #tpu.memory_space<vmem>>, vector<256x256xf32>,
    } else {
    }
    %c0 = arith.constant 0 : index
    %c0_1 = arith.constant 0 : index
    %3 = vector.load %arg9[%c0, %c0_1] : memref<256x256xf32, #tpu.memory_space<vmem>>, vector<256x256xf32>
    %c0_2 = arith.constant 0 : index
    %c0_3 = arith.constant 0 : index
    %4 = vector.load %arg2[%c0_2, %c0_3] : memref<256x512xbf16, #tpu.memory_space<vmem>>, vector<256x512xbf16>
    %c0_4 = arith.constant 0 : index
    %c0_5 = arith.constant 0 : index
    %5 = vector.load %arg3[%c0_4, %c0_5] : memref<512x256xbf16, #tpu.memory_space<vmem>>, vector<512x256xbf16>
    %cst = arith.constant dense<0.000000e+00> : vector<256x256xf32>
    %6 = tpu.matmul %4, %5, %cst {dimension_numbers = #tpu.dot_dimension_numbers<[1], [0], [0], [1], [0, 0, 1, 1], [], []>} : vector<256x512xbf16>, vector<512x256xbf16>, vector<256x256xf32> -> vector<256x256xf32>
    %7 = arith.addf %3, %6 : vector<256x256xf32>
    %c0_6 = arith.constant 0 : index
    %c0_7 = arith.constant 0 : index
    %8 = vector.load %arg9[%c0_6, %c0_7] : memref<256x256xf32, #tpu.memory_space<vmem>>, vector<256x256xf32>
    tpu.vector_store %arg9[%c0_6, %c0_7], %7 {strides = array<i32>} : memref<256x256xf32, #tpu.memory_space<vmem>>, vector<256x256xf32>,
    %c0_i32_8 = arith.constant 0 : i32
    %9 = arith.cmpi eq, %arg1, %c0_i32_8 : i32
    %10 = arith.extui %9 : i1 to i32
    %c0_i32_9 = arith.constant 0 : i32
    %11 = arith.cmpi ne, %10, %c0_i32_9 : i32
    scf.if %11 {
      %c0_10 = arith.constant 0 : index
      %c0_11 = arith.constant 0 : index
      %12 = vector.load %arg9[%c0_10, %c0_11] : memref<256x256xf32, #tpu.memory_space<vmem>>, vector<256x256xf32>
      %13 = arith.truncf %12 : vector<256x256xf32> to vector<256x256xbf16>
      %c0_12 = arith.constant 0 : index
      %c0_13 = arith.constant 0 : index
      %14 = vector.load %arg5[%c0_12, %c0_13] : memref<256x256xbf16, #tpu.memory_space<vmem>>, vector<256x256xbf16>
      %cst_14 = arith.constant dense<0.000000e+00> : vector<256x256xf32>
      %15 = tpu.matmul %13, %14, %cst_14 {dimension_numbers = #tpu.dot_dimension_numbers<[1], [0], [0], [1], [0, 0, 1, 1], [], []>} : vector<256x256xbf16>, vector<256x256xbf16>, vector<256x256xf32> -> vector<256x256xf32>
      %c0_15 = arith.constant 0 : index
      %c0_16 = arith.constant 0 : index
      %16 = vector.load %arg4[%c0_15, %c0_16] : memref<256x256xbf16, #tpu.memory_space<vmem>>, vector<256x256xbf16>
      %c0_17 = arith.constant 0 : index
      %c0_18 = arith.constant 0 : index
      %17 = vector.load %arg6[%c0_17, %c0_18] : memref<256x256xbf16, #tpu.memory_space<vmem>>, vector<256x256xbf16>
      %cst_19 = arith.constant dense<0.000000e+00> : vector<256x256xf32>
      %18 = tpu.matmul %16, %17, %cst_19 {dimension_numbers = #tpu.dot_dimension_numbers<[1], [0], [0], [1], [0, 0, 1, 1], [], []>} : vector<256x256xbf16>, vector<256x256xbf16>, vector<256x256xf32> -> vector<256x256xf32>
      %19 = arith.addf %15, %18 : vector<256x256xf32>
      %c0_20 = arith.constant 0 : index
      %c0_21 = arith.constant 0 : index
      %20 = vector.load %arg7[%c0_20, %c0_21] : memref<1x256xf32, #tpu.memory_space<vmem>>, vector<1x256xf32>
      %21 = vector.broadcast %20 : vector<1x256xf32> to vector<256x256xf32>
      %22 = arith.addf %19, %21 : vector<256x256xf32>
      %cst_22 = arith.constant 0.000000e+00 : f32
      %23 = vector.broadcast %cst_22 : f32 to vector<256x256xf32>
      %24 = arith.maximumf %22, %23 : vector<256x256xf32>
      %25 = arith.truncf %24 : vector<256x256xf32> to vector<256x256xbf16>
      %c0_23 = arith.constant 0 : index
      %c0_24 = arith.constant 0 : index
      %26 = vector.load %arg8[%c0_23, %c0_24] : memref<256x256xbf16, #tpu.memory_space<vmem>>, vector<256x256xbf16>
      tpu.vector_store %arg8[%c0_23, %c0_24], %25 {strides = array<i32>} : memref<256x256xbf16, #tpu.memory_space<vmem>>, vector<256x256xbf16>,
    } else {
    }
    return
  }
  func.func @transform_0(%arg0: i32, %arg1: i32) -> (i32, i32) {
    %c0_i32 = arith.constant 0 : i32
    return %arg0, %arg1 : i32, i32
  }
  func.func @transform_1(%arg0: i32, %arg1: i32) -> (i32, i32) {
    %c0_i32 = arith.constant 0 : i32
    %c0_i32_0 = arith.constant 0 : i32
    return %arg1, %c0_i32 : i32, i32
  }
  func.func @transform_2(%arg0: i32, %arg1: i32) -> (i32, i32) {
    %c0_i32 = arith.constant 0 : i32
    %c0_i32_0 = arith.constant 0 : i32
    return %arg0, %c0_i32 : i32, i32
  }
  func.func @transform_3(%arg0: i32, %arg1: i32) -> (i32, i32) {
    %c0_i32 = arith.constant 0 : i32
    %c0_i32_0 = arith.constant 0 : i32
    %c0_i32_1 = arith.constant 0 : i32
    return %c0_i32, %c0_i32_0 : i32, i32
  }
  func.func @transform_4(%arg0: i32, %arg1: i32) -> (i32, i32) {
    %c0_i32 = arith.constant 0 : i32
    %c0_i32_0 = arith.constant 0 : i32
    %c0_i32_1 = arith.constant 0 : i32
    return %c0_i32, %c0_i32_0 : i32, i32
  }
  func.func @transform_5(%arg0: i32, %arg1: i32) -> (i32, i32) {
    %c0_i32 = arith.constant 0 : i32
    %c0_i32_0 = arith.constant 0 : i32
    %c0_i32_1 = arith.constant 0 : i32
    return %c0_i32, %c0_i32_0 : i32, i32
  }
  func.func @transform_6(%arg0: i32, %arg1: i32) -> (i32, i32) {
    %c0_i32 = arith.constant 0 : i32
    %c0_i32_0 = arith.constant 0 : i32
    return %arg0, %c0_i32 : i32, i32
  }
}

module attributes {stable_mosaic.version = 11 : i64} {
  func.func @_sage_agg_kernel(%arg0: i32, %arg1: i32, %arg2: memref<256x512xbf16, #tpu.memory_space<vmem>>, %arg3: memref<512x128xbf16, #tpu.memory_space<vmem>>, %arg4: memref<256x256xbf16, #tpu.memory_space<vmem>>, %arg5: memref<256x128xbf16, #tpu.memory_space<vmem>>, %arg6: memref<256x128xbf16, #tpu.memory_space<vmem>>, %arg7: memref<1x128xf32, #tpu.memory_space<vmem>>, %arg8: memref<256x128xf32, #tpu.memory_space<vmem>>, %arg9: memref<256x128xf32, #tpu.memory_space<vmem>>) attributes {dimension_semantics = [#tpu.dimension_semantics<parallel>, #tpu.dimension_semantics<arbitrary>], iteration_bounds = array<i64: 2, 1>, scalar_prefetch = 0 : i64, scratch_operands = 1 : i64, tpu.core_type = #tpu.core_type<tc>, window_params = [{transform_indices = @transform_0, window_bounds = array<i64: 256, 512>}, {transform_indices = @transform_1, window_bounds = array<i64: 512, 128>}, {transform_indices = @transform_2, window_bounds = array<i64: 256, 256>}, {pipeline_mode = #tpu.pipeline_mode<synchronous>, transform_indices = @transform_3, window_bounds = array<i64: 256, 128>}, {pipeline_mode = #tpu.pipeline_mode<synchronous>, transform_indices = @transform_4, window_bounds = array<i64: 256, 128>}, {pipeline_mode = #tpu.pipeline_mode<synchronous>, transform_indices = @transform_5, window_bounds = array<i64: 1, 128>}, {transform_indices = @transform_6, window_bounds = array<i64: 256, 128>}]} {
    %c0_i32 = arith.constant 0 : i32
    %0 = arith.cmpi eq, %arg1, %c0_i32 : i32
    %1 = arith.extui %0 : i1 to i32
    %c0_i32_0 = arith.constant 0 : i32
    %2 = arith.cmpi ne, %1, %c0_i32_0 : i32
    scf.if %2 {
      %cst_10 = arith.constant 0.000000e+00 : f32
      %12 = vector.broadcast %cst_10 : f32 to vector<256x128xf32>
      %c0_11 = arith.constant 0 : index
      %c0_12 = arith.constant 0 : index
      %13 = vector.load %arg9[%c0_11, %c0_12] : memref<256x128xf32, #tpu.memory_space<vmem>>, vector<256x128xf32>
      tpu.vector_store %arg9[%c0_11, %c0_12], %12 {strides = array<i32>} : memref<256x128xf32, #tpu.memory_space<vmem>>, vector<256x128xf32>,
    } else {
    }
    %c0 = arith.constant 0 : index
    %c0_1 = arith.constant 0 : index
    %3 = vector.load %arg9[%c0, %c0_1] : memref<256x128xf32, #tpu.memory_space<vmem>>, vector<256x128xf32>
    %c0_2 = arith.constant 0 : index
    %c0_3 = arith.constant 0 : index
    %4 = vector.load %arg2[%c0_2, %c0_3] : memref<256x512xbf16, #tpu.memory_space<vmem>>, vector<256x512xbf16>
    %c0_4 = arith.constant 0 : index
    %c0_5 = arith.constant 0 : index
    %5 = vector.load %arg3[%c0_4, %c0_5] : memref<512x128xbf16, #tpu.memory_space<vmem>>, vector<512x128xbf16>
    %cst = arith.constant dense<0.000000e+00> : vector<256x128xf32>
    %6 = tpu.matmul %4, %5, %cst {dimension_numbers = #tpu.dot_dimension_numbers<[1], [0], [0], [1], [0, 0, 1, 1], [], []>} : vector<256x512xbf16>, vector<512x128xbf16>, vector<256x128xf32> -> vector<256x128xf32>
    %7 = arith.addf %3, %6 : vector<256x128xf32>
    %c0_6 = arith.constant 0 : index
    %c0_7 = arith.constant 0 : index
    %8 = vector.load %arg9[%c0_6, %c0_7] : memref<256x128xf32, #tpu.memory_space<vmem>>, vector<256x128xf32>
    tpu.vector_store %arg9[%c0_6, %c0_7], %7 {strides = array<i32>} : memref<256x128xf32, #tpu.memory_space<vmem>>, vector<256x128xf32>,
    %c0_i32_8 = arith.constant 0 : i32
    %9 = arith.cmpi eq, %arg1, %c0_i32_8 : i32
    %10 = arith.extui %9 : i1 to i32
    %c0_i32_9 = arith.constant 0 : i32
    %11 = arith.cmpi ne, %10, %c0_i32_9 : i32
    scf.if %11 {
      %c0_10 = arith.constant 0 : index
      %c0_11 = arith.constant 0 : index
      %12 = vector.load %arg9[%c0_10, %c0_11] : memref<256x128xf32, #tpu.memory_space<vmem>>, vector<256x128xf32>
      %c0_12 = arith.constant 0 : index
      %c0_13 = arith.constant 0 : index
      %13 = vector.load %arg4[%c0_12, %c0_13] : memref<256x256xbf16, #tpu.memory_space<vmem>>, vector<256x256xbf16>
      %c0_14 = arith.constant 0 : index
      %c0_15 = arith.constant 0 : index
      %14 = vector.load %arg6[%c0_14, %c0_15] : memref<256x128xbf16, #tpu.memory_space<vmem>>, vector<256x128xbf16>
      %cst_16 = arith.constant dense<0.000000e+00> : vector<256x128xf32>
      %15 = tpu.matmul %13, %14, %cst_16 {dimension_numbers = #tpu.dot_dimension_numbers<[1], [0], [0], [1], [0, 0, 1, 1], [], []>} : vector<256x256xbf16>, vector<256x128xbf16>, vector<256x128xf32> -> vector<256x128xf32>
      %16 = arith.addf %12, %15 : vector<256x128xf32>
      %c0_17 = arith.constant 0 : index
      %c0_18 = arith.constant 0 : index
      %17 = vector.load %arg7[%c0_17, %c0_18] : memref<1x128xf32, #tpu.memory_space<vmem>>, vector<1x128xf32>
      %18 = vector.broadcast %17 : vector<1x128xf32> to vector<256x128xf32>
      %19 = arith.addf %16, %18 : vector<256x128xf32>
      %20 = tpu.iota {dimensions = array<i32: 1>} : vector<256x128xi32>
      %c16_i32 = arith.constant 16 : i32
      %21 = vector.broadcast %c16_i32 : i32 to vector<256x128xi32>
      %22 = arith.cmpi slt, %20, %21 : vector<256x128xi32>
      %cst_19 = arith.constant 0xFF800000 : f32
      %23 = vector.broadcast %cst_19 : f32 to vector<256x128xf32>
      %24 = arith.select %22, %19, %23 : vector<256x128xi1>, vector<256x128xf32>
      %cst_20 = arith.constant dense<0xFF800000> : vector<256xf32>
      %25 = vector.multi_reduction <maximumf>, %24, %cst_20 [1] : vector<256x128xf32> to vector<256xf32>
      %26 = vector.shape_cast %25 : vector<256xf32> to vector<256x1xf32>
      %27 = vector.broadcast %26 : vector<256x1xf32> to vector<256x128xf32>
      %28 = arith.subf %24, %27 : vector<256x128xf32>
      %29 = math.exp %28 : vector<256x128xf32>
      %cst_21 = arith.constant dense<0.000000e+00> : vector<256xf32>
      %30 = vector.multi_reduction <add>, %29, %cst_21 [1] : vector<256x128xf32> to vector<256xf32>
      %31 = vector.shape_cast %30 : vector<256xf32> to vector<256x1xf32>
      %32 = math.log %31 : vector<256x1xf32>
      %33 = vector.broadcast %32 : vector<256x1xf32> to vector<256x128xf32>
      %34 = arith.subf %28, %33 : vector<256x128xf32>
      %c0_22 = arith.constant 0 : index
      %c0_23 = arith.constant 0 : index
      %35 = vector.load %arg8[%c0_22, %c0_23] : memref<256x128xf32, #tpu.memory_space<vmem>>, vector<256x128xf32>
      tpu.vector_store %arg8[%c0_22, %c0_23], %34 {strides = array<i32>} : memref<256x128xf32, #tpu.memory_space<vmem>>, vector<256x128xf32>,
    } else {
    }
    return
  }
  func.func @transform_0(%arg0: i32, %arg1: i32) -> (i32, i32) {
    %c0_i32 = arith.constant 0 : i32
    return %arg0, %arg1 : i32, i32
  }
  func.func @transform_1(%arg0: i32, %arg1: i32) -> (i32, i32) {
    %c0_i32 = arith.constant 0 : i32
    %c0_i32_0 = arith.constant 0 : i32
    return %arg1, %c0_i32 : i32, i32
  }
  func.func @transform_2(%arg0: i32, %arg1: i32) -> (i32, i32) {
    %c0_i32 = arith.constant 0 : i32
    %c0_i32_0 = arith.constant 0 : i32
    return %arg0, %c0_i32 : i32, i32
  }
  func.func @transform_3(%arg0: i32, %arg1: i32) -> (i32, i32) {
    %c0_i32 = arith.constant 0 : i32
    %c0_i32_0 = arith.constant 0 : i32
    %c0_i32_1 = arith.constant 0 : i32
    return %c0_i32, %c0_i32_0 : i32, i32
  }
  func.func @transform_4(%arg0: i32, %arg1: i32) -> (i32, i32) {
    %c0_i32 = arith.constant 0 : i32
    %c0_i32_0 = arith.constant 0 : i32
    %c0_i32_1 = arith.constant 0 : i32
    return %c0_i32, %c0_i32_0 : i32, i32
  }
  func.func @transform_5(%arg0: i32, %arg1: i32) -> (i32, i32) {
    %c0_i32 = arith.constant 0 : i32
    %c0_i32_0 = arith.constant 0 : i32
    %c0_i32_1 = arith.constant 0 : i32
    return %c0_i32, %c0_i32_0 : i32, i32
  }
  func.func @transform_6(%arg0: i32, %arg1: i32) -> (i32, i32) {
    %c0_i32 = arith.constant 0 : i32
    %c0_i32_0 = arith.constant 0 : i32
    return %arg0, %c0_i32 : i32, i32
  }
}

</mosaic_0001>

<bundles_post_ra>
// kernel: sage_forward.6
= control target key start
LH: loop header
LB: loop body
LE: loop exit
PB: predicated region body
PF: predicated region fallthrough
CT: control target
= control target key end

     0   :  { %v1681_v0 = vmov 0   ;;  %s2065_s1 = inlined_call_operand.vmem [shape: bf16[256,128], index: 1, kind: input, shape index: {}]   ;;  %s2066_s0 = inlined_call_operand.vmem [shape: bf16[512,256], index: 0, kind: input, shape index: {}]   ;;  %s2067_s2 = inlined_call_operand.vmem [shape: bf16[512,128], index: 2, kind: output, shape index: {}]  }
   0x1   :  { %524 = vmatprep.subr.bf16.mxu0 %v1681_v0  ;;  %1536 = vmatprep.subr.bf16.mxu1 %v1681_v0  ;;  %v1569_v1 = vld [vmem:[%s2065_s1] sm:$0xff]   ;;  %v1570_v2 = vld [vmem:[%s2065_s1 + $0x8] sm:$0xff]   ;;  %v1571_v3 = vld [vmem:[%s2065_s1 + $0x10] sm:$0xff]  }
   0x2   :  { %525 = vmatpush1.bf16.msra.mxu0 %v1569_v1  ;;  %1552 = vmatpush1.bf16.msra.mxu1 %v1569_v1  ;;  %v1572_v4 = vld [vmem:[%s2065_s1 + $0x18] sm:$0xff]   ;;  %v1573_v5 = vld [vmem:[%s2065_s1 + $0x20] sm:$0xff]   ;;  %v1574_v7 = vld [vmem:[%s2065_s1 + $0x28] sm:$0xff]  }
   0x3   :  { %526 = vmatprep.subr.bf16.mxu0 %v1681_v0  ;;  %1537 = vmatprep.subr.bf16.mxu1 %v1681_v0  ;;  %v1587_v6 = vld [vmem:[%s2066_s0 + $0x4] ss:$8 sps:$4 sm:$0xff]   ;;  %v1575_v9 = vld [vmem:[%s2065_s1 + $0x30] sm:$0xff]   ;;  %v1576_v10 = vld [vmem:[%s2065_s1 + $0x38] sm:$0xff]  }
   0x4   :  { %v1590_v8 = vld [vmem:[%s2066_s0 + $0x104] ss:$8 sps:$4 sm:$0xff]   ;;  %556 = vmatprep.mubr.bf16.mxu0 %v1587_v6  ;;  %v1579_v13 = vld [vmem:[%s2065_s1 + $0x50] sm:$0xff]   ;;  %v1580_v14 = vld [vmem:[%s2065_s1 + $0x58] sm:$0xff]  }
   0x5   :  { %684 = vmatprep.mubr.bf16.mxu1 %v1590_v8  ;;  %v1577_v11 = vld [vmem:[%s2065_s1 + $0x40] sm:$0xff]   ;;  %v1578_v12 = vld [vmem:[%s2065_s1 + $0x48] sm:$0xff]   ;;  %v1583_v17 = vld [vmem:[%s2065_s1 + $0x70] sm:$0xff]  }
   0x6   :  { %527 = vmatpush1.bf16.msra.mxu0 %v1570_v2  ;;  %1553 = vmatpush1.bf16.msra.mxu1 %v1570_v2  ;;  %v1581_v15 = vld [vmem:[%s2065_s1 + $0x60] sm:$0xff]   ;;  %v1582_v16 = vld [vmem:[%s2065_s1 + $0x68] sm:$0xff]   ;;  %v1584_v18 = vld [vmem:[%s2065_s1 + $0x78] sm:$0xff]  }
   0x7   :  { %528 = vmatprep.subr.bf16.mxu0 %v1681_v0  ;;  %1538 = vmatprep.subr.bf16.mxu1 %v1681_v0  ;;  %v1585_v19 = vld [vmem:[%s2066_s0] ss:$8 sps:$4 sm:$0xff]   ;;  %v1591_v21 = vld [vmem:[%s2066_s0 + $0x14] ss:$8 sps:$4 sm:$0xff]   ;;  %v1595_v23 = vld [vmem:[%s2066_s0 + $0x10] ss:$8 sps:$4 sm:$0xff]  }
   0x8   :  { %v1588_v20 = vld [vmem:[%s2066_s0 + $0x100] ss:$8 sps:$4 sm:$0xff]   ;;  %v1593_v22 = vld [vmem:[%s2066_s0 + $0x114] ss:$8 sps:$4 sm:$0xff]   ;;  %v1596_v24 = vld [vmem:[%s2066_s0 + $0x110] ss:$8 sps:$4 sm:$0xff]  }
   0x9   :  { %v1597_v25 = vld [vmem:[%s2066_s0 + $0x24] ss:$8 sps:$4 sm:$0xff]   ;;  %v1601_v27 = vld [vmem:[%s2066_s0 + $0x20] ss:$8 sps:$4 sm:$0xff]   ;;  %v1603_v29 = vld [vmem:[%s2066_s0 + $0x34] ss:$8 sps:$4 sm:$0xff]  }
   0xa   :  { %529 = vmatpush1.bf16.msra.mxu0 %v1571_v3  ;;  %1554 = vmatpush1.bf16.msra.mxu1 %v1571_v3  ;;  %v1599_v26 = vld [vmem:[%s2066_s0 + $0x124] ss:$8 sps:$4 sm:$0xff]   ;;  %v1602_v28 = vld [vmem:[%s2066_s0 + $0x120] ss:$8 sps:$4 sm:$0xff]   ;;  %v1605_v30 = vld [vmem:[%s2066_s0 + $0x134] ss:$8 sps:$4 sm:$0xff]  }
   0xb   :  { %530 = vmatprep.subr.bf16.mxu0 %v1681_v0  ;;  %1539 = vmatprep.subr.bf16.mxu1 %v1681_v0  ;;  %v1607_v31 = vld [vmem:[%s2066_s0 + $0x30] ss:$8 sps:$4 sm:$0xff]   ;;  %v1609_v33 = vld [vmem:[%s2066_s0 + $0x44] ss:$8 sps:$4 sm:$0xff]   ;;  %v1613_v35 = vld [vmem:[%s2066_s0 + $0x40] ss:$8 sps:$4 sm:$0xff]  }
   0xc   :  { %v1608_v32 = vld [vmem:[%s2066_s0 + $0x130] ss:$8 sps:$4 sm:$0xff]   ;;  %v1611_v34 = vld [vmem:[%s2066_s0 + $0x144] ss:$8 sps:$4 sm:$0xff]   ;;  %v1614_v36 = vld [vmem:[%s2066_s0 + $0x140] ss:$8 sps:$4 sm:$0xff]  }
   0xd   :  { %v1615_v37 = vld [vmem:[%s2066_s0 + $0x54] ss:$8 sps:$4 sm:$0xff]   ;;  %v1619_v39 = vld [vmem:[%s2066_s0 + $0x50] ss:$8 sps:$4 sm:$0xff]   ;;  %v1621_v41 = vld [vmem:[%s2066_s0 + $0x64] ss:$8 sps:$4 sm:$0xff]  }
   0xe   :  { %531 = vmatpush1.bf16.msra.mxu0 %v1572_v4  ;;  %1555 = vmatpush1.bf16.msra.mxu1 %v1572_v4  ;;  %v1617_v38 = vld [vmem:[%s2066_s0 + $0x154] ss:$8 sps:$4 sm:$0xff]   ;;  %v1620_v40 = vld [vmem:[%s2066_s0 + $0x150] ss:$8 sps:$4 sm:$0xff]   ;;  %v1623_v42 = vld [vmem:[%s2066_s0 + $0x164] ss:$8 sps:$4 sm:$0xff]  }
   0xf   :  { %532 = vmatprep.subr.bf16.mxu0 %v1681_v0  ;;  %1540 = vmatprep.subr.bf16.mxu1 %v1681_v0  ;;  %v1625_v43 = vld [vmem:[%s2066_s0 + $0x60] ss:$8 sps:$4 sm:$0xff]   ;;  %v1627_v45 = vld [vmem:[%s2066_s0 + $0x74] ss:$8 sps:$4 sm:$0xff]   ;;  %v1631_v47 = vld [vmem:[%s2066_s0 + $0x70] ss:$8 sps:$4 sm:$0xff]  }
  0x10   :  { %v1626_v44 = vld [vmem:[%s2066_s0 + $0x160] ss:$8 sps:$4 sm:$0xff]   ;;  %v1629_v46 = vld [vmem:[%s2066_s0 + $0x174] ss:$8 sps:$4 sm:$0xff]   ;;  %v1632_v48 = vld [vmem:[%s2066_s0 + $0x170] ss:$8 sps:$4 sm:$0xff]  }
  0x11   :  { %v1633_v49 = vld [vmem:[%s2066_s0 + $0x84] ss:$8 sps:$4 sm:$0xff]   ;;  %v1637_v51 = vld [vmem:[%s2066_s0 + $0x80] ss:$8 sps:$4 sm:$0xff]   ;;  %v1639_v53 = vld [vmem:[%s2066_s0 + $0x94] ss:$8 sps:$4 sm:$0xff]  }
  0x12   :  { %533 = vmatpush1.bf16.msra.mxu0 %v1573_v5  ;;  %1556 = vmatpush1.bf16.msra.mxu1 %v1573_v5  ;;  %v1635_v50 = vld [vmem:[%s2066_s0 + $0x184] ss:$8 sps:$4 sm:$0xff]   ;;  %v1638_v52 = vld [vmem:[%s2066_s0 + $0x180] ss:$8 sps:$4 sm:$0xff]   ;;  %v1641_v54 = vld [vmem:[%s2066_s0 + $0x194] ss:$8 sps:$4 sm:$0xff]  }
  0x13   :  { %534 = vmatprep.subr.bf16.mxu0 %v1681_v0  ;;  %1541 = vmatprep.subr.bf16.mxu1 %v1681_v0  ;;  %v1643_v55 = vld [vmem:[%s2066_s0 + $0x90] ss:$8 sps:$4 sm:$0xff]   ;;  %v1645_v57 = vld [vmem:[%s2066_s0 + $0xa4] ss:$8 sps:$4 sm:$0xff]   ;;  %v1649_v59 = vld [vmem:[%s2066_s0 + $0xa0] ss:$8 sps:$4 sm:$0xff]  }
  0x14   :  { %v1644_v56 = vld [vmem:[%s2066_s0 + $0x190] ss:$8 sps:$4 sm:$0xff]   ;;  %v1647_v58 = vld [vmem:[%s2066_s0 + $0x1a4] ss:$8 sps:$4 sm:$0xff]   ;;  %v1650_v60 = vld [vmem:[%s2066_s0 + $0x1a0] ss:$8 sps:$4 sm:$0xff]  }
  0x15   :  { %v1651_v61 = vld [vmem:[%s2066_s0 + $0xb4] ss:$8 sps:$4 sm:$0xff]   ;;  %v1655_v63 = vld [vmem:[%s2066_s0 + $0xb0] ss:$8 sps:$4 sm:$0xff]   ;;  %v1657_v1 = vld [vmem:[%s2066_s0 + $0xc4] ss:$8 sps:$4 sm:$0xff]  }
  0x16   :  { %535 = vmatpush1.bf16.msra.mxu0 %v1574_v7  ;;  %1557 = vmatpush1.bf16.msra.mxu1 %v1574_v7  ;;  %v1653_v62 = vld [vmem:[%s2066_s0 + $0x1b4] ss:$8 sps:$4 sm:$0xff]   ;;  %v1659_v2 = vld [vmem:[%s2066_s0 + $0x1c4] ss:$8 sps:$4 sm:$0xff]   ;;  %v1661_v3 = vld [vmem:[%s2066_s0 + $0xc0] ss:$8 sps:$4 sm:$0xff]  }
  0x17   :  { %536 = vmatprep.subr.bf16.mxu0 %v1681_v0  ;;  %1542 = vmatprep.subr.bf16.mxu1 %v1681_v0  ;;  %v1662_v4 = vld [vmem:[%s2066_s0 + $0x1c0] ss:$8 sps:$4 sm:$0xff]   ;;  %v1663_v5 = vld [vmem:[%s2066_s0 + $0xd4] ss:$8 sps:$4 sm:$0xff]   ;;  %v1667_v7 = vld [vmem:[%s2066_s0 + $0xd0] ss:$8 sps:$4 sm:$0xff]  }
  0x18   :  { %v1665_v6 = vld [vmem:[%s2066_s0 + $0x1d4] ss:$8 sps:$4 sm:$0xff]   ;;  %v1668_v8 = vld [vmem:[%s2066_s0 + $0x1d0] ss:$8 sps:$4 sm:$0xff]  }
  0x1a   :  { %537 = vmatpush1.bf16.msra.mxu0 %v1575_v9  ;;  %1558 = vmatpush1.bf16.msra.mxu1 %v1575_v9  ;;  %v1669_v9 = vld [vmem:[%s2066_s0 + $0xe4] ss:$8 sps:$4 sm:$0xff]  }
  0x1b   :  { %538 = vmatprep.subr.bf16.mxu0 %v1681_v0  ;;  %1543 = vmatprep.subr.bf16.mxu1 %v1681_v0 }
  0x1e   :  { %539 = vmatpush1.bf16.msra.mxu0 %v1576_v10  ;;  %1559 = vmatpush1.bf16.msra.mxu1 %v1576_v10  ;;  %v1671_v10 = vld [vmem:[%s2066_s0 + $0x1e4] ss:$8 sps:$4 sm:$0xff]  }
  0x1f   :  { %540 = vmatprep.subr.bf16.mxu0 %v1681_v0  ;;  %1544 = vmatprep.subr.bf16.mxu1 %v1681_v0 }
  0x22   :  { %541 = vmatpush1.bf16.msra.mxu0 %v1577_v11  ;;  %1560 = vmatpush1.bf16.msra.mxu1 %v1577_v11  ;;  %v1673_v11 = vld [vmem:[%s2066_s0 + $0xe0] ss:$8 sps:$4 sm:$0xff]  }
  0x23   :  { %542 = vmatprep.subr.bf16.mxu0 %v1681_v0  ;;  %1545 = vmatprep.subr.bf16.mxu1 %v1681_v0 }
  0x26   :  { %543 = vmatpush1.bf16.msra.mxu0 %v1578_v12  ;;  %1561 = vmatpush1.bf16.msra.mxu1 %v1578_v12  ;;  %v1674_v12 = vld [vmem:[%s2066_s0 + $0x1e0] ss:$8 sps:$4 sm:$0xff]  }
  0x27   :  { %544 = vmatprep.subr.bf16.mxu0 %v1681_v0  ;;  %1546 = vmatprep.subr.bf16.mxu1 %v1681_v0 }
  0x2a   :  { %545 = vmatpush1.bf16.msra.mxu0 %v1579_v13  ;;  %1562 = vmatpush1.bf16.msra.mxu1 %v1579_v13  ;;  %v1675_v13 = vld [vmem:[%s2066_s0 + $0xf4] ss:$8 sps:$4 sm:$0xff]  }
  0x2b   :  { %546 = vmatprep.subr.bf16.mxu0 %v1681_v0  ;;  %1547 = vmatprep.subr.bf16.mxu1 %v1681_v0 }
  0x2e   :  { %547 = vmatpush1.bf16.msra.mxu0 %v1580_v14  ;;  %1563 = vmatpush1.bf16.msra.mxu1 %v1580_v14  ;;  %v1677_v14 = vld [vmem:[%s2066_s0 + $0x1f4] ss:$8 sps:$4 sm:$0xff]  }
  0x2f   :  { %548 = vmatprep.subr.bf16.mxu0 %v1681_v0  ;;  %1548 = vmatprep.subr.bf16.mxu1 %v1681_v0 }
  0x32   :  { %549 = vmatpush1.bf16.msra.mxu0 %v1581_v15  ;;  %1564 = vmatpush1.bf16.msra.mxu1 %v1581_v15  ;;  %v1679_v15 = vld [vmem:[%s2066_s0 + $0xf0] ss:$8 sps:$4 sm:$0xff]  }
  0x33   :  { %550 = vmatprep.subr.bf16.mxu0 %v1681_v0  ;;  %1549 = vmatprep.subr.bf16.mxu1 %v1681_v0 }
  0x36   :  { %551 = vmatpush1.bf16.msra.mxu0 %v1582_v16  ;;  %1565 = vmatpush1.bf16.msra.mxu1 %v1582_v16  ;;  %v1680_v16 = vld [vmem:[%s2066_s0 + $0x1f0] ss:$8 sps:$4 sm:$0xff]  }
  0x37   :  { %552 = vmatprep.subr.bf16.mxu0 %v1681_v0  ;;  %1550 = vmatprep.subr.bf16.mxu1 %v1681_v0 }
  0x3a   :  { %553 = vmatpush1.bf16.msra.mxu0 %v1583_v17  ;;  %1566 = vmatpush1.bf16.msra.mxu1 %v1583_v17 }
  0x3b   :  { %554 = vmatprep.subr.bf16.mxu0 %v1681_v0  ;;  %1551 = vmatprep.subr.bf16.mxu1 %v1681_v0  ;;  %v1656_v0 = vld [vmem:[%s2066_s0 + $0x1b0] ss:$8 sps:$4 sm:$0xff]  }
  0x3e   :  { %555 = vmatpush1.bf16.msra.mxu0 %v1584_v18  ;;  %1567 = vmatpush1.bf16.msra.mxu1 %v1584_v18 }
  0x41   :  { %557 = vmatmul.mubr.bf16.vlgmr.msra.gmra.mrb[0].mxu0 %v1585_v19  ;;  %685 = vmatmul.mubr.bf16.vlgmr.msra.gmra.mrb[0].mxu1 %v1588_v20 }
  0x42   :  { %564 = vmatprep.mubr.bf16.mxu0 %v1591_v21  ;;  %692 = vmatprep.mubr.bf16.mxu1 %v1593_v22 }
  0x49   :  { %565 = vmatmul.mubr.bf16.gmra.mrb[4].mxu0 %v1595_v23  ;;  %693 = vmatmul.mubr.bf16.gmra.mrb[4].mxu1 %v1596_v24 }
  0x4a   :  { %572 = vmatprep.mubr.bf16.mxu0 %v1597_v25  ;;  %700 = vmatprep.mubr.bf16.mxu1 %v1599_v26 }
  0x51   :  { %573 = vmatmul.mubr.bf16.gmra.mrb[8].mxu0 %v1601_v27  ;;  %701 = vmatmul.mubr.bf16.gmra.mrb[8].mxu1 %v1602_v28 }
  0x52   :  { %580 = vmatprep.mubr.bf16.mxu0 %v1603_v29  ;;  %708 = vmatprep.mubr.bf16.mxu1 %v1605_v30 }
  0x59   :  { %581 = vmatmul.mubr.bf16.gmra.mrb[12].mxu0 %v1607_v31  ;;  %709 = vmatmul.mubr.bf16.gmra.mrb[12].mxu1 %v1608_v32 }
  0x5a   :  { %588 = vmatprep.mubr.bf16.mxu0 %v1609_v33  ;;  %716 = vmatprep.mubr.bf16.mxu1 %v1611_v34 }
  0x61   :  { %589 = vmatmul.mubr.bf16.gmra.mrb[16].mxu0 %v1613_v35  ;;  %717 = vmatmul.mubr.bf16.gmra.mrb[16].mxu1 %v1614_v36 }
  0x62   :  { %596 = vmatprep.mubr.bf16.mxu0 %v1615_v37  ;;  %724 = vmatprep.mubr.bf16.mxu1 %v1617_v38 }
  0x69   :  { %597 = vmatmul.mubr.bf16.gmra.mrb[20].mxu0 %v1619_v39  ;;  %725 = vmatmul.mubr.bf16.gmra.mrb[20].mxu1 %v1620_v40 }
  0x6a   :  { %604 = vmatprep.mubr.bf16.mxu0 %v1621_v41  ;;  %732 = vmatprep.mubr.bf16.mxu1 %v1623_v42 }
  0x71   :  { %605 = vmatmul.mubr.bf16.gmra.mrb[24].mxu0 %v1625_v43  ;;  %733 = vmatmul.mubr.bf16.gmra.mrb[24].mxu1 %v1626_v44 }
  0x72   :  { %612 = vmatprep.mubr.bf16.mxu0 %v1627_v45  ;;  %740 = vmatprep.mubr.bf16.mxu1 %v1629_v46 }
  0x79   :  { %613 = vmatmul.mubr.bf16.gmra.mrb[28].mxu0 %v1631_v47  ;;  %741 = vmatmul.mubr.bf16.gmra.mrb[28].mxu1 %v1632_v48 }
  0x7a   :  { %620 = vmatprep.mubr.bf16.mxu0 %v1633_v49  ;;  %748 = vmatprep.mubr.bf16.mxu1 %v1635_v50 }
  0x81   :  { %621 = vmatmul.mubr.bf16.gmra.mrb[32].mxu0 %v1637_v51  ;;  %749 = vmatmul.mubr.bf16.gmra.mrb[32].mxu1 %v1638_v52 }
  0x82   :  { %628 = vmatprep.mubr.bf16.mxu0 %v1639_v53  ;;  %756 = vmatprep.mubr.bf16.mxu1 %v1641_v54 }
  0x89   :  { %629 = vmatmul.mubr.bf16.gmra.mrb[36].mxu0 %v1643_v55  ;;  %757 = vmatmul.mubr.bf16.gmra.mrb[36].mxu1 %v1644_v56 }
  0x8a   :  { %636 = vmatprep.mubr.bf16.mxu0 %v1645_v57  ;;  %764 = vmatprep.mubr.bf16.mxu1 %v1647_v58 }
  0x91   :  { %637 = vmatmul.mubr.bf16.gmra.mrb[40].mxu0 %v1649_v59  ;;  %765 = vmatmul.mubr.bf16.gmra.mrb[40].mxu1 %v1650_v60 }
  0x92   :  { %644 = vmatprep.mubr.bf16.mxu0 %v1651_v61  ;;  %772 = vmatprep.mubr.bf16.mxu1 %v1653_v62 }
  0x99   :  { %645 = vmatmul.mubr.bf16.gmra.mrb[44].mxu0 %v1655_v63  ;;  %773 = vmatmul.mubr.bf16.gmra.mrb[44].mxu1 %v1656_v0 }
  0x9a   :  { %652 = vmatprep.mubr.bf16.mxu0 %v1657_v1  ;;  %780 = vmatprep.mubr.bf16.mxu1 %v1659_v2 }
  0xa1   :  { %653 = vmatmul.mubr.bf16.gmra.mrb[48].mxu0 %v1661_v3  ;;  %781 = vmatmul.mubr.bf16.gmra.mrb[48].mxu1 %v1662_v4 }
  0xa2   :  { %660 = vmatprep.mubr.bf16.mxu0 %v1663_v5  ;;  %788 = vmatprep.mubr.bf16.mxu1 %v1665_v6 }
  0xa9   :  { %661 = vmatmul.mubr.bf16.gmra.mrb[52].mxu0 %v1667_v7  ;;  %789 = vmatmul.mubr.bf16.gmra.mrb[52].mxu1 %v1668_v8 }
  0xaa   :  { %668 = vmatprep.mubr.bf16.mxu0 %v1669_v9  ;;  %796 = vmatprep.mubr.bf16.mxu1 %v1671_v10 }
  0xb1   :  { %669 = vmatmul.mubr.bf16.gmra.mrb[56].mxu0 %v1673_v11  ;;  %797 = vmatmul.mubr.bf16.gmra.mrb[56].mxu1 %v1674_v12 }
  0xb2   :  { %676 = vmatprep.mubr.bf16.mxu0 %v1675_v13  ;;  %804 = vmatprep.mubr.bf16.mxu1 %v1677_v14 }
  0xb9   :  { %677 = vmatmul.mubr.bf16.gmra.mrb[60].mxu0 %v1679_v15  ;;  %805 = vmatmul.mubr.bf16.gmra.mrb[60].mxu1 %v1680_v16 }
 0x114   :  { %v558_v17 = vpop.f32.mrb[0].mxu0  ;;  %v686_v18 = vpop.f32.mrb[0].mxu1 }
 0x115   :  { %v560_v19 = vpop.f32.mrb[1].mxu0  ;;  %v688_v20 = vpop.f32.mrb[1].mxu1 }
 0x116   :  { %v561_v21 = vpop.f32.mrb[2].mxu0  ;;  %v689_v22 = vpop.f32.mrb[2].mxu1 }
 0x117   :  { %v1348_v23 = vpack.c.bf16 %v561_v21, %v558_v17  ;;  %v1428_v24 = vpack.c.bf16 %v689_v22, %v686_v18  ;;  %v563_v25 = vpop.f32.mrb[3].mxu0  ;;  %v691_v26 = vpop.f32.mrb[3].mxu1 }
 0x119   :  { %1349 = vst [vmem:[%s2067_s2] sm:$0xff] %v1348_v23   ;;  %1520 = vst [vmem:[%s2067_s2 + $0x80] sm:$0xff] %v1428_v24  }
 0x11c   :  { %v566_v27 = vpop.f32.mrb[4].mxu0  ;;  %v694_v28 = vpop.f32.mrb[4].mxu1 }
 0x11d   :  { %v568_v29 = vpop.f32.mrb[5].mxu0  ;;  %v696_v30 = vpop.f32.mrb[5].mxu1 }
 0x11e   :  { %v569_v31 = vpop.f32.mrb[6].mxu0  ;;  %v697_v32 = vpop.f32.mrb[6].mxu1 }
 0x11f   :  { %v1353_v33 = vpack.c.bf16 %v569_v31, %v566_v27  ;;  %v1433_v34 = vpack.c.bf16 %v697_v32, %v694_v28  ;;  %v571_v35 = vpop.f32.mrb[7].mxu0  ;;  %v699_v36 = vpop.f32.mrb[7].mxu1 }
 0x121   :  { %1505 = vst [vmem:[%s2067_s2 + $0x8] sm:$0xff] %v1353_v33   ;;  %1521 = vst [vmem:[%s2067_s2 + $0x88] sm:$0xff] %v1433_v34  }
 0x124   :  { %v574_v37 = vpop.f32.mrb[8].mxu0  ;;  %v702_v38 = vpop.f32.mrb[8].mxu1 }
 0x125   :  { %v576_v39 = vpop.f32.mrb[9].mxu0  ;;  %v704_v40 = vpop.f32.mrb[9].mxu1 }
 0x126   :  { %v577_v41 = vpop.f32.mrb[10].mxu0  ;;  %v705_v42 = vpop.f32.mrb[10].mxu1 }
 0x127   :  { %v1358_v43 = vpack.c.bf16 %v577_v41, %v574_v37  ;;  %v1438_v44 = vpack.c.bf16 %v705_v42, %v702_v38  ;;  %v579_v45 = vpop.f32.mrb[11].mxu0  ;;  %v707_v46 = vpop.f32.mrb[11].mxu1 }
 0x129   :  { %1506 = vst [vmem:[%s2067_s2 + $0x10] sm:$0xff] %v1358_v43   ;;  %1522 = vst [vmem:[%s2067_s2 + $0x90] sm:$0xff] %v1438_v44  }
 0x12c   :  { %v582_v47 = vpop.f32.mrb[12].mxu0  ;;  %v710_v48 = vpop.f32.mrb[12].mxu1 }
 0x12d   :  { %v584_v49 = vpop.f32.mrb[13].mxu0  ;;  %v712_v50 = vpop.f32.mrb[13].mxu1 }
 0x12e   :  { %v585_v51 = vpop.f32.mrb[14].mxu0  ;;  %v713_v52 = vpop.f32.mrb[14].mxu1 }
 0x12f   :  { %v1363_v53 = vpack.c.bf16 %v585_v51, %v582_v47  ;;  %v1443_v54 = vpack.c.bf16 %v713_v52, %v710_v48  ;;  %v587_v55 = vpop.f32.mrb[15].mxu0  ;;  %v715_v56 = vpop.f32.mrb[15].mxu1 }
 0x131   :  { %1507 = vst [vmem:[%s2067_s2 + $0x18] sm:$0xff] %v1363_v53   ;;  %1523 = vst [vmem:[%s2067_s2 + $0x98] sm:$0xff] %v1443_v54  }
 0x134   :  { %v590_v57 = vpop.f32.mrb[16].mxu0  ;;  %v718_v58 = vpop.f32.mrb[16].mxu1 }
 0x135   :  { %v592_v59 = vpop.f32.mrb[17].mxu0  ;;  %v720_v60 = vpop.f32.mrb[17].mxu1 }
 0x136   :  { %v593_v61 = vpop.f32.mrb[18].mxu0  ;;  %v721_v62 = vpop.f32.mrb[18].mxu1 }
 0x137   :  { %v1368_v63 = vpack.c.bf16 %v593_v61, %v590_v57  ;;  %v1448_v0 = vpack.c.bf16 %v721_v62, %v718_v58  ;;  %v595_v1 = vpop.f32.mrb[19].mxu0  ;;  %v723_v2 = vpop.f32.mrb[19].mxu1 }
 0x139   :  { %1508 = vst [vmem:[%s2067_s2 + $0x20] sm:$0xff] %v1368_v63   ;;  %1524 = vst [vmem:[%s2067_s2 + $0xa0] sm:$0xff] %v1448_v0  }
 0x13c   :  { %v598_v3 = vpop.f32.mrb[20].mxu0  ;;  %v726_v4 = vpop.f32.mrb[20].mxu1 }
 0x13d   :  { %v600_v5 = vpop.f32.mrb[21].mxu0  ;;  %v728_v6 = vpop.f32.mrb[21].mxu1 }
 0x13e   :  { %v601_v7 = vpop.f32.mrb[22].mxu0  ;;  %v729_v8 = vpop.f32.mrb[22].mxu1 }
 0x13f   :  { %v1373_v9 = vpack.c.bf16 %v601_v7, %v598_v3  ;;  %v1453_v10 = vpack.c.bf16 %v729_v8, %v726_v4  ;;  %v603_v11 = vpop.f32.mrb[23].mxu0  ;;  %v731_v12 = vpop.f32.mrb[23].mxu1 }
 0x141   :  { %1509 = vst [vmem:[%s2067_s2 + $0x28] sm:$0xff] %v1373_v9   ;;  %1525 = vst [vmem:[%s2067_s2 + $0xa8] sm:$0xff] %v1453_v10  }
 0x144   :  { %v606_v13 = vpop.f32.mrb[24].mxu0  ;;  %v734_v14 = vpop.f32.mrb[24].mxu1 }
 0x145   :  { %v608_v15 = vpop.f32.mrb[25].mxu0  ;;  %v736_v16 = vpop.f32.mrb[25].mxu1 }
 0x146   :  { %v609_v17 = vpop.f32.mrb[26].mxu0  ;;  %v737_v18 = vpop.f32.mrb[26].mxu1 }
 0x147   :  { %v1378_v19 = vpack.c.bf16 %v609_v17, %v606_v13  ;;  %v1458_v20 = vpack.c.bf16 %v737_v18, %v734_v14  ;;  %v611_v21 = vpop.f32.mrb[27].mxu0  ;;  %v739_v22 = vpop.f32.mrb[27].mxu1 }
 0x149   :  { %1510 = vst [vmem:[%s2067_s2 + $0x30] sm:$0xff] %v1378_v19   ;;  %1526 = vst [vmem:[%s2067_s2 + $0xb0] sm:$0xff] %v1458_v20  }
 0x14c   :  { %v614_v23 = vpop.f32.mrb[28].mxu0  ;;  %v742_v24 = vpop.f32.mrb[28].mxu1 }
 0x14d   :  { %v616_v25 = vpop.f32.mrb[29].mxu0  ;;  %v744_v26 = vpop.f32.mrb[29].mxu1 }
 0x14e   :  { %v617_v27 = vpop.f32.mrb[30].mxu0  ;;  %v745_v28 = vpop.f32.mrb[30].mxu1 }
 0x14f   :  { %v1383_v29 = vpack.c.bf16 %v617_v27, %v614_v23  ;;  %v1463_v30 = vpack.c.bf16 %v745_v28, %v742_v24  ;;  %v619_v31 = vpop.f32.mrb[31].mxu0  ;;  %v747_v32 = vpop.f32.mrb[31].mxu1 }
 0x151   :  { %1511 = vst [vmem:[%s2067_s2 + $0x38] sm:$0xff] %v1383_v29   ;;  %1527 = vst [vmem:[%s2067_s2 + $0xb8] sm:$0xff] %v1463_v30  }
 0x154   :  { %v622_v33 = vpop.f32.mrb[32].mxu0  ;;  %v750_v34 = vpop.f32.mrb[32].mxu1 }
 0x155   :  { %v624_v35 = vpop.f32.mrb[33].mxu0  ;;  %v752_v36 = vpop.f32.mrb[33].mxu1 }
 0x156   :  { %v625_v37 = vpop.f32.mrb[34].mxu0  ;;  %v753_v38 = vpop.f32.mrb[34].mxu1 }
 0x157   :  { %v1388_v39 = vpack.c.bf16 %v625_v37, %v622_v33  ;;  %v1468_v40 = vpack.c.bf16 %v753_v38, %v750_v34  ;;  %v627_v41 = vpop.f32.mrb[35].mxu0  ;;  %v755_v42 = vpop.f32.mrb[35].mxu1 }
 0x159   :  { %1512 = vst [vmem:[%s2067_s2 + $0x40] sm:$0xff] %v1388_v39   ;;  %1528 = vst [vmem:[%s2067_s2 + $0xc0] sm:$0xff] %v1468_v40  }
 0x15c   :  { %v630_v43 = vpop.f32.mrb[36].mxu0  ;;  %v758_v44 = vpop.f32.mrb[36].mxu1 }
 0x15d   :  { %v632_v45 = vpop.f32.mrb[37].mxu0  ;;  %v760_v46 = vpop.f32.mrb[37].mxu1 }
 0x15e   :  { %v633_v47 = vpop.f32.mrb[38].mxu0  ;;  %v761_v48 = vpop.f32.mrb[38].mxu1 }
 0x15f   :  { %v1393_v49 = vpack.c.bf16 %v633_v47, %v630_v43  ;;  %v1473_v50 = vpack.c.bf16 %v761_v48, %v758_v44  ;;  %v635_v51 = vpop.f32.mrb[39].mxu0  ;;  %v763_v52 = vpop.f32.mrb[39].mxu1 }
 0x161   :  { %1513 = vst [vmem:[%s2067_s2 + $0x48] sm:$0xff] %v1393_v49   ;;  %1529 = vst [vmem:[%s2067_s2 + $0xc8] sm:$0xff] %v1473_v50  }
 0x164   :  { %v638_v53 = vpop.f32.mrb[40].mxu0  ;;  %v766_v54 = vpop.f32.mrb[40].mxu1 }
 0x165   :  { %v640_v55 = vpop.f32.mrb[41].mxu0  ;;  %v768_v56 = vpop.f32.mrb[41].mxu1 }
 0x166   :  { %v641_v57 = vpop.f32.mrb[42].mxu0  ;;  %v769_v58 = vpop.f32.mrb[42].mxu1 }
 0x167   :  { %v1398_v59 = vpack.c.bf16 %v641_v57, %v638_v53  ;;  %v1478_v60 = vpack.c.bf16 %v769_v58, %v766_v54  ;;  %v643_v61 = vpop.f32.mrb[43].mxu0  ;;  %v771_v62 = vpop.f32.mrb[43].mxu1 }
 0x169   :  { %1514 = vst [vmem:[%s2067_s2 + $0x50] sm:$0xff] %v1398_v59   ;;  %1530 = vst [vmem:[%s2067_s2 + $0xd0] sm:$0xff] %v1478_v60  }
 0x16c   :  { %v646_v63 = vpop.f32.mrb[44].mxu0  ;;  %v774_v0 = vpop.f32.mrb[44].mxu1 }
 0x16d   :  { %v648_v1 = vpop.f32.mrb[45].mxu0  ;;  %v776_v2 = vpop.f32.mrb[45].mxu1 }
 0x16e   :  { %v649_v3 = vpop.f32.mrb[46].mxu0  ;;  %v777_v4 = vpop.f32.mrb[46].mxu1 }
 0x16f   :  { %v1403_v5 = vpack.c.bf16 %v649_v3, %v646_v63  ;;  %v1483_v6 = vpack.c.bf16 %v777_v4, %v774_v0  ;;  %v651_v7 = vpop.f32.mrb[47].mxu0  ;;  %v779_v8 = vpop.f32.mrb[47].mxu1 }
 0x171   :  { %1515 = vst [vmem:[%s2067_s2 + $0x58] sm:$0xff] %v1403_v5   ;;  %1531 = vst [vmem:[%s2067_s2 + $0xd8] sm:$0xff] %v1483_v6  }
 0x174   :  { %v654_v9 = vpop.f32.mrb[48].mxu0  ;;  %v782_v10 = vpop.f32.mrb[48].mxu1 }
 0x175   :  { %v656_v11 = vpop.f32.mrb[49].mxu0  ;;  %v784_v12 = vpop.f32.mrb[49].mxu1 }
 0x176   :  { %v657_v13 = vpop.f32.mrb[50].mxu0  ;;  %v785_v14 = vpop.f32.mrb[50].mxu1 }
 0x177   :  { %v1408_v15 = vpack.c.bf16 %v657_v13, %v654_v9  ;;  %v1488_v16 = vpack.c.bf16 %v785_v14, %v782_v10  ;;  %v659_v17 = vpop.f32.mrb[51].mxu0  ;;  %v787_v18 = vpop.f32.mrb[51].mxu1 }
 0x179   :  { %1516 = vst [vmem:[%s2067_s2 + $0x60] sm:$0xff] %v1408_v15   ;;  %1532 = vst [vmem:[%s2067_s2 + $0xe0] sm:$0xff] %v1488_v16  }
 0x17c   :  { %v662_v19 = vpop.f32.mrb[52].mxu0  ;;  %v790_v20 = vpop.f32.mrb[52].mxu1 }
 0x17d   :  { %v664_v21 = vpop.f32.mrb[53].mxu0  ;;  %v792_v22 = vpop.f32.mrb[53].mxu1 }
 0x17e   :  { %v665_v23 = vpop.f32.mrb[54].mxu0  ;;  %v793_v24 = vpop.f32.mrb[54].mxu1 }
 0x17f   :  { %v1413_v25 = vpack.c.bf16 %v665_v23, %v662_v19  ;;  %v1493_v26 = vpack.c.bf16 %v793_v24, %v790_v20  ;;  %v667_v27 = vpop.f32.mrb[55].mxu0  ;;  %v795_v28 = vpop.f32.mrb[55].mxu1 }
 0x181   :  { %1517 = vst [vmem:[%s2067_s2 + $0x68] sm:$0xff] %v1413_v25   ;;  %1533 = vst [vmem:[%s2067_s2 + $0xe8] sm:$0xff] %v1493_v26  }
 0x184   :  { %v670_v29 = vpop.f32.mrb[56].mxu0  ;;  %v798_v30 = vpop.f32.mrb[56].mxu1 }
 0x185   :  { %v672_v31 = vpop.f32.mrb[57].mxu0  ;;  %v800_v32 = vpop.f32.mrb[57].mxu1 }
 0x186   :  { %v673_v33 = vpop.f32.mrb[58].mxu0  ;;  %v801_v34 = vpop.f32.mrb[58].mxu1 }
 0x187   :  { %v1418_v35 = vpack.c.bf16 %v673_v33, %v670_v29  ;;  %v1498_v36 = vpack.c.bf16 %v801_v34, %v798_v30  ;;  %v675_v37 = vpop.f32.mrb[59].mxu0  ;;  %v803_v38 = vpop.f32.mrb[59].mxu1 }
 0x189   :  { %1518 = vst [vmem:[%s2067_s2 + $0x70] sm:$0xff] %v1418_v35   ;;  %1534 = vst [vmem:[%s2067_s2 + $0xf0] sm:$0xff] %v1498_v36  }
 0x18c   :  { %v678_v39 = vpop.f32.mrb[60].mxu0  ;;  %v806_v40 = vpop.f32.mrb[60].mxu1 }
 0x18d   :  { %v680_v41 = vpop.f32.mrb[61].mxu0  ;;  %v808_v42 = vpop.f32.mrb[61].mxu1 }
 0x18e   :  { %v681_v43 = vpop.f32.mrb[62].mxu0  ;;  %v809_v44 = vpop.f32.mrb[62].mxu1 }
 0x18f   :  { %v1423_v45 = vpack.c.bf16 %v681_v43, %v678_v39  ;;  %v1503_v46 = vpack.c.bf16 %v809_v44, %v806_v40  ;;  %v683_v47 = vpop.f32.mrb[63].mxu0  ;;  %v811_v48 = vpop.f32.mrb[63].mxu1 }
 0x191   :  { %1519 = vst [vmem:[%s2067_s2 + $0x78] sm:$0xff] %v1423_v45   ;;  %1535 = vst [vmem:[%s2067_s2 + $0xf8] sm:$0xff] %v1503_v46  }

// kernel: sage_forward.4
= control target key start
LH: loop header
LB: loop body
LE: loop exit
PB: predicated region body
PF: predicated region fallthrough
CT: control target
= control target key end

     0   :  { %s3439_s21 = smov 0   ;;  %s3441_s22 = smov 0   ;;  %s3989_s0 = inlined_call_operand.vmem [shape: bf16[512,512], index: 0, kind: input, shape index: {}]   ;;  %s3990_s1 = inlined_call_operand.vmem [shape: bf16[512,128], index: 1, kind: input, shape index: {}, may-alias: {1,2}]   ;;  %s3991_s2 = inlined_call_operand.vmem [shape: bf16[512,128], index: 2, kind: input, shape index: {}, may-alias: {1,2}]   ;;  %s3992_s3 = inlined_call_operand.vmem [shape: bf16[128,256], index: 3, kind: input, shape index: {}]   ;;  %s3993_s4 = inlined_call_operand.vmem [shape: bf16[128,256], index: 4, kind: input, shape index: {}]   ;;  %s3994_s5 = inlined_call_operand.vmem [shape: f32[1,256], index: 5, kind: input, shape index: {}]   ;;  %s3995_s6 = inlined_call_operand.vmem [shape: bf16[512,256], index: 6, kind: output, shape index: {}]  }
   0x1   :  { %s3443_s23 = smov 0  }
   0x2 LB: > { %s28_s24 = sadd.s32 1, %s3397_s22  ;;  %p2653_p0 = scmp.ge.s32.totalorder %s3401_s23, 1  ;;  %s3401_s23 = sphi %s3443_s23, %s16_s23   ;;  %s3397_s22 = sphi %s3441_s22, %s3997_s22   ;;  %s3393_s21 = sphi %s3439_s21, %s3996_s21  }
   0x3   : > { %p30_p1 = scmp.ge.s32.totalorder %s28_s24, 2  ;;  %p255_p2 = scmp.lt.s32.totalorder %s3401_s23, 3 }
   0x5   : > { %s3999_s24 = smov (%p30_p1, %s28_s24), 0  ;;  %p256_p3 = pnand %p2653_p0, %p255_p2 }
   0x6   : > { %v3187_v0 = vld [vmem:[%s3990_s1 + $0x40] sm:$0xff] (!%p256_p3)   ;;  %s2654_s27 = sshll.u32 (!%p256_p3), %s3393_s21, 5  ;;  %v3189_v2 = vld [vmem:[%s3990_s1 + $0x48] sm:$0xff] (!%p256_p3)   ;;  %v3191_v4 = vld [vmem:[%s3990_s1 + $0x50] sm:$0xff] (!%p256_p3)  }
   0x7   : > { %259 = sbr.rel (%p256_p3) target bundleno = 730 (0x2da), region = 44  ;;  %v3188_v1 = vld [vmem:[%s3990_s1] sm:$0xff] (!%p256_p3)   ;;  %2874 = vmatprep.subr.bf16.mxu1 (!%p256_p3), %v3187_v0  ;;  %v3190_v3 = vld [vmem:[%s3990_s1 + $0x8] sm:$0xff] (!%p256_p3)   ;;  %p303_p4 = scmp.lt.s32.totalorder (!%p256_p3), %s2654_s27, 63  ;;  %v3192_v5 = vld [vmem:[%s3990_s1 + $0x10] sm:$0xff] (!%p256_p3)  }
   0x8   : > { %2875 = vmatpush3.bf16.msra.mxu1 (!%p256_p3), %v3188_v1  ;;  %v3193_v6 = vld [vmem:[%s3990_s1 + $0x58] sm:$0xff] (!%p256_p3)   ;;  %v3195_v8 = vld [vmem:[%s3990_s1 + $0x60] sm:$0xff] (!%p256_p3)   ;;  %v3197_v10 = vld [vmem:[%s3990_s1 + $0x68] sm:$0xff] (!%p256_p3)  }
   0x9   : > { %2876 = vmatprep.subr.bf16.mxu1 (!%p256_p3), %v3189_v2  ;;  %v3194_v7 = vld [vmem:[%s3990_s1 + $0x18] sm:$0xff] (!%p256_p3)   ;;  %v3196_v9 = vld [vmem:[%s3990_s1 + $0x20] sm:$0xff] (!%p256_p3)   ;;  %v3198_v12 = vld [vmem:[%s3990_s1 + $0x28] sm:$0xff] (!%p256_p3)  }
   0xa   : > { %v3199_v13 = vld [vmem:[%s3990_s1 + $0x70] sm:$0xff] (!%p256_p3)   ;;  %v3201_v15 = vld [vmem:[%s3990_s1 + $0x78] sm:$0xff] (!%p256_p3)   ;;  %v3206_v17 = vld [vmem:[%s3990_s1 + $0xc0] sm:$0xff] (!%p256_p3)  }
   0xb   : > { %v3200_v14 = vld [vmem:[%s3990_s1 + $0x30] sm:$0xff] (!%p256_p3)   ;;  %v3202_v16 = vld [vmem:[%s3990_s1 + $0x38] sm:$0xff] (!%p256_p3)   ;;  %v3207_v19 = vld [vmem:[%s3990_s1 + $0x80] sm:$0xff] (!%p256_p3)  }
   0xc   : > { %2877 = vmatpush3.bf16.msra.mxu1 (!%p256_p3), %v3190_v3  ;;  %v3214_v21 = vld [vmem:[%s3990_s1 + $0xc8] sm:$0xff] (!%p256_p3)   ;;  %v3222_v23 = vld [vmem:[%s3990_s1 + $0xd0] sm:$0xff] (!%p256_p3)   ;;  %v3230_v27 = vld [vmem:[%s3990_s1 + $0xd8] sm:$0xff] (!%p256_p3)  }
   0xd   : > { %2878 = vmatprep.subr.bf16.mxu1 (!%p256_p3), %v3191_v4  ;;  %v3215_v22 = vld [vmem:[%s3990_s1 + $0x88] sm:$0xff] (!%p256_p3)   ;;  %v3223_v26 = vld [vmem:[%s3990_s1 + $0x90] sm:$0xff] (!%p256_p3)   ;;  %v3231_v28 = vld [vmem:[%s3990_s1 + $0x98] sm:$0xff] (!%p256_p3)  }
   0xe   : > { %s4001_s27 = smov (!%p303_p4, %s2654_s27), 63  ;;  %v3238_v29 = vld [vmem:[%s3990_s1 + $0xe0] sm:$0xff]   ;;  %v3246_v33 = vld [vmem:[%s3990_s1 + $0xe8] sm:$0xff]   ;;  %v3254_v35 = vld [vmem:[%s3990_s1 + $0xf0] sm:$0xff]  }
   0xf   : > { %s2840_s18 = sshll.u32 %s4001_s27, 4  ;;  %v3239_v32 = vld [vmem:[%s3990_s1 + $0xa0] sm:$0xff]   ;;  %v3247_v34 = vld [vmem:[%s3990_s1 + $0xa8] sm:$0xff]   ;;  %v3255_v38 = vld [vmem:[%s3990_s1 + $0xb0] sm:$0xff]   ;;  %s2658_s30 = sshll.u32 %s4001_s27, 2 }
  0x10   : > { %2879 = vmatpush3.bf16.msra.mxu1 %v3192_v5  ;;  %s3490_s26 = scalar_lea.vmem %s3989_s0, %s2840_s18  ;;  %v3262_v39 = vld [vmem:[%s3990_s1 + $0xf8] sm:$0xff]   ;;  %v3291_v49 = vld [vmem:[%s3993_s4 + $0x4] ss:$8 sps:$4 sm:$0xff]   ;;  %v3293_v50 = vld [vmem:[%s3993_s4] ss:$8 sps:$4 sm:$0xff]   ;;  %s3639_s9 = scalar_lea.vmem %s3991_s2, %s2658_s30 }
  0x11   : > { %2880 = vmatprep.subr.bf16.mxu1 %v3193_v6  ;;  %v3205_v11 = vld [vmem:[%s3490_s26 + $0x4] ss:$16 sps:$4 sm:$0xff]   ;;  %v3203_v18 = vld [vmem:[%s3490_s26] ss:$16 sps:$4 sm:$0xff]   ;;  %v3263_v40 = vld [vmem:[%s3990_s1 + $0xb8] sm:$0xff]   ;;  %1718 = vmatprep.subr.bf16.mxu0 %v3291_v49  ;;  %s2841_s29 = sshll.u32 %s4001_s27, 3 }
  0x12   : > { %1073 = vmatprep.mubr.bf16.mxu1 %v3205_v11  ;;  %v3208_v20 = vld [vmem:[%s3490_s26 + $0x24] ss:$16 sps:$4 sm:$0xff]   ;;  %v3210_v24 = vld [vmem:[%s3490_s26 + $0x20] ss:$16 sps:$4 sm:$0xff]   ;;  %1719 = vmatpush1.bf16.msra.mxu0 %v3293_v50  ;;  %v3403_v11 = vmov 0   ;;  %s3886_s8 = scalar_lea.vmem %s3995_s6, %s2841_s29 }
  0x13   : > { %v3211_v25 = vld [vmem:[%s3490_s26 + $0x44] ss:$16 sps:$4 sm:$0xff]   ;;  %v3213_v30 = vld [vmem:[%s3490_s26 + $0x40] ss:$16 sps:$4 sm:$0xff]   ;;  %1750 = vmatprep.mubr.bf16.mxu0 %v3403_v11  ;;  %v3285_v49 = vld [vmem:[%s3490_s26 + $0xcc] ss:$16 sps:$4 sm:$0xff]  }
  0x14   : > { %2881 = vmatpush3.bf16.msra.mxu1 %v3194_v7  ;;  %v3216_v31 = vld [vmem:[%s3490_s26 + $0x64] ss:$16 sps:$4 sm:$0xff]   ;;  %v3218_v36 = vld [vmem:[%s3490_s26 + $0x60] ss:$16 sps:$4 sm:$0xff]  }
  0x15   : > { %2882 = vmatprep.subr.bf16.mxu1 %v3195_v8  ;;  %v3219_v37 = vld [vmem:[%s3490_s26 + $0x84] ss:$16 sps:$4 sm:$0xff]   ;;  %v3221_v41 = vld [vmem:[%s3490_s26 + $0x80] ss:$16 sps:$4 sm:$0xff]  }
  0x16   : > { %v3224_v42 = vld [vmem:[%s3490_s26 + $0xa4] ss:$16 sps:$4 sm:$0xff]   ;;  %v3226_v43 = vld [vmem:[%s3490_s26 + $0xa0] ss:$16 sps:$4 sm:$0xff]  }
  0x17   : > { %v3227_v44 = vld [vmem:[%s3490_s26 + $0xc4] ss:$16 sps:$4 sm:$0xff]   ;;  %v3229_v45 = vld [vmem:[%s3490_s26 + $0xc0] ss:$16 sps:$4 sm:$0xff]  }
  0x18   : > { %2883 = vmatpush3.bf16.msra.mxu1 %v3196_v9  ;;  %v3232_v46 = vld [vmem:[%s3490_s26 + $0xe4] ss:$16 sps:$4 sm:$0xff]   ;;  %v3234_v47 = vld [vmem:[%s3490_s26 + $0xe0] ss:$16 sps:$4 sm:$0xff]  }
  0x19   : > { %2884 = vmatprep.subr.bf16.mxu1 %v3197_v10  ;;  %v3235_v48 = vld [vmem:[%s3490_s26 + $0x104] ss:$16 sps:$4 sm:$0xff]   ;;  %v3237_v51 = vld [vmem:[%s3490_s26 + $0x100] ss:$16 sps:$4 sm:$0xff]  }
  0x1a   : > { %v3240_v52 = vld [vmem:[%s3490_s26 + $0x124] ss:$16 sps:$4 sm:$0xff]   ;;  %v3299_v54 = vld [vmem:[%s3993_s4 + $0x10] ss:$8 sps:$4 sm:$0xff]   ;;  %v3302_v56 = vld [vmem:[%s3993_s4 + $0x20] ss:$8 sps:$4 sm:$0xff]  }
  0x1b   : > { %v3297_v53 = vld [vmem:[%s3993_s4 + $0x14] ss:$8 sps:$4 sm:$0xff]   ;;  %v3300_v55 = vld [vmem:[%s3993_s4 + $0x24] ss:$8 sps:$4 sm:$0xff]   ;;  %v3242_v57 = vld [vmem:[%s3490_s26 + $0x120] ss:$16 sps:$4 sm:$0xff]  }
  0x1c   : > { %2885 = vmatpush3.bf16.msra.mxu1 %v3198_v12  ;;  %1720 = vmatprep.subr.bf16.mxu0 %v3297_v53  ;;  %v3243_v58 = vld [vmem:[%s3490_s26 + $0x144] ss:$16 sps:$4 sm:$0xff]   ;;  %v3308_v60 = vld [vmem:[%s3993_s4 + $0x30] ss:$8 sps:$4 sm:$0xff]   ;;  %v3311_v62 = vld [vmem:[%s3993_s4 + $0x40] ss:$8 sps:$4 sm:$0xff]  }
  0x1d   : > { %2886 = vmatprep.subr.bf16.mxu1 %v3199_v13  ;;  %1721 = vmatpush1.bf16.msra.mxu0 %v3299_v54  ;;  %v3306_v59 = vld [vmem:[%s3993_s4 + $0x34] ss:$8 sps:$4 sm:$0xff]   ;;  %v3309_v61 = vld [vmem:[%s3993_s4 + $0x44] ss:$8 sps:$4 sm:$0xff]   ;;  %v3245_v63 = vld [vmem:[%s3490_s26 + $0x140] ss:$16 sps:$4 sm:$0xff]  }
  0x1e   : > { %1722 = vmatprep.subr.bf16.mxu0 %v3300_v55  ;;  %v3248_v0 = vld [vmem:[%s3490_s26 + $0x164] ss:$16 sps:$4 sm:$0xff]   ;;  %v3317_v2 = vld [vmem:[%s3993_s4 + $0x50] ss:$8 sps:$4 sm:$0xff]   ;;  %v3320_v5 = vld [vmem:[%s3993_s4 + $0x60] ss:$8 sps:$4 sm:$0xff]  }
  0x1f   : > { %v3315_v1 = vld [vmem:[%s3993_s4 + $0x54] ss:$8 sps:$4 sm:$0xff]   ;;  %v3318_v3 = vld [vmem:[%s3993_s4 + $0x64] ss:$8 sps:$4 sm:$0xff]   ;;  %v3250_v4 = vld [vmem:[%s3490_s26 + $0x160] ss:$16 sps:$4 sm:$0xff]  }
  0x20   : > { %2887 = vmatpush3.bf16.msra.mxu1 %v3200_v14  ;;  %v3251_v6 = vld [vmem:[%s3490_s26 + $0x184] ss:$16 sps:$4 sm:$0xff]   ;;  %v3326_v8 = vld [vmem:[%s3993_s4 + $0x70] ss:$8 sps:$4 sm:$0xff]   ;;  %v3328_v13 = vld [vmem:[%s3992_s3] ss:$8 sps:$4 sm:$0xff]  }
  0x21   : > { %2888 = vmatprep.subr.bf16.mxu1 %v3201_v15  ;;  %1723 = vmatpush1.bf16.msra.mxu0 %v3302_v56  ;;  %v3324_v7 = vld [vmem:[%s3993_s4 + $0x74] ss:$8 sps:$4 sm:$0xff]   ;;  %v3253_v9 = vld [vmem:[%s3490_s26 + $0x180] ss:$16 sps:$4 sm:$0xff]   ;;  %v3330_v14 = vld [vmem:[%s3992_s3 + $0x4] ss:$8 sps:$4 sm:$0xff]  }
  0x22   : > { %1724 = vmatprep.subr.bf16.mxu0 %v3306_v59  ;;  %v3327_v10 = vld [vmem:[%s3639_s9] sm:$0xff]   ;;  %v3364_v50 = vld [vmem:[%s3639_s9 + $0x50] sm:$0xff]   ;;  %v3368_v55 = vld [vmem:[%s3639_s9 + $0x58] sm:$0xff]  }
  0x23   : > { %v3256_v12 = vld [vmem:[%s3490_s26 + $0x1a4] ss:$16 sps:$4 sm:$0xff]   ;;  %v3258_v15 = vld [vmem:[%s3490_s26 + $0x1a0] ss:$16 sps:$4 sm:$0xff]   ;;  %v3290_v56 = vld [vmem:[%s3490_s26 + $0xe8] ss:$16 sps:$4 sm:$0xff]  }
  0x24   : > { %2889 = vmatpush3.bf16.msra.mxu1 %v3202_v16  ;;  %v3334_v16 = vld [vmem:[%s3639_s9 + $0x8] sm:$0xff]   ;;  %v3365_v53 = vld [vmem:[%s3992_s3 + $0x50] ss:$8 sps:$4 sm:$0xff]   ;;  %v3367_v54 = vld [vmem:[%s3992_s3 + $0x54] ss:$8 sps:$4 sm:$0xff]  }
  0x25   : > { %2986 = vmatprep.subr.bf16.mxu1 %v3206_v17  ;;  %1725 = vmatpush1.bf16.msra.mxu0 %v3308_v60  ;;  %v3259_v17 = vld [vmem:[%s3490_s26 + $0x1c4] ss:$16 sps:$4 sm:$0xff]   ;;  %v3296_v59 = vld [vmem:[%s3490_s26 + $0x108] ss:$16 sps:$4 sm:$0xff]   ;;  %v3303_v60 = vld [vmem:[%s3490_s26 + $0x12c] ss:$16 sps:$4 sm:$0xff]  }
  0x26   : > { %1726 = vmatprep.subr.bf16.mxu0 %v3309_v61  ;;  %v3370_v61 = vld [vmem:[%s3992_s3 + $0x60] ss:$8 sps:$4 sm:$0xff]  }
  0x27   : > { %1074 = vmatmul.mubr.bf16.vlgmr.msra.gmra.mrb[0].mxu1 %v3203_v18  ;;  %v3338_v18 = vld [vmem:[%s3639_s9 + $0x10] sm:$0xff]  }
  0x28   : > { %2987 = vmatpush3.bf16.msra.mxu1 %v3207_v19  ;;  %1081 = vmatprep.mubr.bf16.mxu1 %v3208_v20  ;;  %v3261_v19 = vld [vmem:[%s3490_s26 + $0x1c0] ss:$16 sps:$4 sm:$0xff]   ;;  %v3264_v20 = vld [vmem:[%s3490_s26 + $0x1e4] ss:$16 sps:$4 sm:$0xff]  }
  0x29   : > { %2988 = vmatprep.subr.bf16.mxu1 %v3214_v21  ;;  %1727 = vmatpush1.bf16.msra.mxu0 %v3311_v62  ;;  %v3339_v21 = vld [vmem:[%s3992_s3 + $0x10] ss:$8 sps:$4 sm:$0xff]   ;;  %v3372_v62 = vld [vmem:[%s3992_s3 + $0x64] ss:$8 sps:$4 sm:$0xff]  }
  0x2a   : > { %1728 = vmatprep.subr.bf16.mxu0 %v3315_v1  ;;  %v3312_v1 = vld [vmem:[%s3490_s26 + $0x14c] ss:$16 sps:$4 sm:$0xff]  }
  0x2c   : > { %2989 = vmatpush3.bf16.msra.mxu1 %v3215_v22  ;;  %v3341_v22 = vld [vmem:[%s3992_s3 + $0x14] ss:$8 sps:$4 sm:$0xff]  }
  0x2d   : > { %2990 = vmatprep.subr.bf16.mxu1 %v3222_v23  ;;  %1729 = vmatpush1.bf16.msra.mxu0 %v3317_v2  ;;  %v3345_v23 = vld [vmem:[%s3639_s9 + $0x18] sm:$0xff]   ;;  %v3374_v2 = vld [vmem:[%s3639_s9 + $0x70] sm:$0xff]  }
  0x2e   : > { %1730 = vmatprep.subr.bf16.mxu0 %v3318_v3  ;;  %v3314_v3 = vld [vmem:[%s3490_s26 + $0x148] ss:$16 sps:$4 sm:$0xff]  }
  0x2f   : > { %1082 = vmatmul.mubr.bf16.gmra.mrb[4].mxu1 %v3210_v24  ;;  %v3266_v24 = vld [vmem:[%s3490_s26 + $0x1e0] ss:$16 sps:$4 sm:$0xff]  }
  0x30   : > { %1089 = vmatprep.mubr.bf16.mxu1 %v3211_v25  ;;  %2991 = vmatpush3.bf16.msra.mxu1 %v3223_v26  ;;  %v3269_v25 = vld [vmem:[%s3490_s26 + $0xc] ss:$16 sps:$4 sm:$0xff]   ;;  %v3349_v26 = vld [vmem:[%s3639_s9 + $0x20] sm:$0xff]  }
  0x31   : > { %2992 = vmatprep.subr.bf16.mxu1 %v3230_v27  ;;  %1731 = vmatpush1.bf16.msra.mxu0 %v3320_v5  ;;  %v3267_v27 = vld [vmem:[%s3490_s26 + $0x8] ss:$16 sps:$4 sm:$0xff]  }
  0x32   : > { %1732 = vmatprep.subr.bf16.mxu0 %v3324_v7  ;;  %v3375_v5 = vld [vmem:[%s3992_s3 + $0x70] ss:$8 sps:$4 sm:$0xff]  }
  0x34   : > { %2993 = vmatpush3.bf16.msra.mxu1 %v3231_v28  ;;  %v3270_v28 = vld [vmem:[%s3490_s26 + $0x2c] ss:$16 sps:$4 sm:$0xff]  }
  0x35   : > { %2994 = vmatprep.subr.bf16.mxu1 %v3238_v29  ;;  %1733 = vmatpush1.bf16.msra.mxu0 %v3326_v8  ;;  %v3350_v29 = vld [vmem:[%s3992_s3 + $0x20] ss:$8 sps:$4 sm:$0xff]   ;;  %v3378_v8 = vld [vmem:[%s3639_s9 + $0x78] sm:$0xff]  }
  0x36   : > { %1991 = vmatprep.subr.bf16.mxu0 %v3330_v14  ;;  %v3331_v14 = vld [vmem:[%s3490_s26 + $0x18c] ss:$16 sps:$4 sm:$0xff]  }
  0x37   : > { %1090 = vmatmul.mubr.bf16.gmra.mrb[8].mxu1 %v3213_v30  ;;  %v3352_v30 = vld [vmem:[%s3992_s3 + $0x24] ss:$8 sps:$4 sm:$0xff]  }
  0x38   : > { %1097 = vmatprep.mubr.bf16.mxu1 %v3216_v31  ;;  %2995 = vmatpush3.bf16.msra.mxu1 %v3239_v32  ;;  %v3353_v31 = vld [vmem:[%s3639_s9 + $0x28] sm:$0xff]  }
  0x39   : > { %2996 = vmatprep.subr.bf16.mxu1 %v3246_v33  ;;  %1751 = vmatmul.mubr.bf16.vlgmr.msra.gmra.mrb[0].mxu0 %v3327_v10  ;;  %v3272_v32 = vld [vmem:[%s3490_s26 + $0x28] ss:$16 sps:$4 sm:$0xff]   ;;  %v3273_v33 = vld [vmem:[%s3490_s26 + $0x4c] ss:$16 sps:$4 sm:$0xff]  }
  0x3a   : > { %1760 = vmatprep.mubr.bf16.mxu0 %v3403_v11  ;;  %1992 = vmatpush1.bf16.msra.mxu0 %v3328_v13  ;;  %v3323_v10 = vld [vmem:[%s3490_s26 + $0x168] ss:$16 sps:$4 sm:$0xff]  }
  0x3b   : > { %1993 = vmatprep.subr.bf16.mxu0 %v3341_v22  ;;  %v3335_v22 = vld [vmem:[%s3490_s26 + $0x1ac] ss:$16 sps:$4 sm:$0xff]  }
  0x3c   : > { %2997 = vmatpush3.bf16.msra.mxu1 %v3247_v34  ;;  %v3354_v34 = vld [vmem:[%s3639_s9 + $0x30] sm:$0xff]  }
  0x3d   : > { %2998 = vmatprep.subr.bf16.mxu1 %v3254_v35  ;;  %v3275_v35 = vld [vmem:[%s3490_s26 + $0x48] ss:$16 sps:$4 sm:$0xff]  }
  0x3e   : > { %1994 = vmatpush1.bf16.msra.mxu0 %v3339_v21 }
  0x3f   : > { %1098 = vmatmul.mubr.bf16.gmra.mrb[12].mxu1 %v3218_v36  ;;  %1995 = vmatprep.subr.bf16.mxu0 %v3352_v30  ;;  %v3276_v36 = vld [vmem:[%s3490_s26 + $0x6c] ss:$16 sps:$4 sm:$0xff]  }
  0x40   : > { %1105 = vmatprep.mubr.bf16.mxu1 %v3219_v37  ;;  %2999 = vmatpush3.bf16.msra.mxu1 %v3255_v38  ;;  %v3355_v37 = vld [vmem:[%s3992_s3 + $0x30] ss:$8 sps:$4 sm:$0xff]   ;;  %v3357_v38 = vld [vmem:[%s3992_s3 + $0x34] ss:$8 sps:$4 sm:$0xff]  }
  0x41   : > { %3000 = vmatprep.subr.bf16.mxu1 %v3262_v39  ;;  %1761 = vmatmul.mubr.bf16.gmra.mrb[4].mxu0 %v3334_v16  ;;  %v3358_v39 = vld [vmem:[%s3639_s9 + $0x38] sm:$0xff]  }
  0x42   : > { %1770 = vmatprep.mubr.bf16.mxu0 %v3403_v11  ;;  %1996 = vmatpush1.bf16.msra.mxu0 %v3350_v29  ;;  %v3342_v30 = vld [vmem:[%s3490_s26 + $0x1cc] ss:$16 sps:$4 sm:$0xff]  }
  0x43   : > { %1997 = vmatprep.subr.bf16.mxu0 %v3357_v38  ;;  %v3346_v38 = vld [vmem:[%s3490_s26 + $0x1ec] ss:$16 sps:$4 sm:$0xff]  }
  0x44   : > { %3001 = vmatpush3.bf16.msra.mxu1 %v3263_v40  ;;  %v3278_v40 = vld [vmem:[%s3490_s26 + $0x68] ss:$16 sps:$4 sm:$0xff]  }
  0x46   : > { %1998 = vmatpush1.bf16.msra.mxu0 %v3355_v37 }
  0x47   : > { %1106 = vmatmul.mubr.bf16.gmra.mrb[16].mxu1 %v3221_v41  ;;  %v3279_v41 = vld [vmem:[%s3490_s26 + $0x8c] ss:$16 sps:$4 sm:$0xff]  }
  0x48   : > { %1113 = vmatprep.mubr.bf16.mxu1 %v3224_v42  ;;  %v3359_v42 = vld [vmem:[%s3639_s9 + $0x40] sm:$0xff]  }
  0x49   : > { %1771 = vmatmul.mubr.bf16.gmra.mrb[8].mxu0 %v3338_v18 }
  0x4a   : > { %1780 = vmatprep.mubr.bf16.mxu0 %v3403_v11 }
  0x4f   : > { %1114 = vmatmul.mubr.bf16.gmra.mrb[20].mxu1 %v3226_v43  ;;  %v3281_v43 = vld [vmem:[%s3490_s26 + $0x88] ss:$16 sps:$4 sm:$0xff]  }
  0x50   : > { %1121 = vmatprep.mubr.bf16.mxu1 %v3227_v44  ;;  %v3282_v44 = vld [vmem:[%s3490_s26 + $0xac] ss:$16 sps:$4 sm:$0xff]  }
  0x51   : > { %1781 = vmatmul.mubr.bf16.gmra.mrb[12].mxu0 %v3345_v23 }
  0x52   : > { %1790 = vmatprep.mubr.bf16.mxu0 %v3403_v11 }
  0x57   : > { %1122 = vmatmul.mubr.bf16.gmra.mrb[24].mxu1 %v3229_v45  ;;  %v3360_v45 = vld [vmem:[%s3992_s3 + $0x40] ss:$8 sps:$4 sm:$0xff]  }
  0x58   : > { %1129 = vmatprep.mubr.bf16.mxu1 %v3232_v46  ;;  %v3362_v46 = vld [vmem:[%s3992_s3 + $0x44] ss:$8 sps:$4 sm:$0xff]  }
  0x59   : > { %1791 = vmatmul.mubr.bf16.gmra.mrb[16].mxu0 %v3349_v26  ;;  %1999 = vmatprep.subr.bf16.mxu0 %v3362_v46 }
  0x5a   : > { %1800 = vmatprep.mubr.bf16.mxu0 %v3403_v11  ;;  %2000 = vmatpush1.bf16.msra.mxu0 %v3360_v45 }
  0x5b   : > { %2001 = vmatprep.subr.bf16.mxu0 %v3367_v54 }
  0x5e   : > { %2002 = vmatpush1.bf16.msra.mxu0 %v3365_v53 }
  0x5f   : > { %1130 = vmatmul.mubr.bf16.gmra.mrb[28].mxu1 %v3234_v47  ;;  %v3363_v47 = vld [vmem:[%s3639_s9 + $0x48] sm:$0xff]   ;;  %2003 = vmatprep.subr.bf16.mxu0 %v3372_v62 }
  0x60   : > { %1137 = vmatprep.mubr.bf16.mxu1 %v3235_v48  ;;  %v3284_v48 = vld [vmem:[%s3490_s26 + $0xa8] ss:$16 sps:$4 sm:$0xff]  }
  0x61   : > { %1801 = vmatmul.mubr.bf16.gmra.mrb[20].mxu0 %v3353_v31 }
  0x62   : > { %1810 = vmatprep.mubr.bf16.mxu0 %v3403_v11  ;;  %2004 = vmatpush1.bf16.msra.mxu0 %v3370_v61 }
  0x67   : > { %1138 = vmatmul.mubr.bf16.gmra.mrb[32].mxu1 %v3237_v51  ;;  %v3287_v51 = vld [vmem:[%s3490_s26 + $0xc8] ss:$16 sps:$4 sm:$0xff]  }
  0x68   : > { %1145 = vmatprep.mubr.bf16.mxu1 %v3240_v52  ;;  %v3288_v52 = vld [vmem:[%s3490_s26 + $0xec] ss:$16 sps:$4 sm:$0xff]  }
  0x69   : > { %1811 = vmatmul.mubr.bf16.gmra.mrb[24].mxu0 %v3354_v34 }
  0x6a   : > { %1820 = vmatprep.mubr.bf16.mxu0 %v3403_v11 }
  0x6f   : > { %1146 = vmatmul.mubr.bf16.gmra.mrb[36].mxu1 %v3242_v57  ;;  %v3294_v57 = vld [vmem:[%s3490_s26 + $0x10c] ss:$16 sps:$4 sm:$0xff]  }
  0x70   : > { %1153 = vmatprep.mubr.bf16.mxu1 %v3243_v58  ;;  %v3369_v58 = vld [vmem:[%s3639_s9 + $0x60] sm:$0xff]  }
  0x71   : > { %1821 = vmatmul.mubr.bf16.gmra.mrb[28].mxu0 %v3358_v39 }
  0x72   : > { %1830 = vmatprep.mubr.bf16.mxu0 %v3403_v11 }
  0x77   : > { %1154 = vmatmul.mubr.bf16.gmra.mrb[40].mxu1 %v3245_v63  ;;  %v3373_v63 = vld [vmem:[%s3639_s9 + $0x68] sm:$0xff]  }
  0x78   : > { %1161 = vmatprep.mubr.bf16.mxu1 %v3248_v0  ;;  %v3305_v0 = vld [vmem:[%s3490_s26 + $0x128] ss:$16 sps:$4 sm:$0xff]  }
  0x79   : > { %1831 = vmatmul.mubr.bf16.gmra.mrb[32].mxu0 %v3359_v42 }
  0x7a   : > { %1840 = vmatprep.mubr.bf16.mxu0 %v3403_v11 }
  0x7f   : > { %1162 = vmatmul.mubr.bf16.gmra.mrb[44].mxu1 %v3250_v4  ;;  %v3321_v4 = vld [vmem:[%s3490_s26 + $0x16c] ss:$16 sps:$4 sm:$0xff]  }
  0x80   : > { %1169 = vmatprep.mubr.bf16.mxu1 %v3251_v6  ;;  %v3377_v6 = vld [vmem:[%s3992_s3 + $0x74] ss:$8 sps:$4 sm:$0xff]  }
  0x81   : > { %1841 = vmatmul.mubr.bf16.gmra.mrb[36].mxu0 %v3363_v47  ;;  %2005 = vmatprep.subr.bf16.mxu0 %v3377_v6 }
  0x82   : > { %1850 = vmatprep.mubr.bf16.mxu0 %v3403_v11  ;;  %2006 = vmatpush1.bf16.msra.mxu0 %v3375_v5 }
  0x87   : > { %1170 = vmatmul.mubr.bf16.gmra.mrb[48].mxu1 %v3253_v9 }
  0x88   : > { %1177 = vmatprep.mubr.bf16.mxu1 %v3256_v12 }
  0x89   : > { %1851 = vmatmul.mubr.bf16.gmra.mrb[40].mxu0 %v3364_v50 }
  0x8a   : > { %1860 = vmatprep.mubr.bf16.mxu0 %v3403_v11 }
  0x8f   : > { %1178 = vmatmul.mubr.bf16.gmra.mrb[52].mxu1 %v3258_v15 }
  0x90   : > { %1185 = vmatprep.mubr.bf16.mxu1 %v3259_v17 }
  0x91   : > { %1861 = vmatmul.mubr.bf16.gmra.mrb[44].mxu0 %v3368_v55 }
  0x92   : > { %1870 = vmatprep.mubr.bf16.mxu0 %v3403_v11 }
  0x97   : > { %1186 = vmatmul.mubr.bf16.gmra.mrb[56].mxu1 %v3261_v19  ;;  %v3333_v19 = vld [vmem:[%s3490_s26 + $0x188] ss:$16 sps:$4 sm:$0xff]  }
  0x98   : > { %1193 = vmatprep.mubr.bf16.mxu1 %v3264_v20 }
  0x99   : > { %1871 = vmatmul.mubr.bf16.gmra.mrb[48].mxu0 %v3369_v58 }
  0x9a   : > { %1880 = vmatprep.mubr.bf16.mxu0 %v3403_v11 }
  0x9f   : > { %1194 = vmatmul.mubr.bf16.gmra.mrb[60].mxu1 %v3266_v24 }
  0xa0   : > { %1234 = vmatprep.mubr.bf16.mxu1 %v3269_v25 }
  0xa1   : > { %1881 = vmatmul.mubr.bf16.gmra.mrb[52].mxu0 %v3373_v63 }
  0xa2   : > { %1890 = vmatprep.mubr.bf16.mxu0 %v3403_v11 }
  0xa7   : > { %1235 = vmatmul.mubr.bf16.vlgmr.msra.gmra.mrb[64].mxu1 %v3267_v27  ;;  %v3337_v27 = vld [vmem:[%s3490_s26 + $0x1a8] ss:$16 sps:$4 sm:$0xff]  }
  0xa8   : > { %1242 = vmatprep.mubr.bf16.mxu1 %v3270_v28 }
  0xa9   : > { %1891 = vmatmul.mubr.bf16.gmra.mrb[56].mxu0 %v3374_v2 }
  0xaa   : > { %1900 = vmatprep.mubr.bf16.mxu0 %v3403_v11 }
  0xaf   : > { %1243 = vmatmul.mubr.bf16.gmra.mrb[68].mxu1 %v3272_v32 }
  0xb0   : > { %1250 = vmatprep.mubr.bf16.mxu1 %v3273_v33 }
  0xb1   : > { %1901 = vmatmul.mubr.bf16.gmra.mrb[60].mxu0 %v3378_v8 }
  0xb2   : > { %2023 = vmatprep.mubr.bf16.mxu0 %v3403_v11 }
  0xb7   : > { %1251 = vmatmul.mubr.bf16.gmra.mrb[72].mxu1 %v3275_v35  ;;  %v3344_v35 = vld [vmem:[%s3490_s26 + $0x1c8] ss:$16 sps:$4 sm:$0xff]  }
  0xb8   : > { %1258 = vmatprep.mubr.bf16.mxu1 %v3276_v36 }
  0xbf   : > { %1259 = vmatmul.mubr.bf16.gmra.mrb[76].mxu1 %v3278_v40 }
  0xc0   : > { %1266 = vmatprep.mubr.bf16.mxu1 %v3279_v41 }
  0xc7   : > { %1267 = vmatmul.mubr.bf16.gmra.mrb[80].mxu1 %v3281_v43  ;;  %v3348_v43 = vld [vmem:[%s3490_s26 + $0x1e8] ss:$16 sps:$4 sm:$0xff]  }
  0xc8   : > { %1274 = vmatprep.mubr.bf16.mxu1 %v3282_v44 }
  0xcf   : > { %1275 = vmatmul.mubr.bf16.gmra.mrb[84].mxu1 %v3284_v48 }
  0xd0   : > { %1282 = vmatprep.mubr.bf16.mxu1 %v3285_v49 }
  0xd7   : > { %1283 = vmatmul.mubr.bf16.gmra.mrb[88].mxu1 %v3287_v51 }
  0xd8   : > { %1290 = vmatprep.mubr.bf16.mxu1 %v3288_v52 }
  0xdf   : > { %1291 = vmatmul.mubr.bf16.gmra.mrb[92].mxu1 %v3290_v56 }
  0xe0   : > { %1298 = vmatprep.mubr.bf16.mxu1 %v3294_v57 }
  0xe7   : > { %1299 = vmatmul.mubr.bf16.gmra.mrb[96].mxu1 %v3296_v59 }
  0xe8   : > { %1306 = vmatprep.mubr.bf16.mxu1 %v3303_v60 }
  0xef   : > { %1307 = vmatmul.mubr.bf16.gmra.mrb[100].mxu1 %v3305_v0 }
  0xf0   : > { %1314 = vmatprep.mubr.bf16.mxu1 %v3312_v1 }
  0xf7   : > { %1315 = vmatmul.mubr.bf16.gmra.mrb[104].mxu1 %v3314_v3 }
  0xf8   : > { %1322 = vmatprep.mubr.bf16.mxu1 %v3321_v4 }
  0xfa   : > { %v2890_v7 = vpop.f32.mrb[0].mxu1 }
  0xfb   : > { %v2891_v9 = vpop.f32.mrb[1].mxu1 }
  0xfc   : > { %v3751_v12 = vadd.f32 %v2891_v9, %v2890_v7  ;;  %v2893_v13 = vpop.f32.mrb[2].mxu1 }
  0xfd   : > { %v2894_v15 = vpop.f32.mrb[3].mxu1 }
  0xfe   : > { %v3755_v16 = vadd.f32 %v2894_v15, %v2893_v13 }
  0xff   : > { %1323 = vmatmul.mubr.bf16.gmra.mrb[108].mxu1 %v3323_v10 }
 0x100   : > { %1330 = vmatprep.mubr.bf16.mxu1 %v3331_v14 }
 0x102   : > { %v2896_v17 = vpop.f32.mrb[4].mxu1 }
 0x103   : > { %v2897_v18 = vpop.f32.mrb[5].mxu1 }
 0x104   : > { %v3758_v20 = vadd.f32 %v2897_v18, %v2896_v17  ;;  %v2899_v21 = vpop.f32.mrb[6].mxu1 }
 0x105   : > { %v2900_v23 = vpop.f32.mrb[7].mxu1 }
 0x106   : > { %v3761_v24 = vadd.f32 %v2900_v23, %v2899_v21 }
 0x107   : > { %1331 = vmatmul.mubr.bf16.gmra.mrb[112].mxu1 %v3333_v19 }
 0x108   : > { %1338 = vmatprep.mubr.bf16.mxu1 %v3335_v22 }
 0x10a   : > { %v2902_v25 = vpop.f32.mrb[8].mxu1 }
 0x10b   : > { %v2903_v26 = vpop.f32.mrb[9].mxu1 }
 0x10c   : > { %v3764_v28 = vadd.f32 %v2903_v26, %v2902_v25  ;;  %v2905_v29 = vpop.f32.mrb[10].mxu1 }
 0x10d   : > { %v2906_v31 = vpop.f32.mrb[11].mxu1 }
 0x10e   : > { %v3767_v32 = vadd.f32 %v2906_v31, %v2905_v29 }
 0x10f   : > { %1339 = vmatmul.mubr.bf16.gmra.mrb[116].mxu1 %v3337_v27 }
 0x110   : > { %1346 = vmatprep.mubr.bf16.mxu1 %v3342_v30 }
 0x112   : > { %v2908_v33 = vpop.f32.mrb[12].mxu1 }
 0x113   : > { %v2909_v34 = vpop.f32.mrb[13].mxu1 }
 0x114   : > { %v3770_v36 = vadd.f32 %v2909_v34, %v2908_v33  ;;  %v2911_v37 = vpop.f32.mrb[14].mxu1 }
 0x115   : > { %v2912_v39 = vpop.f32.mrb[15].mxu1 }
 0x116   : > { %v3773_v40 = vadd.f32 %v2912_v39, %v2911_v37 }
 0x117   : > { %1347 = vmatmul.mubr.bf16.gmra.mrb[120].mxu1 %v3344_v35 }
 0x118   : > { %1354 = vmatprep.mubr.bf16.mxu1 %v3346_v38 }
 0x11a   : > { %v2914_v41 = vpop.f32.mrb[16].mxu1 }
 0x11b   : > { %v2915_v42 = vpop.f32.mrb[17].mxu1 }
 0x11c   : > { %v3776_v44 = vadd.f32 %v2915_v42, %v2914_v41  ;;  %v2917_v45 = vpop.f32.mrb[18].mxu1 }
 0x11d   : > { %v2918_v46 = vpop.f32.mrb[19].mxu1 }
 0x11e   : > { %v3778_v47 = vadd.f32 %v2918_v46, %v2917_v45 }
 0x11f   : > { %1355 = vmatmul.mubr.bf16.gmra.mrb[124].mxu1 %v3348_v43 }
 0x122   : > { %v2920_v48 = vpop.f32.mrb[20].mxu1 }
 0x123   : > { %v2921_v49 = vpop.f32.mrb[21].mxu1 }
 0x124   : > { %v3780_v50 = vadd.f32 %v2921_v49, %v2920_v48  ;;  %v2923_v51 = vpop.f32.mrb[22].mxu1 }
 0x125   : > { %v2924_v52 = vpop.f32.mrb[23].mxu1 }
 0x126   : > { %v3782_v53 = vadd.f32 %v2924_v52, %v2923_v51 }
 0x12a   : > { %v2926_v54 = vpop.f32.mrb[24].mxu1 }
 0x12b   : > { %v2927_v55 = vpop.f32.mrb[25].mxu1 }
 0x12c   : > { %v3784_v56 = vadd.f32 %v2927_v55, %v2926_v54  ;;  %v2929_v57 = vpop.f32.mrb[26].mxu1 }
 0x12d   : > { %v2930_v58 = vpop.f32.mrb[27].mxu1 }
 0x12e   : > { %v3786_v59 = vadd.f32 %v2930_v58, %v2929_v57 }
 0x132   : > { %v2932_v60 = vpop.f32.mrb[28].mxu1 }
 0x133   : > { %v2933_v61 = vpop.f32.mrb[29].mxu1 }
 0x134   : > { %v3788_v62 = vadd.f32 %v2933_v61, %v2932_v60  ;;  %v2935_v63 = vpop.f32.mrb[30].mxu1 }
 0x135   : > { %v2936_v0 = vpop.f32.mrb[31].mxu1 }
 0x136   : > { %v3790_v1 = vadd.f32 %v2936_v0, %v2935_v63 }
 0x13a   : > { %v2938_v2 = vpop.f32.mrb[32].mxu1 }
 0x13b   : > { %v2939_v3 = vpop.f32.mrb[33].mxu1 }
 0x13c   : > { %v3792_v4 = vadd.f32 %v2939_v3, %v2938_v2  ;;  %v2941_v5 = vpop.f32.mrb[34].mxu1 }
 0x13d   : > { %v2942_v6 = vpop.f32.mrb[35].mxu1 }
 0x13e   : > { %v3794_v7 = vadd.f32 %v2942_v6, %v2941_v5 }
 0x142   : > { %v2944_v8 = vpop.f32.mrb[36].mxu1 }
 0x143   : > { %v2945_v9 = vpop.f32.mrb[37].mxu1 }
 0x144   : > { %v3796_v10 = vadd.f32 %v2945_v9, %v2944_v8  ;;  %v2947_v13 = vpop.f32.mrb[38].mxu1 }
 0x145   : > { %v2948_v14 = vpop.f32.mrb[39].mxu1 }
 0x146   : > { %v3798_v15 = vadd.f32 %v2948_v14, %v2947_v13 }
 0x14a   : > { %v2950_v17 = vpop.f32.mrb[40].mxu1 }
 0x14b   : > { %v2951_v18 = vpop.f32.mrb[41].mxu1 }
 0x14c   : > { %v3800_v19 = vadd.f32 %v2951_v18, %v2950_v17  ;;  %v2953_v21 = vpop.f32.mrb[42].mxu1 }
 0x14d   : > { %v2954_v22 = vpop.f32.mrb[43].mxu1 }
 0x14e   : > { %v3802_v23 = vadd.f32 %v2954_v22, %v2953_v21 }
 0x152   : > { %v2956_v25 = vpop.f32.mrb[44].mxu1 }
 0x153   : > { %v2957_v26 = vpop.f32.mrb[45].mxu1 }
 0x154   : > { %v3804_v27 = vadd.f32 %v2957_v26, %v2956_v25  ;;  %v2959_v29 = vpop.f32.mrb[46].mxu1 }
 0x155   : > { %v2960_v30 = vpop.f32.mrb[47].mxu1 }
 0x156   : > { %v3806_v31 = vadd.f32 %v2960_v30, %v2959_v29 }
 0x15a   : > { %v2962_v33 = vpop.f32.mrb[48].mxu1 }
 0x15b   : > { %v2963_v34 = vpop.f32.mrb[49].mxu1 }
 0x15c   : > { %v3808_v35 = vadd.f32 %v2963_v34, %v2962_v33  ;;  %v2965_v37 = vpop.f32.mrb[50].mxu1 }
 0x15d   : > { %v2966_v38 = vpop.f32.mrb[51].mxu1 }
 0x15e   : > { %v3810_v39 = vadd.f32 %v2966_v38, %v2965_v37 }
 0x162   : > { %v2968_v41 = vpop.f32.mrb[52].mxu1 }
 0x163   : > { %v2969_v42 = vpop.f32.mrb[53].mxu1 }
 0x164   : > { %v3812_v43 = vadd.f32 %v2969_v42, %v2968_v41  ;;  %v2971_v45 = vpop.f32.mrb[54].mxu1 }
 0x165   : > { %v2972_v46 = vpop.f32.mrb[55].mxu1 }
 0x166   : > { %v3814_v48 = vadd.f32 %v2972_v46, %v2971_v45 }
 0x16a   : > { %v2974_v49 = vpop.f32.mrb[56].mxu1 }
 0x16b   : > { %v2975_v51 = vpop.f32.mrb[57].mxu1 }
 0x16c   : > { %v3816_v52 = vadd.f32 %v2975_v51, %v2974_v49  ;;  %v2977_v54 = vpop.f32.mrb[58].mxu1 }
 0x16d   : > { %v2978_v55 = vpop.f32.mrb[59].mxu1 }
 0x16e   : > { %v3818_v57 = vadd.f32 %v2978_v55, %v2977_v54 }
 0x172   : > { %v2980_v58 = vpop.f32.mrb[60].mxu1 }
 0x173   : > { %v2981_v60 = vpop.f32.mrb[61].mxu1 }
 0x174   : > { %v3820_v61 = vadd.f32 %v2981_v60, %v2980_v58  ;;  %v2983_v63 = vpop.f32.mrb[62].mxu1 }
 0x175   : > { %v2984_v0 = vpop.f32.mrb[63].mxu1 }
 0x176   : > { %v3822_v2 = vadd.f32 %v2984_v0, %v2983_v63 }
 0x17a   : > { %v3002_v3 = vpop.f32.mrb[64].mxu1 }
 0x17b   : > { %v3003_v5 = vpop.f32.mrb[65].mxu1 }
 0x17c   : > { %v3004_v6 = vadd.f32 %v3003_v5, %v3002_v3  ;;  %v3005_v8 = vpop.f32.mrb[66].mxu1 }
 0x17d   : > { %v3006_v9 = vpop.f32.mrb[67].mxu1 }
 0x17e   : > { %v1237_v13 = vadd.f32 %v3004_v6, %v3751_v12  ;;  %v3007_v14 = vadd.f32 %v3006_v9, %v3005_v8 }
 0x180   : > { %v1240_v17 = vadd.f32 %v3007_v14, %v3755_v16 }
 0x182   : > { %v1462_v18 = vpack.c.bf16 %v1240_v17, %v1237_v13  ;;  %v3008_v21 = vpop.f32.mrb[68].mxu1 }
 0x183   : > { %v3009_v22 = vpop.f32.mrb[69].mxu1 }
 0x184   : > { %v3010_v25 = vadd.f32 %v3009_v22, %v3008_v21  ;;  %v3011_v26 = vpop.f32.mrb[70].mxu1  ;;  %2024 = vmatmul.mubr.bf16.vlgmr.msra.gmra.mrb[0].mxu0 %v1462_v18 }
 0x185   : > { %v3012_v29 = vpop.f32.mrb[71].mxu1  ;;  %2033 = vmatprep.mubr.bf16.mxu0 %v3403_v11 }
 0x186   : > { %v1245_v30 = vadd.f32 %v3010_v25, %v3758_v20  ;;  %v3013_v33 = vadd.f32 %v3012_v29, %v3011_v26 }
 0x188   : > { %v1248_v34 = vadd.f32 %v3013_v33, %v3761_v24 }
 0x18a   : > { %v3014_v37 = vpop.f32.mrb[72].mxu1  ;;  %v1463_v38 = vpack.c.bf16 %v1248_v34, %v1245_v30 }
 0x18b   : > { %v3015_v12 = vpop.f32.mrb[73].mxu1 }
 0x18c   : > { %v3016_v41 = vadd.f32 %v3015_v12, %v3014_v37  ;;  %v3017_v42 = vpop.f32.mrb[74].mxu1  ;;  %2034 = vmatmul.mubr.bf16.gmra.mrb[4].mxu0 %v1463_v38 }
 0x18d   : > { %v3018_v16 = vpop.f32.mrb[75].mxu1  ;;  %2043 = vmatprep.mubr.bf16.mxu0 %v3403_v11 }
 0x18e   : > { %v1253_v45 = vadd.f32 %v3016_v41, %v3764_v28  ;;  %v3019_v46 = vadd.f32 %v3018_v16, %v3017_v42 }
 0x190   : > { %v1256_v49 = vadd.f32 %v3019_v46, %v3767_v32 }
 0x192   : > { %v3020_v51 = vpop.f32.mrb[76].mxu1  ;;  %v1464_v54 = vpack.c.bf16 %v1256_v49, %v1253_v45 }
 0x193   : > { %v3021_v20 = vpop.f32.mrb[77].mxu1 }
 0x194   : > { %v3022_v55 = vadd.f32 %v3021_v20, %v3020_v51  ;;  %v3023_v58 = vpop.f32.mrb[78].mxu1  ;;  %2044 = vmatmul.mubr.bf16.gmra.mrb[8].mxu0 %v1464_v54 }
 0x195   : > { %v3024_v24 = vpop.f32.mrb[79].mxu1  ;;  %2053 = vmatprep.mubr.bf16.mxu0 %v3403_v11 }
 0x196   : > { %v1261_v60 = vadd.f32 %v3022_v55, %v3770_v36  ;;  %v3025_v63 = vadd.f32 %v3024_v24, %v3023_v58 }
 0x198   : > { %v1264_v0 = vadd.f32 %v3025_v63, %v3773_v40 }
 0x19a   : > { %v3026_v3 = vpop.f32.mrb[80].mxu1  ;;  %v1465_v5 = vpack.c.bf16 %v1264_v0, %v1261_v60 }
 0x19b   : > { %v3027_v28 = vpop.f32.mrb[81].mxu1 }
 0x19c   : > { %v3028_v6 = vadd.f32 %v3027_v28, %v3026_v3  ;;  %v3029_v8 = vpop.f32.mrb[82].mxu1  ;;  %2054 = vmatmul.mubr.bf16.gmra.mrb[12].mxu0 %v1465_v5 }
 0x19d   : > { %v3030_v32 = vpop.f32.mrb[83].mxu1  ;;  %2063 = vmatprep.mubr.bf16.mxu0 %v3403_v11 }
 0x19e   : > { %v1269_v9 = vadd.f32 %v3028_v6, %v3776_v44  ;;  %v3031_v13 = vadd.f32 %v3030_v32, %v3029_v8 }
 0x1a0   : > { %v1272_v14 = vadd.f32 %v3031_v13, %v3778_v47 }
 0x1a2   : > { %v3032_v17 = vpop.f32.mrb[84].mxu1  ;;  %v1466_v18 = vpack.c.bf16 %v1272_v14, %v1269_v9 }
 0x1a3   : > { %v3033_v36 = vpop.f32.mrb[85].mxu1 }
 0x1a4   : > { %v3034_v21 = vadd.f32 %v3033_v36, %v3032_v17  ;;  %v3035_v22 = vpop.f32.mrb[86].mxu1  ;;  %2064 = vmatmul.mubr.bf16.gmra.mrb[16].mxu0 %v1466_v18 }
 0x1a5   : > { %v3036_v40 = vpop.f32.mrb[87].mxu1  ;;  %2073 = vmatprep.mubr.bf16.mxu0 %v3403_v11 }
 0x1a6   : > { %v1277_v25 = vadd.f32 %v3034_v21, %v3780_v50  ;;  %v3037_v26 = vadd.f32 %v3036_v40, %v3035_v22 }
 0x1a8   : > { %v1280_v29 = vadd.f32 %v3037_v26, %v3782_v53 }
 0x1aa   : > { %v3038_v30 = vpop.f32.mrb[88].mxu1  ;;  %v1467_v33 = vpack.c.bf16 %v1280_v29, %v1277_v25 }
 0x1ab   : > { %v3039_v44 = vpop.f32.mrb[89].mxu1 }
 0x1ac   : > { %v3040_v34 = vadd.f32 %v3039_v44, %v3038_v30  ;;  %v3041_v37 = vpop.f32.mrb[90].mxu1  ;;  %2074 = vmatmul.mubr.bf16.gmra.mrb[20].mxu0 %v1467_v33 }
 0x1ad   : > { %v3042_v47 = vpop.f32.mrb[91].mxu1  ;;  %2083 = vmatprep.mubr.bf16.mxu0 %v3403_v11 }
 0x1ae   : > { %v1285_v38 = vadd.f32 %v3040_v34, %v3784_v56  ;;  %v3043_v12 = vadd.f32 %v3042_v47, %v3041_v37 }
 0x1b0   : > { %v1288_v41 = vadd.f32 %v3043_v12, %v3786_v59 }
 0x1b2   : > { %v3044_v42 = vpop.f32.mrb[92].mxu1  ;;  %v1468_v16 = vpack.c.bf16 %v1288_v41, %v1285_v38 }
 0x1b3   : > { %v3045_v50 = vpop.f32.mrb[93].mxu1 }
 0x1b4   : > { %v3046_v45 = vadd.f32 %v3045_v50, %v3044_v42  ;;  %v3047_v46 = vpop.f32.mrb[94].mxu1  ;;  %2084 = vmatmul.mubr.bf16.gmra.mrb[24].mxu0 %v1468_v16 }
 0x1b5   : > { %v3048_v53 = vpop.f32.mrb[95].mxu1  ;;  %2093 = vmatprep.mubr.bf16.mxu0 %v3403_v11 }
 0x1b6   : > { %v1293_v49 = vadd.f32 %v3046_v45, %v3788_v62  ;;  %v3049_v51 = vadd.f32 %v3048_v53, %v3047_v46 }
 0x1b8   : > { %v1296_v54 = vadd.f32 %v3049_v51, %v3790_v1 }
 0x1ba   : > { %v3050_v20 = vpop.f32.mrb[96].mxu1  ;;  %v1469_v55 = vpack.c.bf16 %v1296_v54, %v1293_v49 }
 0x1bb   : > { %v3051_v56 = vpop.f32.mrb[97].mxu1 }
 0x1bc   : > { %v3052_v58 = vadd.f32 %v3051_v56, %v3050_v20  ;;  %v3053_v24 = vpop.f32.mrb[98].mxu1  ;;  %2094 = vmatmul.mubr.bf16.gmra.mrb[28].mxu0 %v1469_v55 }
 0x1bd   : > { %v3054_v59 = vpop.f32.mrb[99].mxu1  ;;  %2103 = vmatprep.mubr.bf16.mxu0 %v3403_v11 }
 0x1be   : > { %v1301_v60 = vadd.f32 %v3052_v58, %v3792_v4  ;;  %v3055_v63 = vadd.f32 %v3054_v59, %v3053_v24 }
 0x1c0   : > { %v1304_v0 = vadd.f32 %v3055_v63, %v3794_v7 }
 0x1c2   : > { %v3056_v3 = vpop.f32.mrb[100].mxu1  ;;  %v1470_v5 = vpack.c.bf16 %v1304_v0, %v1301_v60 }
 0x1c3   : > { %v3057_v62 = vpop.f32.mrb[101].mxu1 }
 0x1c4   : > { %v3058_v28 = vadd.f32 %v3057_v62, %v3056_v3  ;;  %v3059_v6 = vpop.f32.mrb[102].mxu1  ;;  %2104 = vmatmul.mubr.bf16.gmra.mrb[32].mxu0 %v1470_v5 }
 0x1c5   : > { %v3060_v1 = vpop.f32.mrb[103].mxu1  ;;  %2113 = vmatprep.mubr.bf16.mxu0 %v3403_v11 }
 0x1c6   : > { %v1309_v8 = vadd.f32 %v3058_v28, %v3796_v10  ;;  %v3061_v32 = vadd.f32 %v3060_v1, %v3059_v6 }
 0x1c8   : > { %v1312_v9 = vadd.f32 %v3061_v32, %v3798_v15 }
 0x1ca   : > { %v3062_v13 = vpop.f32.mrb[104].mxu1  ;;  %v1471_v14 = vpack.c.bf16 %v1312_v9, %v1309_v8  ;;  %v2184_v8 = vld [vmem:[%s3994_s5] sm:$0x3] }
 0x1cb   : > { %v3063_v4 = vpop.f32.mrb[105].mxu1 }
 0x1cc   : > { %v3064_v17 = vadd.f32 %v3063_v4, %v3062_v13  ;;  %v3065_v18 = vpop.f32.mrb[106].mxu1  ;;  %2114 = vmatmul.mubr.bf16.gmra.mrb[36].mxu0 %v1471_v14 }
 0x1cd   : > { %v3066_v7 = vpop.f32.mrb[107].mxu1  ;;  %2123 = vmatprep.mubr.bf16.mxu0 %v3403_v11 }
 0x1ce   : > { %v1317_v36 = vadd.f32 %v3064_v17, %v3800_v19  ;;  %v3067_v21 = vadd.f32 %v3066_v7, %v3065_v18 }
 0x1d0   : > { %v1320_v22 = vadd.f32 %v3067_v21, %v3802_v23 }
 0x1d2   : > { %v3068_v40 = vpop.f32.mrb[108].mxu1  ;;  %v1472_v25 = vpack.c.bf16 %v1320_v22, %v1317_v36 }
 0x1d3   : > { %v3069_v10 = vpop.f32.mrb[109].mxu1 }
 0x1d4   : > { %v3070_v26 = vadd.f32 %v3069_v10, %v3068_v40  ;;  %v3071_v29 = vpop.f32.mrb[110].mxu1  ;;  %2124 = vmatmul.mubr.bf16.gmra.mrb[40].mxu0 %v1472_v25 }
 0x1d5   : > { %v3072_v15 = vpop.f32.mrb[111].mxu1  ;;  %2133 = vmatprep.mubr.bf16.mxu0 %v3403_v11 }
 0x1d6   : > { %v1325_v30 = vadd.f32 %v3070_v26, %v3804_v27  ;;  %v3073_v33 = vadd.f32 %v3072_v15, %v3071_v29 }
 0x1d8   : > { %v1328_v44 = vadd.f32 %v3073_v33, %v3806_v31 }
 0x1da   : > { %v3074_v34 = vpop.f32.mrb[112].mxu1  ;;  %v1473_v37 = vpack.c.bf16 %v1328_v44, %v1325_v30 }
 0x1db   : > { %v3075_v19 = vpop.f32.mrb[113].mxu1 }
 0x1dc   : > { %v3076_v47 = vadd.f32 %v3075_v19, %v3074_v34  ;;  %v3077_v38 = vpop.f32.mrb[114].mxu1  ;;  %2134 = vmatmul.mubr.bf16.gmra.mrb[44].mxu0 %v1473_v37 }
 0x1dd   : > { %v3078_v23 = vpop.f32.mrb[115].mxu1  ;;  %2143 = vmatprep.mubr.bf16.mxu0 %v3403_v11 }
 0x1de   : > { %v1333_v12 = vadd.f32 %v3076_v47, %v3808_v35  ;;  %v3079_v41 = vadd.f32 %v3078_v23, %v3077_v38 }
 0x1e0   : > { %v1336_v42 = vadd.f32 %v3079_v41, %v3810_v39 }
 0x1e2   : > { %v3080_v16 = vpop.f32.mrb[116].mxu1  ;;  %v1474_v50 = vpack.c.bf16 %v1336_v42, %v1333_v12 }
 0x1e3   : > { %v3081_v27 = vpop.f32.mrb[117].mxu1 }
 0x1e4   : > { %v3082_v45 = vadd.f32 %v3081_v27, %v3080_v16  ;;  %v3083_v46 = vpop.f32.mrb[118].mxu1  ;;  %2144 = vmatmul.mubr.bf16.gmra.mrb[48].mxu0 %v1474_v50 }
 0x1e5   : > { %v3084_v31 = vpop.f32.mrb[119].mxu1  ;;  %2153 = vmatprep.mubr.bf16.mxu0 %v3403_v11 }
 0x1e6   : > { %v1341_v53 = vadd.f32 %v3082_v45, %v3812_v43  ;;  %v3085_v49 = vadd.f32 %v3084_v31, %v3083_v46 }
 0x1e8   : > { %v1344_v51 = vadd.f32 %v3085_v49, %v3814_v48 }
 0x1ea   : > { %v3086_v54 = vpop.f32.mrb[120].mxu1  ;;  %v1475_v20 = vpack.c.bf16 %v1344_v51, %v1341_v53 }
 0x1eb   : > { %v3087_v35 = vpop.f32.mrb[121].mxu1 }
 0x1ec   : > { %v3088_v55 = vadd.f32 %v3087_v35, %v3086_v54  ;;  %v3089_v56 = vpop.f32.mrb[122].mxu1  ;;  %2154 = vmatmul.mubr.bf16.gmra.mrb[52].mxu0 %v1475_v20 }
 0x1ed   : > { %v3090_v39 = vpop.f32.mrb[123].mxu1  ;;  %2163 = vmatprep.mubr.bf16.mxu0 %v3403_v11 }
 0x1ee   : > { %v1349_v58 = vadd.f32 %v3088_v55, %v3816_v52  ;;  %v3091_v24 = vadd.f32 %v3090_v39, %v3089_v56  ;;  %v2186_v52 = vlaneseq }
 0x1f0   : > { %v1352_v59 = vadd.f32 %v3091_v24, %v3818_v57  ;;  %v2187_v1 = vshrl.u32 %v2186_v52, 7 }
 0x1f2   : > { %v3092_v60 = vpop.f32.mrb[124].mxu1  ;;  %v1476_v63 = vpack.c.bf16 %v1352_v59, %v1349_v58  ;;  %v2188_v57 = vsub.s32 0, %v2187_v1  ;;  %v2192_v32 = vsub.s32 1, %v2187_v1 }
 0x1f3   : > { %v3093_v43 = vpop.f32.mrb[125].mxu1 }
 0x1f4   : > { %v3094_v0 = vadd.f32 %v3093_v43, %v3092_v60  ;;  %v3095_v3 = vpop.f32.mrb[126].mxu1  ;;  %2164 = vmatmul.mubr.bf16.gmra.mrb[56].mxu0 %v1476_v63  ;;  %v3874_v9 = vrot.slane %v2184_v8, %v2188_v57  ;;  %v3876_v13 = vrot.slane %v2184_v8, %v2192_v32 }
 0x1f5   : > { %v3096_v48 = vpop.f32.mrb[127].mxu1  ;;  %2173 = vmatprep.mubr.bf16.mxu0 %v3403_v11 }
 0x1f6   : > { %v1357_v5 = vadd.f32 %v3094_v0, %v3820_v61  ;;  %v3097_v62 = vadd.f32 %v3096_v48, %v3095_v3 }
 0x1f8   : > { %v1360_v28 = vadd.f32 %v3097_v62, %v3822_v2 }
 0x1fa   : > { %v1477_v6 = vpack.c.bf16 %v1360_v28, %v1357_v5 }
 0x1fc   : > { %2174 = vmatmul.mubr.bf16.gmra.mrb[60].mxu0 %v1477_v6 }
 0x257   : > { %v2025_v11 = vpop.f32.mrb[0].mxu0 }
 0x258   : > { %v2196_v61 = vadd.f32 %v3874_v9, %v2025_v11  ;;  %v2027_v14 = vpop.f32.mrb[1].mxu0 }
 0x259   : > { %v2197_v2 = vadd.f32 %v3876_v13, %v2027_v14  ;;  %v2029_v4 = vpop.f32.mrb[2].mxu0 }
 0x25a   : > { %v2260_v17 = vmax.f32 %v2196_v61, 0.0  ;;  %v2198_v18 = vadd.f32 %v3874_v9, %v2029_v4  ;;  %v2031_v7 = vpop.f32.mrb[3].mxu0 }
 0x25b   : > { %v2261_v36 = vmax.f32 %v2197_v2, 0.0  ;;  %v2199_v21 = vadd.f32 %v3876_v13, %v2031_v7 }
 0x25c   : > { %v2262_v22 = vmax.f32 %v2198_v18, 0.0 }
 0x25d   : > { %v2842_v40 = vpack.c.bf16 %v2261_v36, %v2260_v17  ;;  %v2263_v25 = vmax.f32 %v2199_v21, 0.0 }
 0x25f   : > { %2516 = vst [vmem:[%s3886_s8] sm:$0xff] %v2842_v40  ;;  %v2843_v10 = vpack.c.bf16 %v2263_v25, %v2262_v22  ;;  %v2035_v26 = vpop.f32.mrb[4].mxu0 }
 0x260   : > { %v2200_v29 = vadd.f32 %v3874_v9, %v2035_v26  ;;  %v2037_v15 = vpop.f32.mrb[5].mxu0 }
 0x261   : > { %2517 = vst [vmem:[%s3886_s8 + $0x8] sm:$0xff] %v2843_v10  ;;  %v2201_v30 = vadd.f32 %v3876_v13, %v2037_v15  ;;  %v2039_v33 = vpop.f32.mrb[6].mxu0 }
 0x262   : > { %v2264_v44 = vmax.f32 %v2200_v29, 0.0  ;;  %v2202_v34 = vadd.f32 %v3874_v9, %v2039_v33  ;;  %v2041_v37 = vpop.f32.mrb[7].mxu0 }
 0x263   : > { %v2265_v19 = vmax.f32 %v2201_v30, 0.0  ;;  %v2203_v47 = vadd.f32 %v3876_v13, %v2041_v37 }
 0x264   : > { %v2266_v38 = vmax.f32 %v2202_v34, 0.0 }
 0x265   : > { %v2844_v23 = vpack.c.bf16 %v2265_v19, %v2264_v44  ;;  %v2267_v12 = vmax.f32 %v2203_v47, 0.0 }
 0x267   : > { %2518 = vst [vmem:[%s3886_s8 + $0x10] sm:$0xff] %v2844_v23  ;;  %v2845_v41 = vpack.c.bf16 %v2267_v12, %v2266_v38  ;;  %v2045_v42 = vpop.f32.mrb[8].mxu0 }
 0x268   : > { %v2204_v16 = vadd.f32 %v3874_v9, %v2045_v42  ;;  %v2047_v50 = vpop.f32.mrb[9].mxu0 }
 0x269   : > { %2519 = vst [vmem:[%s3886_s8 + $0x18] sm:$0xff] %v2845_v41  ;;  %v2205_v27 = vadd.f32 %v3876_v13, %v2047_v50  ;;  %v2049_v45 = vpop.f32.mrb[10].mxu0 }
 0x26a   : > { %v2268_v46 = vmax.f32 %v2204_v16, 0.0  ;;  %v2206_v31 = vadd.f32 %v3874_v9, %v2049_v45  ;;  %v2051_v53 = vpop.f32.mrb[11].mxu0 }
 0x26b   : > { %v2269_v49 = vmax.f32 %v2205_v27, 0.0  ;;  %v2207_v51 = vadd.f32 %v3876_v13, %v2051_v53 }
 0x26c   : > { %v2270_v54 = vmax.f32 %v2206_v31, 0.0 }
 0x26d   : > { %v2846_v20 = vpack.c.bf16 %v2269_v49, %v2268_v46  ;;  %v2271_v35 = vmax.f32 %v2207_v51, 0.0 }
 0x26f   : > { %2520 = vst [vmem:[%s3886_s8 + $0x20] sm:$0xff] %v2846_v20  ;;  %v2847_v55 = vpack.c.bf16 %v2271_v35, %v2270_v54  ;;  %v2055_v56 = vpop.f32.mrb[12].mxu0 }
 0x270   : > { %v2208_v39 = vadd.f32 %v3874_v9, %v2055_v56  ;;  %v2057_v58 = vpop.f32.mrb[13].mxu0 }
 0x271   : > { %2521 = vst [vmem:[%s3886_s8 + $0x28] sm:$0xff] %v2847_v55  ;;  %v2209_v24 = vadd.f32 %v3876_v13, %v2057_v58  ;;  %v2059_v59 = vpop.f32.mrb[14].mxu0 }
 0x272   : > { %v2272_v60 = vmax.f32 %v2208_v39, 0.0  ;;  %v2210_v63 = vadd.f32 %v3874_v9, %v2059_v59  ;;  %v2061_v43 = vpop.f32.mrb[15].mxu0 }
 0x273   : > { %v2273_v0 = vmax.f32 %v2209_v24, 0.0  ;;  %v2211_v3 = vadd.f32 %v3876_v13, %v2061_v43 }
 0x274   : > { %v2274_v48 = vmax.f32 %v2210_v63, 0.0 }
 0x275   : > { %v2848_v5 = vpack.c.bf16 %v2273_v0, %v2272_v60  ;;  %v2275_v62 = vmax.f32 %v2211_v3, 0.0 }
 0x277   : > { %2522 = vst [vmem:[%s3886_s8 + $0x30] sm:$0xff] %v2848_v5  ;;  %v2849_v28 = vpack.c.bf16 %v2275_v62, %v2274_v48  ;;  %v2065_v6 = vpop.f32.mrb[16].mxu0 }
 0x278   : > { %v2212_v52 = vadd.f32 %v3874_v9, %v2065_v6  ;;  %v2067_v1 = vpop.f32.mrb[17].mxu0 }
 0x279   : > { %2523 = vst [vmem:[%s3886_s8 + $0x38] sm:$0xff] %v2849_v28  ;;  %v2213_v57 = vadd.f32 %v3876_v13, %v2067_v1  ;;  %v2069_v8 = vpop.f32.mrb[18].mxu0 }
 0x27a   : > { %v2276_v32 = vmax.f32 %v2212_v52, 0.0  ;;  %v2214_v11 = vadd.f32 %v3874_v9, %v2069_v8  ;;  %v2071_v61 = vpop.f32.mrb[19].mxu0 }
 0x27b   : > { %v2277_v14 = vmax.f32 %v2213_v57, 0.0  ;;  %v2215_v2 = vadd.f32 %v3876_v13, %v2071_v61 }
 0x27c   : > { %v2278_v4 = vmax.f32 %v2214_v11, 0.0 }
 0x27d   : > { %v2850_v17 = vpack.c.bf16 %v2277_v14, %v2276_v32  ;;  %v2279_v18 = vmax.f32 %v2215_v2, 0.0 }
 0x27f   : > { %2524 = vst [vmem:[%s3886_s8 + $0x40] sm:$0xff] %v2850_v17  ;;  %v2851_v7 = vpack.c.bf16 %v2279_v18, %v2278_v4  ;;  %v2075_v36 = vpop.f32.mrb[20].mxu0 }
 0x280   : > { %v2216_v21 = vadd.f32 %v3874_v9, %v2075_v36  ;;  %v2077_v22 = vpop.f32.mrb[21].mxu0 }
 0x281   : > { %2525 = vst [vmem:[%s3886_s8 + $0x48] sm:$0xff] %v2851_v7  ;;  %v2217_v40 = vadd.f32 %v3876_v13, %v2077_v22  ;;  %v2079_v25 = vpop.f32.mrb[22].mxu0 }
 0x282   : > { %v2280_v10 = vmax.f32 %v2216_v21, 0.0  ;;  %v2218_v26 = vadd.f32 %v3874_v9, %v2079_v25  ;;  %v2081_v29 = vpop.f32.mrb[23].mxu0 }
 0x283   : > { %v2281_v15 = vmax.f32 %v2217_v40, 0.0  ;;  %v2219_v30 = vadd.f32 %v3876_v13, %v2081_v29 }
 0x284   : > { %v2282_v33 = vmax.f32 %v2218_v26, 0.0 }
 0x285   : > { %v2852_v44 = vpack.c.bf16 %v2281_v15, %v2280_v10  ;;  %v2283_v34 = vmax.f32 %v2219_v30, 0.0 }
 0x287   : > { %2526 = vst [vmem:[%s3886_s8 + $0x50] sm:$0xff] %v2852_v44  ;;  %v2853_v37 = vpack.c.bf16 %v2283_v34, %v2282_v33  ;;  %v2085_v19 = vpop.f32.mrb[24].mxu0 }
 0x288   : > { %v2220_v47 = vadd.f32 %v3874_v9, %v2085_v19  ;;  %v2087_v38 = vpop.f32.mrb[25].mxu0 }
 0x289   : > { %2527 = vst [vmem:[%s3886_s8 + $0x58] sm:$0xff] %v2853_v37  ;;  %v2221_v23 = vadd.f32 %v3876_v13, %v2087_v38  ;;  %v2089_v12 = vpop.f32.mrb[26].mxu0 }
 0x28a   : > { %v2284_v41 = vmax.f32 %v2220_v47, 0.0  ;;  %v2222_v42 = vadd.f32 %v3874_v9, %v2089_v12  ;;  %v2091_v16 = vpop.f32.mrb[27].mxu0 }
 0x28b   : > { %v2285_v50 = vmax.f32 %v2221_v23, 0.0  ;;  %v2223_v27 = vadd.f32 %v3876_v13, %v2091_v16 }
 0x28c   : > { %v2286_v45 = vmax.f32 %v2222_v42, 0.0 }
 0x28d   : > { %v2854_v46 = vpack.c.bf16 %v2285_v50, %v2284_v41  ;;  %v2287_v31 = vmax.f32 %v2223_v27, 0.0 }
 0x28f   : > { %2528 = vst [vmem:[%s3886_s8 + $0x60] sm:$0xff] %v2854_v46  ;;  %v2855_v53 = vpack.c.bf16 %v2287_v31, %v2286_v45  ;;  %v2095_v49 = vpop.f32.mrb[28].mxu0 }
 0x290   : > { %v2224_v51 = vadd.f32 %v3874_v9, %v2095_v49  ;;  %v2097_v54 = vpop.f32.mrb[29].mxu0 }
 0x291   : > { %2529 = vst [vmem:[%s3886_s8 + $0x68] sm:$0xff] %v2855_v53  ;;  %v2225_v20 = vadd.f32 %v3876_v13, %v2097_v54  ;;  %v2099_v35 = vpop.f32.mrb[30].mxu0 }
 0x292   : > { %v2288_v55 = vmax.f32 %v2224_v51, 0.0  ;;  %v2226_v56 = vadd.f32 %v3874_v9, %v2099_v35  ;;  %v2101_v39 = vpop.f32.mrb[31].mxu0 }
 0x293   : > { %v2289_v58 = vmax.f32 %v2225_v20, 0.0  ;;  %v2227_v24 = vadd.f32 %v3876_v13, %v2101_v39 }
 0x294   : > { %v2290_v59 = vmax.f32 %v2226_v56, 0.0 }
 0x295   : > { %v2856_v60 = vpack.c.bf16 %v2289_v58, %v2288_v55  ;;  %v2291_v63 = vmax.f32 %v2227_v24, 0.0 }
 0x297   : > { %2530 = vst [vmem:[%s3886_s8 + $0x70] sm:$0xff] %v2856_v60  ;;  %v2857_v43 = vpack.c.bf16 %v2291_v63, %v2290_v59  ;;  %v2105_v0 = vpop.f32.mrb[32].mxu0 }
 0x298   : > { %v2228_v3 = vadd.f32 %v3874_v9, %v2105_v0  ;;  %v2107_v48 = vpop.f32.mrb[33].mxu0 }
 0x299   : > { %2531 = vst [vmem:[%s3886_s8 + $0x78] sm:$0xff] %v2857_v43  ;;  %v2229_v5 = vadd.f32 %v3876_v13, %v2107_v48  ;;  %v2109_v62 = vpop.f32.mrb[34].mxu0 }
 0x29a   : > { %v2292_v28 = vmax.f32 %v2228_v3, 0.0  ;;  %v2230_v6 = vadd.f32 %v3874_v9, %v2109_v62  ;;  %v2111_v52 = vpop.f32.mrb[35].mxu0 }
 0x29b   : > { %v2293_v1 = vmax.f32 %v2229_v5, 0.0  ;;  %v2231_v57 = vadd.f32 %v3876_v13, %v2111_v52 }
 0x29c   : > { %v2294_v8 = vmax.f32 %v2230_v6, 0.0 }
 0x29d   : > { %v2858_v32 = vpack.c.bf16 %v2293_v1, %v2292_v28  ;;  %v2295_v11 = vmax.f32 %v2231_v57, 0.0 }
 0x29f   : > { %2532 = vst [vmem:[%s3886_s8 + $0x80] sm:$0xff] %v2858_v32  ;;  %v2859_v61 = vpack.c.bf16 %v2295_v11, %v2294_v8  ;;  %v2115_v14 = vpop.f32.mrb[36].mxu0 }
 0x2a0   : > { %v2232_v2 = vadd.f32 %v3874_v9, %v2115_v14  ;;  %v2117_v4 = vpop.f32.mrb[37].mxu0 }
 0x2a1   : > { %2533 = vst [vmem:[%s3886_s8 + $0x88] sm:$0xff] %v2859_v61  ;;  %v2233_v17 = vadd.f32 %v3876_v13, %v2117_v4  ;;  %v2119_v18 = vpop.f32.mrb[38].mxu0 }
 0x2a2   : > { %v2296_v7 = vmax.f32 %v2232_v2, 0.0  ;;  %v2234_v36 = vadd.f32 %v3874_v9, %v2119_v18  ;;  %v2121_v21 = vpop.f32.mrb[39].mxu0 }
 0x2a3   : > { %v2297_v22 = vmax.f32 %v2233_v17, 0.0  ;;  %v2235_v40 = vadd.f32 %v3876_v13, %v2121_v21 }
 0x2a4   : > { %v2298_v25 = vmax.f32 %v2234_v36, 0.0 }
 0x2a5   : > { %v2860_v10 = vpack.c.bf16 %v2297_v22, %v2296_v7  ;;  %v2299_v26 = vmax.f32 %v2235_v40, 0.0 }
 0x2a7   : > { %2534 = vst [vmem:[%s3886_s8 + $0x90] sm:$0xff] %v2860_v10  ;;  %v2861_v29 = vpack.c.bf16 %v2299_v26, %v2298_v25  ;;  %v2125_v15 = vpop.f32.mrb[40].mxu0 }
 0x2a8   : > { %v2236_v30 = vadd.f32 %v3874_v9, %v2125_v15  ;;  %v2127_v33 = vpop.f32.mrb[41].mxu0 }
 0x2a9   : > { %2535 = vst [vmem:[%s3886_s8 + $0x98] sm:$0xff] %v2861_v29  ;;  %v2237_v44 = vadd.f32 %v3876_v13, %v2127_v33  ;;  %v2129_v34 = vpop.f32.mrb[42].mxu0 }
 0x2aa   : > { %v2300_v37 = vmax.f32 %v2236_v30, 0.0  ;;  %v2238_v19 = vadd.f32 %v3874_v9, %v2129_v34  ;;  %v2131_v47 = vpop.f32.mrb[43].mxu0 }
 0x2ab   : > { %v2301_v38 = vmax.f32 %v2237_v44, 0.0  ;;  %v2239_v23 = vadd.f32 %v3876_v13, %v2131_v47 }
 0x2ac   : > { %v2302_v12 = vmax.f32 %v2238_v19, 0.0 }
 0x2ad   : > { %v2862_v41 = vpack.c.bf16 %v2301_v38, %v2300_v37  ;;  %v2303_v42 = vmax.f32 %v2239_v23, 0.0 }
 0x2af   : > { %2536 = vst [vmem:[%s3886_s8 + $0xa0] sm:$0xff] %v2862_v41  ;;  %v2863_v16 = vpack.c.bf16 %v2303_v42, %v2302_v12  ;;  %v2135_v50 = vpop.f32.mrb[44].mxu0 }
 0x2b0   : > { %v2240_v27 = vadd.f32 %v3874_v9, %v2135_v50  ;;  %v2137_v45 = vpop.f32.mrb[45].mxu0 }
 0x2b1   : > { %2537 = vst [vmem:[%s3886_s8 + $0xa8] sm:$0xff] %v2863_v16  ;;  %v2241_v46 = vadd.f32 %v3876_v13, %v2137_v45  ;;  %v2139_v31 = vpop.f32.mrb[46].mxu0 }
 0x2b2   : > { %v2304_v53 = vmax.f32 %v2240_v27, 0.0  ;;  %v2242_v49 = vadd.f32 %v3874_v9, %v2139_v31  ;;  %v2141_v51 = vpop.f32.mrb[47].mxu0 }
 0x2b3   : > { %v2305_v54 = vmax.f32 %v2241_v46, 0.0  ;;  %v2243_v20 = vadd.f32 %v3876_v13, %v2141_v51 }
 0x2b4   : > { %v2306_v35 = vmax.f32 %v2242_v49, 0.0 }
 0x2b5   : > { %v2864_v55 = vpack.c.bf16 %v2305_v54, %v2304_v53  ;;  %v2307_v56 = vmax.f32 %v2243_v20, 0.0 }
 0x2b7   : > { %2538 = vst [vmem:[%s3886_s8 + $0xb0] sm:$0xff] %v2864_v55  ;;  %v2865_v39 = vpack.c.bf16 %v2307_v56, %v2306_v35  ;;  %v2145_v58 = vpop.f32.mrb[48].mxu0 }
 0x2b8   : > { %v2244_v24 = vadd.f32 %v3874_v9, %v2145_v58  ;;  %v2147_v59 = vpop.f32.mrb[49].mxu0 }
 0x2b9   : > { %2539 = vst [vmem:[%s3886_s8 + $0xb8] sm:$0xff] %v2865_v39  ;;  %v2245_v60 = vadd.f32 %v3876_v13, %v2147_v59  ;;  %v2149_v63 = vpop.f32.mrb[50].mxu0 }
 0x2ba   : > { %v2308_v43 = vmax.f32 %v2244_v24, 0.0  ;;  %v2246_v0 = vadd.f32 %v3874_v9, %v2149_v63  ;;  %v2151_v3 = vpop.f32.mrb[51].mxu0 }
 0x2bb   : > { %v2309_v48 = vmax.f32 %v2245_v60, 0.0  ;;  %v2247_v5 = vadd.f32 %v3876_v13, %v2151_v3 }
 0x2bc   : > { %v2310_v62 = vmax.f32 %v2246_v0, 0.0 }
 0x2bd   : > { %v2866_v28 = vpack.c.bf16 %v2309_v48, %v2308_v43  ;;  %v2311_v6 = vmax.f32 %v2247_v5, 0.0 }
 0x2bf   : > { %2540 = vst [vmem:[%s3886_s8 + $0xc0] sm:$0xff] %v2866_v28  ;;  %v2867_v52 = vpack.c.bf16 %v2311_v6, %v2310_v62  ;;  %v2155_v1 = vpop.f32.mrb[52].mxu0 }
 0x2c0   : > { %v2248_v57 = vadd.f32 %v3874_v9, %v2155_v1  ;;  %v2157_v8 = vpop.f32.mrb[53].mxu0 }
 0x2c1   : > { %2541 = vst [vmem:[%s3886_s8 + $0xc8] sm:$0xff] %v2867_v52  ;;  %v2249_v32 = vadd.f32 %v3876_v13, %v2157_v8  ;;  %v2159_v11 = vpop.f32.mrb[54].mxu0 }
 0x2c2   : > { %v2312_v61 = vmax.f32 %v2248_v57, 0.0  ;;  %v2250_v14 = vadd.f32 %v3874_v9, %v2159_v11  ;;  %v2161_v2 = vpop.f32.mrb[55].mxu0 }
 0x2c3   : > { %v2313_v4 = vmax.f32 %v2249_v32, 0.0  ;;  %v2251_v17 = vadd.f32 %v3876_v13, %v2161_v2 }
 0x2c4   : > { %v2314_v18 = vmax.f32 %v2250_v14, 0.0 }
 0x2c5   : > { %v2868_v7 = vpack.c.bf16 %v2313_v4, %v2312_v61  ;;  %v2315_v36 = vmax.f32 %v2251_v17, 0.0 }
 0x2c7   : > { %2542 = vst [vmem:[%s3886_s8 + $0xd0] sm:$0xff] %v2868_v7  ;;  %v2869_v21 = vpack.c.bf16 %v2315_v36, %v2314_v18  ;;  %v2165_v22 = vpop.f32.mrb[56].mxu0 }
 0x2c8   : > { %v2252_v40 = vadd.f32 %v3874_v9, %v2165_v22  ;;  %v2167_v25 = vpop.f32.mrb[57].mxu0 }
 0x2c9   : > { %2543 = vst [vmem:[%s3886_s8 + $0xd8] sm:$0xff] %v2869_v21  ;;  %v2253_v10 = vadd.f32 %v3876_v13, %v2167_v25  ;;  %v2169_v26 = vpop.f32.mrb[58].mxu0 }
 0x2ca   : > { %v2316_v29 = vmax.f32 %v2252_v40, 0.0  ;;  %v2254_v15 = vadd.f32 %v3874_v9, %v2169_v26  ;;  %v2171_v30 = vpop.f32.mrb[59].mxu0 }
 0x2cb   : > { %v2317_v33 = vmax.f32 %v2253_v10, 0.0  ;;  %v2255_v44 = vadd.f32 %v3876_v13, %v2171_v30 }
 0x2cc   : > { %v2318_v34 = vmax.f32 %v2254_v15, 0.0 }
 0x2cd   : > { %v2870_v37 = vpack.c.bf16 %v2317_v33, %v2316_v29  ;;  %v2319_v19 = vmax.f32 %v2255_v44, 0.0 }
 0x2cf   : > { %2544 = vst [vmem:[%s3886_s8 + $0xe0] sm:$0xff] %v2870_v37  ;;  %v2871_v47 = vpack.c.bf16 %v2319_v19, %v2318_v34  ;;  %v2175_v38 = vpop.f32.mrb[60].mxu0 }
 0x2d0   : > { %v2256_v23 = vadd.f32 %v3874_v9, %v2175_v38  ;;  %v2177_v12 = vpop.f32.mrb[61].mxu0 }
 0x2d1   : > { %2545 = vst [vmem:[%s3886_s8 + $0xe8] sm:$0xff] %v2871_v47  ;;  %v2257_v41 = vadd.f32 %v3876_v13, %v2177_v12  ;;  %v2179_v42 = vpop.f32.mrb[62].mxu0 }
 0x2d2   : > { %v2320_v16 = vmax.f32 %v2256_v23, 0.0  ;;  %v2258_v50 = vadd.f32 %v3874_v9, %v2179_v42  ;;  %v2181_v27 = vpop.f32.mrb[63].mxu0 }
 0x2d3   : > { %v2321_v45 = vmax.f32 %v2257_v41, 0.0  ;;  %v2259_v46 = vadd.f32 %v3876_v13, %v2181_v27 }
 0x2d4   : > { %v2322_v31 = vmax.f32 %v2258_v50, 0.0 }
 0x2d5   : > { %v2872_v53 = vpack.c.bf16 %v2321_v45, %v2320_v16  ;;  %v2323_v49 = vmax.f32 %v2259_v46, 0.0 }
 0x2d7   : > { %2546 = vst [vmem:[%s3886_s8 + $0xf0] sm:$0xff] %v2872_v53  ;;  %v2873_v51 = vpack.c.bf16 %v2323_v49, %v2322_v31 }
 0x2d9   : > { %2547 = vst [vmem:[%s3886_s8 + $0xf8] sm:$0xff] %v2873_v51 }
 0x2da PF: > { %s16_s23 = sadd.s32 1, %s3401_s23   ;;  %s3996_s21 = smov %s3397_s22 }
 0x2db   : > { %p13_p5 = scmp.ge.s32.totalorder %s16_s23, 4   ;;  %s3997_s22 = smov %s3999_s24 }
 0x2dd   :  { %15 = sbr.rel (!%p13_p5) target bundleno = 2 (0x2), region = 88 }

// kernel: sage_forward.7
= control target key start
LH: loop header
LB: loop body
LE: loop exit
PB: predicated region body
PF: predicated region fallthrough
CT: control target
= control target key end

     0   :  { %s3418_s21 = smov 0   ;;  %s3420_s22 = smov 0   ;;  %s4196_s0 = inlined_call_operand.vmem [shape: bf16[512,512], index: 0, kind: input, shape index: {}]   ;;  %s4197_s1 = inlined_call_operand.vmem [shape: bf16[512,128], index: 1, kind: input, shape index: {}]   ;;  %s4198_s2 = inlined_call_operand.vmem [shape: bf16[512,256], index: 2, kind: input, shape index: {}]   ;;  %s4199_s3 = inlined_call_operand.vmem [shape: bf16[256,128], index: 3, kind: input, shape index: {}]   ;;  %s4200_s4 = inlined_call_operand.vmem [shape: bf16[256,128], index: 4, kind: input, shape index: {}]   ;;  %s4201_s5 = inlined_call_operand.vmem [shape: f32[1,128], index: 5, kind: input, shape index: {}]   ;;  %s4202_s6 = inlined_call_operand.vmem [shape: f32[512,128], index: 6, kind: output, shape index: {}]  }
   0x1   :  { %s3422_s23 = smov 0  }
   0x2 LB: > { %s28_s3 = sadd.s32 1, %s3377_s22  ;;  %p2505_p0 = scmp.ge.s32.totalorder %s3381_s23, 1  ;;  %s3381_s23 = sphi %s3422_s23, %s16_s23   ;;  %s3377_s22 = sphi %s3420_s22, %s4204_s22   ;;  %s3373_s21 = sphi %s3418_s21, %s4203_s21  }
   0x3   : > { %p30_p1 = scmp.ge.s32.totalorder %s28_s3, 2  ;;  %p256_p2 = scmp.lt.s32.totalorder %s3381_s23, 3 }
   0x5   : > { %s4206_s3 = smov (%p30_p1, %s28_s3), 0  ;;  %p257_p3 = pnand %p2505_p0, %p256_p2 }
   0x6   : > { %v3039_v0 = vld [vmem:[%s4197_s1 + $0x40] sm:$0xff] (!%p257_p3)   ;;  %s2506_s26 = sshll.u32 (!%p257_p3), %s3373_s21, 5  ;;  %v3041_v2 = vld [vmem:[%s4197_s1 + $0x48] sm:$0xff] (!%p257_p3)   ;;  %v3043_v4 = vld [vmem:[%s4197_s1 + $0x50] sm:$0xff] (!%p257_p3)  }
   0x7   : > { %260 = sbr.rel (%p257_p3) target bundleno = 762 (0x2fa), region = 44  ;;  %v3040_v1 = vld [vmem:[%s4197_s1] sm:$0xff] (!%p257_p3)   ;;  %2663 = vmatprep.subr.bf16.mxu0 (!%p257_p3), %v3039_v0  ;;  %2999 = vmatprep.subr.bf16.mxu1 (!%p257_p3), %v3039_v0  ;;  %v3042_v3 = vld [vmem:[%s4197_s1 + $0x8] sm:$0xff] (!%p257_p3)   ;;  %p304_p4 = scmp.lt.s32.totalorder (!%p257_p3), %s2506_s26, 63  ;;  %v3044_v5 = vld [vmem:[%s4197_s1 + $0x10] sm:$0xff] (!%p257_p3)  }
   0x8   : > { %2664 = vmatpush3.bf16.msra.mxu0 (!%p257_p3), %v3040_v1  ;;  %3007 = vmatpush3.bf16.msra.mxu1 (!%p257_p3), %v3040_v1  ;;  %v3045_v6 = vld [vmem:[%s4197_s1 + $0x58] sm:$0xff] (!%p257_p3)   ;;  %v3047_v8 = vld [vmem:[%s4197_s1 + $0x60] sm:$0xff] (!%p257_p3)   ;;  %v3049_v10 = vld [vmem:[%s4197_s1 + $0x68] sm:$0xff] (!%p257_p3)  }
   0x9   : > { %2665 = vmatprep.subr.bf16.mxu0 (!%p257_p3), %v3041_v2  ;;  %3000 = vmatprep.subr.bf16.mxu1 (!%p257_p3), %v3041_v2  ;;  %v3046_v7 = vld [vmem:[%s4197_s1 + $0x18] sm:$0xff] (!%p257_p3)   ;;  %v3048_v9 = vld [vmem:[%s4197_s1 + $0x20] sm:$0xff] (!%p257_p3)   ;;  %v3050_v13 = vld [vmem:[%s4197_s1 + $0x28] sm:$0xff] (!%p257_p3)  }
   0xa   : > { %v3051_v14 = vld [vmem:[%s4197_s1 + $0x70] sm:$0xff] (!%p257_p3)   ;;  %v3053_v16 = vld [vmem:[%s4197_s1 + $0x78] sm:$0xff] (!%p257_p3)   ;;  %v3061_v18 = vld [vmem:[%s4197_s1 + $0xc0] sm:$0xff] (!%p257_p3)  }
   0xb   : > { %v3052_v15 = vld [vmem:[%s4197_s1 + $0x30] sm:$0xff] (!%p257_p3)   ;;  %v3054_v17 = vld [vmem:[%s4197_s1 + $0x38] sm:$0xff] (!%p257_p3)   ;;  %v3063_v20 = vld [vmem:[%s4200_s4 + $0x40] sm:$0xff] (!%p257_p3)  }
   0xc   : > { %2666 = vmatpush3.bf16.msra.mxu0 (!%p257_p3), %v3042_v3  ;;  %3008 = vmatpush3.bf16.msra.mxu1 (!%p257_p3), %v3042_v3  ;;  %v3062_v22 = vld [vmem:[%s4197_s1 + $0x80] sm:$0xff] (!%p257_p3)   ;;  %v3071_v26 = vld [vmem:[%s4197_s1 + $0xc8] sm:$0xff] (!%p257_p3)   ;;  %v3081_v30 = vld [vmem:[%s4197_s1 + $0xd0] sm:$0xff] (!%p257_p3)  }
   0xd   : > { %2667 = vmatprep.subr.bf16.mxu0 (!%p257_p3), %v3043_v4  ;;  %3001 = vmatprep.subr.bf16.mxu1 (!%p257_p3), %v3043_v4  ;;  %v3064_v23 = vld [vmem:[%s4200_s4] sm:$0xff] (!%p257_p3)   ;;  %v3072_v27 = vld [vmem:[%s4197_s1 + $0x88] sm:$0xff] (!%p257_p3)   ;;  %v3083_v33 = vld [vmem:[%s4200_s4 + $0x50] sm:$0xff] (!%p257_p3)  }
   0xe   : > { %s4208_s26 = smov (!%p304_p4, %s2506_s26), 63  ;;  %v3073_v28 = vld [vmem:[%s4200_s4 + $0x48] sm:$0xff]   ;;  %v3082_v36 = vld [vmem:[%s4197_s1 + $0x90] sm:$0xff]   ;;  %v3091_v38 = vld [vmem:[%s4197_s1 + $0xd8] sm:$0xff]  }
   0xf   : > { %s2661_s17 = sshll.u32 %s4208_s26, 4  ;;  %v3074_v29 = vld [vmem:[%s4200_s4 + $0x8] sm:$0xff]   ;;  %v3084_v37 = vld [vmem:[%s4200_s4 + $0x10] sm:$0xff]   ;;  %v3093_v39 = vld [vmem:[%s4200_s4 + $0x58] sm:$0xff]   ;;  %s2662_s14 = sshll.u32 %s4208_s26, 3 }
  0x10   : > { %2668 = vmatpush3.bf16.msra.mxu0 %v3044_v5  ;;  %3009 = vmatpush3.bf16.msra.mxu1 %v3044_v5  ;;  %s3469_s24 = scalar_lea.vmem %s4196_s0, %s2661_s17  ;;  %v3092_v42 = vld [vmem:[%s4197_s1 + $0x98] sm:$0xff]   ;;  %v3101_v46 = vld [vmem:[%s4197_s1 + $0xe0] sm:$0xff]   ;;  %v3111_v52 = vld [vmem:[%s4197_s1 + $0xe8] sm:$0xff]   ;;  %s3616_s27 = scalar_lea.vmem %s4198_s2, %s2662_s14 }
  0x11   : > { %2669 = vmatprep.subr.bf16.mxu0 %v3045_v6  ;;  %3002 = vmatprep.subr.bf16.mxu1 %v3045_v6  ;;  %v3057_v11 = vld [vmem:[%s3469_s24 + $0x4] ss:$16 sps:$4 sm:$0xff]   ;;  %v3055_v19 = vld [vmem:[%s3469_s24] ss:$16 sps:$4 sm:$0xff]   ;;  %v3094_v43 = vld [vmem:[%s4200_s4 + $0x18] sm:$0xff]   ;;  %s4121_s7 = scalar_lea.vmem %s4202_s6, %s2662_s14 }
  0x12   : > { %v3060_v12 = vld [vmem:[%s3469_s24 + $0x104] ss:$16 sps:$4 sm:$0xff]   ;;  %1074 = vmatprep.mubr.bf16.mxu0 %v3057_v11  ;;  %v3058_v21 = vld [vmem:[%s3469_s24 + $0x100] ss:$16 sps:$4 sm:$0xff]   ;;  %v3112_v55 = vld [vmem:[%s4197_s1 + $0xa8] sm:$0xff]  }
  0x13   : > { %1138 = vmatprep.mubr.bf16.mxu1 %v3060_v12  ;;  %v3065_v24 = vld [vmem:[%s3469_s24 + $0x24] ss:$16 sps:$4 sm:$0xff]   ;;  %v3069_v31 = vld [vmem:[%s3469_s24 + $0x20] ss:$16 sps:$4 sm:$0xff]   ;;  %v3113_v56 = vld [vmem:[%s4200_s4 + $0x68] sm:$0xff]  }
  0x14   : > { %2670 = vmatpush3.bf16.msra.mxu0 %v3046_v7  ;;  %3010 = vmatpush3.bf16.msra.mxu1 %v3046_v7  ;;  %v3067_v25 = vld [vmem:[%s3469_s24 + $0x124] ss:$16 sps:$4 sm:$0xff]   ;;  %v3070_v32 = vld [vmem:[%s3469_s24 + $0x120] ss:$16 sps:$4 sm:$0xff]   ;;  %v3114_v57 = vld [vmem:[%s4200_s4 + $0x28] sm:$0xff]  }
  0x15   : > { %2671 = vmatprep.subr.bf16.mxu0 %v3047_v8  ;;  %3003 = vmatprep.subr.bf16.mxu1 %v3047_v8  ;;  %v3075_v34 = vld [vmem:[%s3469_s24 + $0x44] ss:$16 sps:$4 sm:$0xff]   ;;  %v3079_v40 = vld [vmem:[%s3469_s24 + $0x40] ss:$16 sps:$4 sm:$0xff]   ;;  %v3131_v2 = vld [vmem:[%s4197_s1 + $0xf8] sm:$0xff]  }
  0x16   : > { %v3077_v35 = vld [vmem:[%s3469_s24 + $0x144] ss:$16 sps:$4 sm:$0xff]   ;;  %v3080_v41 = vld [vmem:[%s3469_s24 + $0x140] ss:$16 sps:$4 sm:$0xff]   ;;  %v3132_v3 = vld [vmem:[%s4197_s1 + $0xb8] sm:$0xff]  }
  0x17   : > { %v3085_v44 = vld [vmem:[%s3469_s24 + $0x64] ss:$16 sps:$4 sm:$0xff]   ;;  %v3089_v50 = vld [vmem:[%s3469_s24 + $0x60] ss:$16 sps:$4 sm:$0xff]   ;;  %v3133_v4 = vld [vmem:[%s4200_s4 + $0x78] sm:$0xff]  }
  0x18   : > { %2672 = vmatpush3.bf16.msra.mxu0 %v3048_v9  ;;  %3011 = vmatpush3.bf16.msra.mxu1 %v3048_v9  ;;  %v3087_v45 = vld [vmem:[%s3469_s24 + $0x164] ss:$16 sps:$4 sm:$0xff]   ;;  %v3090_v51 = vld [vmem:[%s3469_s24 + $0x160] ss:$16 sps:$4 sm:$0xff]   ;;  %v3134_v5 = vld [vmem:[%s4200_s4 + $0x38] sm:$0xff]  }
  0x19   : > { %2673 = vmatprep.subr.bf16.mxu0 %v3049_v10  ;;  %3004 = vmatprep.subr.bf16.mxu1 %v3049_v10  ;;  %v3102_v47 = vld [vmem:[%s4197_s1 + $0xa0] sm:$0xff]   ;;  %v3121_v58 = vld [vmem:[%s4197_s1 + $0xf0] sm:$0xff]  }
  0x1a   : > { %v3103_v48 = vld [vmem:[%s4200_s4 + $0x60] sm:$0xff]   ;;  %v3122_v61 = vld [vmem:[%s4197_s1 + $0xb0] sm:$0xff]  }
  0x1b   : > { %v3104_v49 = vld [vmem:[%s4200_s4 + $0x20] sm:$0xff]   ;;  %v3123_v63 = vld [vmem:[%s4200_s4 + $0x70] sm:$0xff]  }
  0x1c   : > { %2674 = vmatpush3.bf16.msra.mxu0 %v3050_v13  ;;  %3012 = vmatpush3.bf16.msra.mxu1 %v3050_v13  ;;  %v3095_v53 = vld [vmem:[%s3469_s24 + $0x84] ss:$16 sps:$4 sm:$0xff]   ;;  %v3099_v59 = vld [vmem:[%s3469_s24 + $0x80] ss:$16 sps:$4 sm:$0xff]  }
  0x1d   : > { %2675 = vmatprep.subr.bf16.mxu0 %v3051_v14  ;;  %3005 = vmatprep.subr.bf16.mxu1 %v3051_v14  ;;  %v3097_v54 = vld [vmem:[%s3469_s24 + $0x184] ss:$16 sps:$4 sm:$0xff]   ;;  %v3100_v60 = vld [vmem:[%s3469_s24 + $0x180] ss:$16 sps:$4 sm:$0xff]  }
  0x1e   : > { %v3105_v62 = vld [vmem:[%s3469_s24 + $0xa4] ss:$16 sps:$4 sm:$0xff]   ;;  %v3109_v6 = vld [vmem:[%s3469_s24 + $0xa0] ss:$16 sps:$4 sm:$0xff]  }
  0x1f   : > { %v3124_v0 = vld [vmem:[%s4200_s4 + $0x30] sm:$0xff]  }
  0x20   : > { %2676 = vmatpush3.bf16.msra.mxu0 %v3052_v15  ;;  %3013 = vmatpush3.bf16.msra.mxu1 %v3052_v15  ;;  %v3107_v1 = vld [vmem:[%s3469_s24 + $0x1a4] ss:$16 sps:$4 sm:$0xff]   ;;  %v3110_v7 = vld [vmem:[%s3469_s24 + $0x1a0] ss:$16 sps:$4 sm:$0xff]  }
  0x21   : > { %2677 = vmatprep.subr.bf16.mxu0 %v3053_v16  ;;  %3006 = vmatprep.subr.bf16.mxu1 %v3053_v16  ;;  %v3115_v8 = vld [vmem:[%s3469_s24 + $0xc4] ss:$16 sps:$4 sm:$0xff]   ;;  %v3119_v10 = vld [vmem:[%s3469_s24 + $0xc0] ss:$16 sps:$4 sm:$0xff]   ;;  %v3137_v16 = vld [vmem:[%s3469_s24 + $0xc] ss:$16 sps:$4 sm:$0xff]  }
  0x22   : > { %v3117_v9 = vld [vmem:[%s3469_s24 + $0x1c4] ss:$16 sps:$4 sm:$0xff]   ;;  %v3120_v11 = vld [vmem:[%s3469_s24 + $0x1c0] ss:$16 sps:$4 sm:$0xff]  }
  0x23   : > { %v3125_v12 = vld [vmem:[%s3469_s24 + $0xe4] ss:$16 sps:$4 sm:$0xff]   ;;  %v3129_v14 = vld [vmem:[%s3469_s24 + $0xe0] ss:$16 sps:$4 sm:$0xff]  }
  0x24   : > { %2678 = vmatpush3.bf16.msra.mxu0 %v3054_v17  ;;  %3014 = vmatpush3.bf16.msra.mxu1 %v3054_v17  ;;  %v3127_v13 = vld [vmem:[%s3469_s24 + $0x1e4] ss:$16 sps:$4 sm:$0xff]   ;;  %v3130_v15 = vld [vmem:[%s3469_s24 + $0x1e0] ss:$16 sps:$4 sm:$0xff]  }
  0x25   : > { %2775 = vmatprep.subr.bf16.mxu1 %v3061_v18  ;;  %2887 = vmatprep.subr.bf16.mxu0 %v3063_v20  ;;  %v3140_v17 = vld [vmem:[%s3616_s27 + $0x4] ss:$8 sps:$4 sm:$0xff]   ;;  %v3135_v18 = vld [vmem:[%s3469_s24 + $0x8] ss:$16 sps:$4 sm:$0xff]  }
  0x26   : > { %v3141_v20 = vld [vmem:[%s3469_s24 + $0x2c] ss:$16 sps:$4 sm:$0xff]  }
  0x27   : > { %1075 = vmatmul.mubr.bf16.vlgmr.msra.gmra.mrb[0].mxu0 %v3055_v19  ;;  %1139 = vmatmul.mubr.bf16.vlgmr.msra.gmra.mrb[0].mxu1 %v3058_v21  ;;  %v3138_v19 = vld [vmem:[%s3616_s27] ss:$8 sps:$4 sm:$0xff]   ;;  %v3143_v21 = vld [vmem:[%s3616_s27 + $0x14] ss:$8 sps:$4 sm:$0xff]  }
  0x28   : > { %2776 = vmatpush3.bf16.msra.mxu1 %v3062_v22  ;;  %2888 = vmatpush3.bf16.msra.mxu0 %v3064_v23  ;;  %v3145_v22 = vld [vmem:[%s3469_s24 + $0x28] ss:$16 sps:$4 sm:$0xff]  }
  0x29   : > { %1082 = vmatprep.mubr.bf16.mxu0 %v3065_v24  ;;  %1146 = vmatprep.mubr.bf16.mxu1 %v3067_v25  ;;  %v3146_v23 = vld [vmem:[%s3616_s27 + $0x10] ss:$8 sps:$4 sm:$0xff]   ;;  %v3147_v24 = vld [vmem:[%s3469_s24 + $0x4c] ss:$16 sps:$4 sm:$0xff]  }
  0x2a   : > { %2777 = vmatprep.subr.bf16.mxu1 %v3071_v26  ;;  %2889 = vmatprep.subr.bf16.mxu0 %v3073_v28  ;;  %v3149_v25 = vld [vmem:[%s3616_s27 + $0x24] ss:$8 sps:$4 sm:$0xff]   ;;  %v3151_v26 = vld [vmem:[%s3469_s24 + $0x48] ss:$16 sps:$4 sm:$0xff]  }
  0x2b   : > { %v3153_v28 = vld [vmem:[%s3469_s24 + $0x6c] ss:$16 sps:$4 sm:$0xff]  }
  0x2c   : > { %2778 = vmatpush3.bf16.msra.mxu1 %v3072_v27  ;;  %2890 = vmatpush3.bf16.msra.mxu0 %v3074_v29  ;;  %v3152_v27 = vld [vmem:[%s3616_s27 + $0x20] ss:$8 sps:$4 sm:$0xff]   ;;  %v3155_v29 = vld [vmem:[%s3616_s27 + $0x34] ss:$8 sps:$4 sm:$0xff]  }
  0x2d   : > { %2779 = vmatprep.subr.bf16.mxu1 %v3081_v30  ;;  %2891 = vmatprep.subr.bf16.mxu0 %v3083_v33  ;;  %v3157_v30 = vld [vmem:[%s3469_s24 + $0x68] ss:$16 sps:$4 sm:$0xff]   ;;  %v3161_v33 = vld [vmem:[%s3616_s27 + $0x44] ss:$8 sps:$4 sm:$0xff]  }
  0x2f   : > { %1083 = vmatmul.mubr.bf16.gmra.mrb[4].mxu0 %v3069_v31  ;;  %1147 = vmatmul.mubr.bf16.gmra.mrb[4].mxu1 %v3070_v32  ;;  %v3158_v31 = vld [vmem:[%s3616_s27 + $0x30] ss:$8 sps:$4 sm:$0xff]   ;;  %v3159_v32 = vld [vmem:[%s3469_s24 + $0x8c] ss:$16 sps:$4 sm:$0xff]  }
  0x30   : > { %1090 = vmatprep.mubr.bf16.mxu0 %v3075_v34  ;;  %1154 = vmatprep.mubr.bf16.mxu1 %v3077_v35  ;;  %v3163_v34 = vld [vmem:[%s3469_s24 + $0x88] ss:$16 sps:$4 sm:$0xff]  }
  0x31   : > { %2780 = vmatpush3.bf16.msra.mxu1 %v3082_v36  ;;  %2892 = vmatpush3.bf16.msra.mxu0 %v3084_v37  ;;  %v3164_v35 = vld [vmem:[%s3616_s27 + $0x40] ss:$8 sps:$4 sm:$0xff]   ;;  %v3165_v36 = vld [vmem:[%s3469_s24 + $0xac] ss:$16 sps:$4 sm:$0xff]  }
  0x32   : > { %2781 = vmatprep.subr.bf16.mxu1 %v3091_v38  ;;  %2893 = vmatprep.subr.bf16.mxu0 %v3093_v39  ;;  %v3167_v37 = vld [vmem:[%s3616_s27 + $0x54] ss:$8 sps:$4 sm:$0xff]   ;;  %v3169_v38 = vld [vmem:[%s3469_s24 + $0xa8] ss:$16 sps:$4 sm:$0xff]  }
  0x33   : > { %v3170_v39 = vld [vmem:[%s3616_s27 + $0x50] ss:$8 sps:$4 sm:$0xff]  }
  0x35   : > { %2782 = vmatpush3.bf16.msra.mxu1 %v3092_v42  ;;  %2894 = vmatpush3.bf16.msra.mxu0 %v3094_v43  ;;  %v3175_v42 = vld [vmem:[%s3469_s24 + $0xc8] ss:$16 sps:$4 sm:$0xff]  }
  0x36   : > { %2783 = vmatprep.subr.bf16.mxu1 %v3101_v46  ;;  %2895 = vmatprep.subr.bf16.mxu0 %v3103_v48  ;;  %v3176_v43 = vld [vmem:[%s3616_s27 + $0x60] ss:$8 sps:$4 sm:$0xff]   ;;  %v3183_v48 = vld [vmem:[%s3469_s24 + $0x10c] ss:$16 sps:$4 sm:$0xff]  }
  0x37   : > { %1091 = vmatmul.mubr.bf16.gmra.mrb[8].mxu0 %v3079_v40  ;;  %1155 = vmatmul.mubr.bf16.gmra.mrb[8].mxu1 %v3080_v41  ;;  %v3171_v40 = vld [vmem:[%s3469_s24 + $0xcc] ss:$16 sps:$4 sm:$0xff]   ;;  %v3181_v46 = vld [vmem:[%s3469_s24 + $0xe8] ss:$16 sps:$4 sm:$0xff]  }
  0x38   : > { %1098 = vmatprep.mubr.bf16.mxu0 %v3085_v44  ;;  %1162 = vmatprep.mubr.bf16.mxu1 %v3087_v45  ;;  %v3173_v41 = vld [vmem:[%s3616_s27 + $0x64] ss:$8 sps:$4 sm:$0xff]   ;;  %v3179_v45 = vld [vmem:[%s3616_s27 + $0x74] ss:$8 sps:$4 sm:$0xff]  }
  0x39   : > { %2784 = vmatpush3.bf16.msra.mxu1 %v3102_v47  ;;  %2896 = vmatpush3.bf16.msra.mxu0 %v3104_v49  ;;  %v3177_v44 = vld [vmem:[%s3469_s24 + $0xec] ss:$16 sps:$4 sm:$0xff]   ;;  %v3182_v47 = vld [vmem:[%s3616_s27 + $0x70] ss:$8 sps:$4 sm:$0xff]  }
  0x3a   : > { %2785 = vmatprep.subr.bf16.mxu1 %v3111_v52  ;;  %2897 = vmatprep.subr.bf16.mxu0 %v3113_v56  ;;  %v3185_v49 = vld [vmem:[%s3616_s27 + $0x84] ss:$8 sps:$4 sm:$0xff]  }
  0x3b   : > { %v3189_v52 = vld [vmem:[%s3469_s24 + $0x12c] ss:$16 sps:$4 sm:$0xff]  }
  0x3c   : > { %v3195_v56 = vld [vmem:[%s3469_s24 + $0x14c] ss:$16 sps:$4 sm:$0xff]  }
  0x3d   : > { %2786 = vmatpush3.bf16.msra.mxu1 %v3112_v55  ;;  %2898 = vmatpush3.bf16.msra.mxu0 %v3114_v57  ;;  %v3194_v55 = vld [vmem:[%s3616_s27 + $0x90] ss:$8 sps:$4 sm:$0xff]   ;;  %v3197_v57 = vld [vmem:[%s3616_s27 + $0xa4] ss:$8 sps:$4 sm:$0xff]  }
  0x3e   : > { %2787 = vmatprep.subr.bf16.mxu1 %v3121_v58  ;;  %2899 = vmatprep.subr.bf16.mxu0 %v3123_v63  ;;  %v3199_v58 = vld [vmem:[%s3469_s24 + $0x148] ss:$16 sps:$4 sm:$0xff]  }
  0x3f   : > { %1099 = vmatmul.mubr.bf16.gmra.mrb[12].mxu0 %v3089_v50  ;;  %1163 = vmatmul.mubr.bf16.gmra.mrb[12].mxu1 %v3090_v51  ;;  %v3187_v50 = vld [vmem:[%s3469_s24 + $0x108] ss:$16 sps:$4 sm:$0xff]  }
  0x40   : > { %1106 = vmatprep.mubr.bf16.mxu0 %v3095_v53  ;;  %1170 = vmatprep.mubr.bf16.mxu1 %v3097_v54  ;;  %v3188_v51 = vld [vmem:[%s3616_s27 + $0x80] ss:$8 sps:$4 sm:$0xff]   ;;  %v3191_v53 = vld [vmem:[%s3616_s27 + $0x94] ss:$8 sps:$4 sm:$0xff]   ;;  %v3206_v63 = vld [vmem:[%s3616_s27 + $0xb0] ss:$8 sps:$4 sm:$0xff]  }
  0x41   : > { %2788 = vmatpush3.bf16.msra.mxu1 %v3122_v61  ;;  %2900 = vmatpush3.bf16.msra.mxu0 %v3124_v0  ;;  %v3193_v54 = vld [vmem:[%s3469_s24 + $0x128] ss:$16 sps:$4 sm:$0xff]   ;;  %v3203_v61 = vld [vmem:[%s3616_s27 + $0xb4] ss:$8 sps:$4 sm:$0xff]  }
  0x42   : > { %2789 = vmatprep.subr.bf16.mxu1 %v3131_v2  ;;  %2901 = vmatprep.subr.bf16.mxu0 %v3133_v4  ;;  %v3207_v0 = vld [vmem:[%s3469_s24 + $0x18c] ss:$16 sps:$4 sm:$0xff]   ;;  %v3211_v2 = vld [vmem:[%s3469_s24 + $0x188] ss:$16 sps:$4 sm:$0xff]  }
  0x43   : > { %v3213_v4 = vld [vmem:[%s3469_s24 + $0x1ac] ss:$16 sps:$4 sm:$0xff]  }
  0x45   : > { %2790 = vmatpush3.bf16.msra.mxu1 %v3132_v3  ;;  %2902 = vmatpush3.bf16.msra.mxu0 %v3134_v5  ;;  %v3212_v3 = vld [vmem:[%s3616_s27 + $0xc0] ss:$8 sps:$4 sm:$0xff]   ;;  %v3215_v5 = vld [vmem:[%s3616_s27 + $0xd4] ss:$8 sps:$4 sm:$0xff]  }
  0x47   : > { %1107 = vmatmul.mubr.bf16.gmra.mrb[16].mxu0 %v3099_v59  ;;  %1171 = vmatmul.mubr.bf16.gmra.mrb[16].mxu1 %v3100_v60  ;;  %v3200_v59 = vld [vmem:[%s3616_s27 + $0xa0] ss:$8 sps:$4 sm:$0xff]   ;;  %v3201_v60 = vld [vmem:[%s3469_s24 + $0x16c] ss:$16 sps:$4 sm:$0xff]  }
  0x48   : > { %1114 = vmatprep.mubr.bf16.mxu0 %v3105_v62  ;;  %1178 = vmatprep.mubr.bf16.mxu1 %v3107_v1  ;;  %v3205_v62 = vld [vmem:[%s3469_s24 + $0x168] ss:$16 sps:$4 sm:$0xff]   ;;  %v3209_v1 = vld [vmem:[%s3616_s27 + $0xc4] ss:$8 sps:$4 sm:$0xff]  }
  0x4f   : > { %1115 = vmatmul.mubr.bf16.gmra.mrb[20].mxu0 %v3109_v6  ;;  %1179 = vmatmul.mubr.bf16.gmra.mrb[20].mxu1 %v3110_v7  ;;  %v3217_v6 = vld [vmem:[%s3469_s24 + $0x1a8] ss:$16 sps:$4 sm:$0xff]  }
  0x50   : > { %1122 = vmatprep.mubr.bf16.mxu0 %v3115_v8  ;;  %1186 = vmatprep.mubr.bf16.mxu1 %v3117_v9  ;;  %v3218_v7 = vld [vmem:[%s3616_s27 + $0xd0] ss:$8 sps:$4 sm:$0xff]   ;;  %v3219_v8 = vld [vmem:[%s3469_s24 + $0x1cc] ss:$16 sps:$4 sm:$0xff]  }
  0x51   : > { %v3221_v9 = vld [vmem:[%s3616_s27 + $0xe4] ss:$8 sps:$4 sm:$0xff]  }
  0x57   : > { %1123 = vmatmul.mubr.bf16.gmra.mrb[24].mxu0 %v3119_v10  ;;  %1187 = vmatmul.mubr.bf16.gmra.mrb[24].mxu1 %v3120_v11  ;;  %v3223_v10 = vld [vmem:[%s3469_s24 + $0x1c8] ss:$16 sps:$4 sm:$0xff]  }
  0x58   : > { %1130 = vmatprep.mubr.bf16.mxu0 %v3125_v12  ;;  %1194 = vmatprep.mubr.bf16.mxu1 %v3127_v13  ;;  %v3224_v11 = vld [vmem:[%s3616_s27 + $0xe0] ss:$8 sps:$4 sm:$0xff]   ;;  %v3225_v12 = vld [vmem:[%s3469_s24 + $0x1ec] ss:$16 sps:$4 sm:$0xff]  }
  0x59   : > { %v3227_v13 = vld [vmem:[%s3616_s27 + $0xf4] ss:$8 sps:$4 sm:$0xff]  }
  0x5f   : > { %1131 = vmatmul.mubr.bf16.gmra.mrb[28].mxu0 %v3129_v14  ;;  %1195 = vmatmul.mubr.bf16.gmra.mrb[28].mxu1 %v3130_v15  ;;  %v3229_v14 = vld [vmem:[%s3469_s24 + $0x1e8] ss:$16 sps:$4 sm:$0xff]  }
  0x60   : > { %1235 = vmatprep.mubr.bf16.mxu1 %v3137_v16  ;;  %1815 = vmatprep.mubr.bf16.mxu0 %v3140_v17  ;;  %v3230_v15 = vld [vmem:[%s3616_s27 + $0xf0] ss:$8 sps:$4 sm:$0xff]  }
  0x67   : > { %1236 = vmatmul.mubr.bf16.vlgmr.msra.gmra.mrb[32].mxu1 %v3135_v18  ;;  %1816 = vmatmul.mubr.bf16.vlgmr.msra.gmra.mrb[32].mxu0 %v3138_v19 }
  0x68   : > { %1243 = vmatprep.mubr.bf16.mxu1 %v3141_v20  ;;  %1823 = vmatprep.mubr.bf16.mxu0 %v3143_v21 }
  0x6f   : > { %1244 = vmatmul.mubr.bf16.gmra.mrb[36].mxu1 %v3145_v22  ;;  %1824 = vmatmul.mubr.bf16.gmra.mrb[36].mxu0 %v3146_v23 }
  0x70   : > { %1251 = vmatprep.mubr.bf16.mxu1 %v3147_v24  ;;  %1831 = vmatprep.mubr.bf16.mxu0 %v3149_v25 }
  0x77   : > { %1252 = vmatmul.mubr.bf16.gmra.mrb[40].mxu1 %v3151_v26  ;;  %1832 = vmatmul.mubr.bf16.gmra.mrb[40].mxu0 %v3152_v27 }
  0x78   : > { %1259 = vmatprep.mubr.bf16.mxu1 %v3153_v28  ;;  %1839 = vmatprep.mubr.bf16.mxu0 %v3155_v29 }
  0x7f   : > { %1260 = vmatmul.mubr.bf16.gmra.mrb[44].mxu1 %v3157_v30  ;;  %1840 = vmatmul.mubr.bf16.gmra.mrb[44].mxu0 %v3158_v31 }
  0x80   : > { %1267 = vmatprep.mubr.bf16.mxu1 %v3159_v32  ;;  %1847 = vmatprep.mubr.bf16.mxu0 %v3161_v33 }
  0x87   : > { %1268 = vmatmul.mubr.bf16.gmra.mrb[48].mxu1 %v3163_v34  ;;  %1848 = vmatmul.mubr.bf16.gmra.mrb[48].mxu0 %v3164_v35 }
  0x88   : > { %1275 = vmatprep.mubr.bf16.mxu1 %v3165_v36  ;;  %1855 = vmatprep.mubr.bf16.mxu0 %v3167_v37 }
  0x8f   : > { %1276 = vmatmul.mubr.bf16.gmra.mrb[52].mxu1 %v3169_v38  ;;  %1856 = vmatmul.mubr.bf16.gmra.mrb[52].mxu0 %v3170_v39 }
  0x90   : > { %1283 = vmatprep.mubr.bf16.mxu1 %v3171_v40  ;;  %1863 = vmatprep.mubr.bf16.mxu0 %v3173_v41 }
  0x97   : > { %1284 = vmatmul.mubr.bf16.gmra.mrb[56].mxu1 %v3175_v42  ;;  %1864 = vmatmul.mubr.bf16.gmra.mrb[56].mxu0 %v3176_v43 }
  0x98   : > { %1291 = vmatprep.mubr.bf16.mxu1 %v3177_v44  ;;  %1871 = vmatprep.mubr.bf16.mxu0 %v3179_v45 }
  0x9f   : > { %1292 = vmatmul.mubr.bf16.gmra.mrb[60].mxu1 %v3181_v46  ;;  %1872 = vmatmul.mubr.bf16.gmra.mrb[60].mxu0 %v3182_v47 }
  0xa0   : > { %1299 = vmatprep.mubr.bf16.mxu1 %v3183_v48  ;;  %1879 = vmatprep.mubr.bf16.mxu0 %v3185_v49 }
  0xa7   : > { %1300 = vmatmul.mubr.bf16.gmra.mrb[64].mxu1 %v3187_v50  ;;  %1880 = vmatmul.mubr.bf16.gmra.mrb[64].mxu0 %v3188_v51 }
  0xa8   : > { %1307 = vmatprep.mubr.bf16.mxu1 %v3189_v52  ;;  %1887 = vmatprep.mubr.bf16.mxu0 %v3191_v53 }
  0xaf   : > { %1308 = vmatmul.mubr.bf16.gmra.mrb[68].mxu1 %v3193_v54  ;;  %1888 = vmatmul.mubr.bf16.gmra.mrb[68].mxu0 %v3194_v55 }
  0xb0   : > { %1315 = vmatprep.mubr.bf16.mxu1 %v3195_v56  ;;  %1895 = vmatprep.mubr.bf16.mxu0 %v3197_v57 }
  0xb7   : > { %1316 = vmatmul.mubr.bf16.gmra.mrb[72].mxu1 %v3199_v58  ;;  %1896 = vmatmul.mubr.bf16.gmra.mrb[72].mxu0 %v3200_v59 }
  0xb8   : > { %1323 = vmatprep.mubr.bf16.mxu1 %v3201_v60  ;;  %1903 = vmatprep.mubr.bf16.mxu0 %v3203_v61 }
  0xbf   : > { %1324 = vmatmul.mubr.bf16.gmra.mrb[76].mxu1 %v3205_v62  ;;  %1904 = vmatmul.mubr.bf16.gmra.mrb[76].mxu0 %v3206_v63 }
  0xc0   : > { %1331 = vmatprep.mubr.bf16.mxu1 %v3207_v0  ;;  %1911 = vmatprep.mubr.bf16.mxu0 %v3209_v1 }
  0xc7   : > { %1332 = vmatmul.mubr.bf16.gmra.mrb[80].mxu1 %v3211_v2  ;;  %1912 = vmatmul.mubr.bf16.gmra.mrb[80].mxu0 %v3212_v3 }
  0xc8   : > { %1339 = vmatprep.mubr.bf16.mxu1 %v3213_v4  ;;  %1919 = vmatprep.mubr.bf16.mxu0 %v3215_v5 }
  0xcf   : > { %1340 = vmatmul.mubr.bf16.gmra.mrb[84].mxu1 %v3217_v6  ;;  %1920 = vmatmul.mubr.bf16.gmra.mrb[84].mxu0 %v3218_v7 }
  0xd0   : > { %1347 = vmatprep.mubr.bf16.mxu1 %v3219_v8  ;;  %1927 = vmatprep.mubr.bf16.mxu0 %v3221_v9 }
  0xd7   : > { %1348 = vmatmul.mubr.bf16.gmra.mrb[88].mxu1 %v3223_v10  ;;  %1928 = vmatmul.mubr.bf16.gmra.mrb[88].mxu0 %v3224_v11 }
  0xd8   : > { %1355 = vmatprep.mubr.bf16.mxu1 %v3225_v12  ;;  %1935 = vmatprep.mubr.bf16.mxu0 %v3227_v13 }
  0xdf   : > { %1356 = vmatmul.mubr.bf16.gmra.mrb[92].mxu1 %v3229_v14  ;;  %1936 = vmatmul.mubr.bf16.gmra.mrb[92].mxu0 %v3230_v15 }
  0xfa   : > { %v2679_v16 = vpop.f32.mrb[0].mxu0  ;;  %v2727_v17 = vpop.f32.mrb[0].mxu1 }
  0xfb   : > { %v2680_v18 = vpop.f32.mrb[1].mxu0  ;;  %v2728_v19 = vpop.f32.mrb[1].mxu1 }
  0xfc   : > { %v3692_v20 = vadd.f32 %v2680_v18, %v2679_v16  ;;  %v3694_v21 = vadd.f32 %v2728_v19, %v2727_v17  ;;  %v2682_v22 = vpop.f32.mrb[2].mxu0  ;;  %v2730_v23 = vpop.f32.mrb[2].mxu1 }
  0xfd   : > { %v2683_v24 = vpop.f32.mrb[3].mxu0  ;;  %v2731_v25 = vpop.f32.mrb[3].mxu1 }
  0xfe   : > { %v3696_v26 = vadd.f32 %v2683_v24, %v2682_v22  ;;  %v3698_v27 = vadd.f32 %v2731_v25, %v2730_v23 }
 0x102   : > { %v2685_v28 = vpop.f32.mrb[4].mxu0  ;;  %v2733_v29 = vpop.f32.mrb[4].mxu1 }
 0x103   : > { %v2686_v30 = vpop.f32.mrb[5].mxu0  ;;  %v2734_v31 = vpop.f32.mrb[5].mxu1 }
 0x104   : > { %v3700_v32 = vadd.f32 %v2686_v30, %v2685_v28  ;;  %v3702_v33 = vadd.f32 %v2734_v31, %v2733_v29  ;;  %v2688_v34 = vpop.f32.mrb[6].mxu0  ;;  %v2736_v35 = vpop.f32.mrb[6].mxu1 }
 0x105   : > { %v2689_v36 = vpop.f32.mrb[7].mxu0  ;;  %v2737_v37 = vpop.f32.mrb[7].mxu1 }
 0x106   : > { %v3704_v38 = vadd.f32 %v2689_v36, %v2688_v34  ;;  %v3706_v39 = vadd.f32 %v2737_v37, %v2736_v35 }
 0x10a   : > { %v2691_v40 = vpop.f32.mrb[8].mxu0  ;;  %v2739_v41 = vpop.f32.mrb[8].mxu1 }
 0x10b   : > { %v2692_v42 = vpop.f32.mrb[9].mxu0  ;;  %v2740_v43 = vpop.f32.mrb[9].mxu1 }
 0x10c   : > { %v3708_v44 = vadd.f32 %v2692_v42, %v2691_v40  ;;  %v3710_v45 = vadd.f32 %v2740_v43, %v2739_v41  ;;  %v2694_v46 = vpop.f32.mrb[10].mxu0  ;;  %v2742_v47 = vpop.f32.mrb[10].mxu1 }
 0x10d   : > { %v2695_v48 = vpop.f32.mrb[11].mxu0  ;;  %v2743_v49 = vpop.f32.mrb[11].mxu1 }
 0x10e   : > { %v3712_v50 = vadd.f32 %v2695_v48, %v2694_v46  ;;  %v3714_v51 = vadd.f32 %v2743_v49, %v2742_v47 }
 0x112   : > { %v2697_v52 = vpop.f32.mrb[12].mxu0  ;;  %v2745_v53 = vpop.f32.mrb[12].mxu1 }
 0x113   : > { %v2698_v54 = vpop.f32.mrb[13].mxu0  ;;  %v2746_v55 = vpop.f32.mrb[13].mxu1 }
 0x114   : > { %v3716_v56 = vadd.f32 %v2698_v54, %v2697_v52  ;;  %v3718_v57 = vadd.f32 %v2746_v55, %v2745_v53  ;;  %v2700_v58 = vpop.f32.mrb[14].mxu0  ;;  %v2748_v59 = vpop.f32.mrb[14].mxu1 }
 0x115   : > { %v2701_v60 = vpop.f32.mrb[15].mxu0  ;;  %v2749_v61 = vpop.f32.mrb[15].mxu1 }
 0x116   : > { %v3720_v62 = vadd.f32 %v2701_v60, %v2700_v58  ;;  %v3722_v63 = vadd.f32 %v2749_v61, %v2748_v59 }
 0x11a   : > { %v2703_v0 = vpop.f32.mrb[16].mxu0  ;;  %v2751_v1 = vpop.f32.mrb[16].mxu1 }
 0x11b   : > { %v2704_v2 = vpop.f32.mrb[17].mxu0  ;;  %v2752_v3 = vpop.f32.mrb[17].mxu1 }
 0x11c   : > { %v3724_v4 = vadd.f32 %v2704_v2, %v2703_v0  ;;  %v3726_v5 = vadd.f32 %v2752_v3, %v2751_v1  ;;  %v2706_v6 = vpop.f32.mrb[18].mxu0  ;;  %v2754_v7 = vpop.f32.mrb[18].mxu1  ;;  %v2015_v0 = vlaneseq }
 0x11d   : > { %v2707_v8 = vpop.f32.mrb[19].mxu0  ;;  %v2755_v9 = vpop.f32.mrb[19].mxu1 }
 0x11e   : > { %v3728_v10 = vadd.f32 %v2707_v8, %v2706_v6  ;;  %v3730_v11 = vadd.f32 %v2755_v9, %v2754_v7 }
 0x122   : > { %v2709_v12 = vpop.f32.mrb[20].mxu0  ;;  %v2757_v13 = vpop.f32.mrb[20].mxu1 }
 0x123   : > { %v2710_v14 = vpop.f32.mrb[21].mxu0  ;;  %v2758_v15 = vpop.f32.mrb[21].mxu1 }
 0x124   : > { %v3732_v16 = vadd.f32 %v2710_v14, %v2709_v12  ;;  %v3734_v17 = vadd.f32 %v2758_v15, %v2757_v13  ;;  %v2712_v18 = vpop.f32.mrb[22].mxu0  ;;  %v2760_v19 = vpop.f32.mrb[22].mxu1  ;;  %v3756_v15 = vand.u32 127, %v2015_v0 }
 0x125   : > { %v2713_v22 = vpop.f32.mrb[23].mxu0  ;;  %v2761_v23 = vpop.f32.mrb[23].mxu1 }
 0x126   : > { %v3736_v24 = vadd.f32 %v2713_v22, %v2712_v18  ;;  %v3738_v25 = vadd.f32 %v2761_v23, %v2760_v19  ;;  %v3762_v23 = vld [vmem:[%s4201_s5] ss:$0 sm:$0xff]  ;;  %vm2017_vm0 = vcmp.lt.s32.totalorder %v3756_v15, 16 }
 0x12a   : > { %v2715_v28 = vpop.f32.mrb[24].mxu0  ;;  %v2763_v29 = vpop.f32.mrb[24].mxu1 }
 0x12b   : > { %v2716_v30 = vpop.f32.mrb[25].mxu0  ;;  %v2764_v31 = vpop.f32.mrb[25].mxu1 }
 0x12c   : > { %v3740_v34 = vadd.f32 %v2716_v30, %v2715_v28  ;;  %v3742_v35 = vadd.f32 %v2764_v31, %v2763_v29  ;;  %v2718_v36 = vpop.f32.mrb[26].mxu0  ;;  %v2766_v37 = vpop.f32.mrb[26].mxu1 }
 0x12d   : > { %v2719_v40 = vpop.f32.mrb[27].mxu0  ;;  %v2767_v41 = vpop.f32.mrb[27].mxu1 }
 0x12e   : > { %v3744_v42 = vadd.f32 %v2719_v40, %v2718_v36  ;;  %v3746_v43 = vadd.f32 %v2767_v41, %v2766_v37 }
 0x132   : > { %v2721_v46 = vpop.f32.mrb[28].mxu0  ;;  %v2769_v47 = vpop.f32.mrb[28].mxu1 }
 0x133   : > { %v2722_v48 = vpop.f32.mrb[29].mxu0  ;;  %v2770_v49 = vpop.f32.mrb[29].mxu1 }
 0x134   : > { %v3748_v52 = vadd.f32 %v2722_v48, %v2721_v46  ;;  %v3750_v53 = vadd.f32 %v2770_v49, %v2769_v47  ;;  %v2724_v54 = vpop.f32.mrb[30].mxu0  ;;  %v2772_v55 = vpop.f32.mrb[30].mxu1 }
 0x135   : > { %v2725_v58 = vpop.f32.mrb[31].mxu0  ;;  %v2773_v59 = vpop.f32.mrb[31].mxu1 }
 0x136   : > { %v3752_v60 = vadd.f32 %v2725_v58, %v2724_v54  ;;  %v3754_v61 = vadd.f32 %v2773_v59, %v2772_v55 }
 0x13a   : > { %v2791_v1 = vpop.f32.mrb[32].mxu1  ;;  %v2903_v2 = vpop.f32.mrb[32].mxu0 }
 0x13b   : > { %v2792_v3 = vpop.f32.mrb[33].mxu1  ;;  %v2904_v6 = vpop.f32.mrb[33].mxu0 }
 0x13c   : > { %v2793_v7 = vadd.f32 %v2792_v3, %v2791_v1  ;;  %v2905_v8 = vadd.f32 %v2904_v6, %v2903_v2  ;;  %v2794_v9 = vpop.f32.mrb[34].mxu1  ;;  %v2906_v12 = vpop.f32.mrb[34].mxu0 }
 0x13d   : > { %v2795_v13 = vpop.f32.mrb[35].mxu1  ;;  %v2907_v14 = vpop.f32.mrb[35].mxu0 }
 0x13e   : > { %v1238_v18 = vadd.f32 %v2793_v7, %v3692_v20  ;;  %v2796_v19 = vadd.f32 %v2795_v13, %v2794_v9  ;;  %v2908_v22 = vadd.f32 %v2907_v14, %v2906_v12 }
 0x140   : > { %v1944_v28 = vadd.f32 %v2905_v8, %v1238_v18  ;;  %v1241_v29 = vadd.f32 %v2796_v19, %v3696_v26 }
 0x142   : > { %v1945_v30 = vadd.f32 %v2908_v22, %v1241_v29  ;;  %v2797_v31 = vpop.f32.mrb[36].mxu1  ;;  %v2909_v36 = vpop.f32.mrb[36].mxu0  ;;  %v1983_v37 = vadd.f32 %v3762_v23, %v1944_v28 }
 0x143   : > { %v2798_v40 = vpop.f32.mrb[37].mxu1  ;;  %v2910_v41 = vpop.f32.mrb[37].mxu0 }
 0x144   : > { %v2799_v20 = vadd.f32 %v2798_v40, %v2797_v31  ;;  %v2911_v46 = vadd.f32 %v2910_v41, %v2909_v36  ;;  %v2800_v47 = vpop.f32.mrb[38].mxu1  ;;  %v2912_v48 = vpop.f32.mrb[38].mxu0  ;;  %v3769_v49 = vsel %vm2017_vm0, %v1983_v37, -inf  ;;  %v1984_v54 = vadd.f32 %v3762_v23, %v1945_v30 }
 0x145   : > { %v2801_v26 = vpop.f32.mrb[39].mxu1  ;;  %v2913_v55 = vpop.f32.mrb[39].mxu0  ;;  %2050 = vmax.xlane.f32.xlu0 %v3769_v49 }
 0x146   : > { %v1246_v58 = vadd.f32 %v2799_v20, %v3700_v32  ;;  %v2802_v59 = vadd.f32 %v2801_v26, %v2800_v47  ;;  %v2914_v0 = vadd.f32 %v2913_v55, %v2912_v48  ;;  %v3777_v3 = vsel %vm2017_vm0, %v1984_v54, -inf }
 0x148   : > { %v1946_v1 = vadd.f32 %v2911_v46, %v1246_v58  ;;  %v1249_v2 = vadd.f32 %v2802_v59, %v3704_v38 }
 0x149   : > { %2052 = vmax.xlane.f32.xlu0 %v3777_v3 }
 0x14a   : > { %v1947_v6 = vadd.f32 %v2914_v0, %v1249_v2  ;;  %v2803_v7 = vpop.f32.mrb[40].mxu1  ;;  %v2915_v8 = vpop.f32.mrb[40].mxu0  ;;  %v1985_v9 = vadd.f32 %v3762_v23, %v1946_v1 }
 0x14b   : > { %v2804_v12 = vpop.f32.mrb[41].mxu1  ;;  %v2916_v13 = vpop.f32.mrb[41].mxu0 }
 0x14c   : > { %v2805_v14 = vadd.f32 %v2804_v12, %v2803_v7  ;;  %v2917_v32 = vadd.f32 %v2916_v13, %v2915_v8  ;;  %v2806_v18 = vpop.f32.mrb[42].mxu1  ;;  %v2918_v19 = vpop.f32.mrb[42].mxu0  ;;  %v3783_v38 = vsel %vm2017_vm0, %v1985_v9, -inf  ;;  %v1986_v22 = vadd.f32 %v3762_v23, %v1947_v6 }
 0x14d   : > { %v2807_v28 = vpop.f32.mrb[43].mxu1  ;;  %v2919_v29 = vpop.f32.mrb[43].mxu0  ;;  %2054 = vmax.xlane.f32.xlu1 %v3783_v38 }
 0x14e   : > { %v1254_v30 = vadd.f32 %v2805_v14, %v3708_v44  ;;  %v2808_v31 = vadd.f32 %v2807_v28, %v2806_v18  ;;  %v2920_v36 = vadd.f32 %v2919_v29, %v2918_v19  ;;  %v3791_v41 = vsel %vm2017_vm0, %v1986_v22, -inf }
 0x150   : > { %v1948_v37 = vadd.f32 %v2917_v32, %v1254_v30  ;;  %v1257_v40 = vadd.f32 %v2808_v31, %v3712_v50 }
 0x151   : > { %2056 = vmax.xlane.f32.xlu1 %v3791_v41 }
 0x152   : > { %v1949_v20 = vadd.f32 %v2920_v36, %v1257_v40  ;;  %v2809_v46 = vpop.f32.mrb[44].mxu1  ;;  %v2921_v47 = vpop.f32.mrb[44].mxu0  ;;  %v1987_v48 = vadd.f32 %v3762_v23, %v1948_v37 }
 0x153   : > { %v2810_v54 = vpop.f32.mrb[45].mxu1  ;;  %v2922_v26 = vpop.f32.mrb[45].mxu0 }
 0x154   : > { %v2811_v55 = vadd.f32 %v2810_v54, %v2809_v46  ;;  %v2923_v44 = vadd.f32 %v2922_v26, %v2921_v47  ;;  %v2812_v58 = vpop.f32.mrb[46].mxu1  ;;  %v2924_v59 = vpop.f32.mrb[46].mxu0  ;;  %v3797_v50 = vsel %vm2017_vm0, %v1987_v48, -inf  ;;  %v1988_v0 = vadd.f32 %v3762_v23, %v1949_v20 }
 0x155   : > { %v2813_v1 = vpop.f32.mrb[47].mxu1  ;;  %v2925_v2 = vpop.f32.mrb[47].mxu0  ;;  %2058 = vmax.xlane.f32.xlu0 %v3797_v50 }
 0x156   : > { %v1262_v6 = vadd.f32 %v2811_v55, %v3716_v56  ;;  %v2814_v7 = vadd.f32 %v2813_v1, %v2812_v58  ;;  %v2926_v8 = vadd.f32 %v2925_v2, %v2924_v59  ;;  %v3804_v9 = vsel %vm2017_vm0, %v1988_v0, -inf }
 0x157   : > { %2060 = vmax.xlane.f32.xlu1 %v3804_v9 }
 0x158   : > { %v1950_v12 = vadd.f32 %v2923_v44, %v1262_v6  ;;  %v1265_v13 = vadd.f32 %v2814_v7, %v3720_v62 }
 0x15a   : > { %v1951_v14 = vadd.f32 %v2926_v8, %v1265_v13  ;;  %v2815_v32 = vpop.f32.mrb[48].mxu1  ;;  %v2927_v18 = vpop.f32.mrb[48].mxu0  ;;  %v1989_v19 = vadd.f32 %v3762_v23, %v1950_v12 }
 0x15b   : > { %v2816_v22 = vpop.f32.mrb[49].mxu1  ;;  %v2928_v28 = vpop.f32.mrb[49].mxu0 }
 0x15c   : > { %v2817_v29 = vadd.f32 %v2816_v22, %v2815_v32  ;;  %v2929_v56 = vadd.f32 %v2928_v28, %v2927_v18  ;;  %v2818_v30 = vpop.f32.mrb[50].mxu1  ;;  %v2930_v31 = vpop.f32.mrb[50].mxu0  ;;  %v3811_v36 = vsel %vm2017_vm0, %v1989_v19, -inf  ;;  %v1990_v37 = vadd.f32 %v3762_v23, %v1951_v14 }
 0x15d   : > { %v2819_v40 = vpop.f32.mrb[51].mxu1  ;;  %v2931_v20 = vpop.f32.mrb[51].mxu0  ;;  %2062 = vmax.xlane.f32.xlu0 %v3811_v36 }
 0x15e   : > { %v1270_v62 = vadd.f32 %v2817_v29, %v3724_v4  ;;  %v2820_v46 = vadd.f32 %v2819_v40, %v2818_v30  ;;  %v2932_v47 = vadd.f32 %v2931_v20, %v2930_v31  ;;  %v3818_v48 = vsel %vm2017_vm0, %v1990_v37, -inf }
 0x15f   : > { %2064 = vmax.xlane.f32.xlu1 %v3818_v48 }
 0x160   : > { %v1952_v54 = vadd.f32 %v2929_v56, %v1270_v62  ;;  %v1273_v26 = vadd.f32 %v2820_v46, %v3728_v10 }
 0x162   : > { %v1953_v55 = vadd.f32 %v2932_v47, %v1273_v26  ;;  %v2821_v44 = vpop.f32.mrb[52].mxu1  ;;  %v2933_v58 = vpop.f32.mrb[52].mxu0  ;;  %v1991_v59 = vadd.f32 %v3762_v23, %v1952_v54 }
 0x163   : > { %v2822_v0 = vpop.f32.mrb[53].mxu1  ;;  %v2934_v1 = vpop.f32.mrb[53].mxu0 }
 0x164   : > { %v2823_v2 = vadd.f32 %v2822_v0, %v2821_v44  ;;  %v2935_v4 = vadd.f32 %v2934_v1, %v2933_v58  ;;  %v2824_v6 = vpop.f32.mrb[54].mxu1  ;;  %v2936_v7 = vpop.f32.mrb[54].mxu0  ;;  %v3825_v8 = vsel %vm2017_vm0, %v1991_v59, -inf  ;;  %v1992_v12 = vadd.f32 %v3762_v23, %v1953_v55 }
 0x165   : > { %v2825_v13 = vpop.f32.mrb[55].mxu1  ;;  %v2937_v14 = vpop.f32.mrb[55].mxu0  ;;  %2066 = vmax.xlane.f32.xlu0 %v3825_v8 }
 0x166   : > { %v1278_v10 = vadd.f32 %v2823_v2, %v3732_v16  ;;  %v2826_v32 = vadd.f32 %v2825_v13, %v2824_v6  ;;  %v2938_v18 = vadd.f32 %v2937_v14, %v2936_v7  ;;  %v3832_v19 = vsel %vm2017_vm0, %v1992_v12, -inf }
 0x167   : > { %2068 = vmax.xlane.f32.xlu1 %v3832_v19 }
 0x168   : > { %v1954_v22 = vadd.f32 %v2935_v4, %v1278_v10  ;;  %v1281_v28 = vadd.f32 %v2826_v32, %v3736_v24 }
 0x16a   : > { %v1955_v29 = vadd.f32 %v2938_v18, %v1281_v28  ;;  %v2827_v56 = vpop.f32.mrb[56].mxu1  ;;  %v2939_v30 = vpop.f32.mrb[56].mxu0  ;;  %v1993_v31 = vadd.f32 %v3762_v23, %v1954_v22 }
 0x16b   : > { %v2828_v37 = vpop.f32.mrb[57].mxu1  ;;  %v2940_v40 = vpop.f32.mrb[57].mxu0 }
 0x16c   : > { %v2829_v20 = vadd.f32 %v2828_v37, %v2827_v56  ;;  %v2941_v16 = vadd.f32 %v2940_v40, %v2939_v30  ;;  %v2830_v62 = vpop.f32.mrb[58].mxu1  ;;  %v2942_v46 = vpop.f32.mrb[58].mxu0  ;;  %v3839_v47 = vsel %vm2017_vm0, %v1993_v31, -inf  ;;  %v1994_v54 = vadd.f32 %v3762_v23, %v1955_v29 }
 0x16d   : > { %v2831_v26 = vpop.f32.mrb[59].mxu1  ;;  %v2943_v55 = vpop.f32.mrb[59].mxu0  ;;  %2070 = vmax.xlane.f32.xlu0 %v3839_v47 }
 0x16e   : > { %v1286_v24 = vadd.f32 %v2829_v20, %v3740_v34  ;;  %v2832_v44 = vadd.f32 %v2831_v26, %v2830_v62  ;;  %v2944_v58 = vadd.f32 %v2943_v55, %v2942_v46  ;;  %v3846_v59 = vsel %vm2017_vm0, %v1994_v54, -inf }
 0x16f   : > { %2072 = vmax.xlane.f32.xlu1 %v3846_v59 }
 0x170   : > { %v1956_v0 = vadd.f32 %v2941_v16, %v1286_v24  ;;  %v1289_v1 = vadd.f32 %v2832_v44, %v3744_v42 }
 0x172   : > { %v1957_v2 = vadd.f32 %v2944_v58, %v1289_v1  ;;  %v2833_v4 = vpop.f32.mrb[60].mxu1  ;;  %v2945_v6 = vpop.f32.mrb[60].mxu0  ;;  %v1995_v7 = vadd.f32 %v3762_v23, %v1956_v0 }
 0x173   : > { %v2834_v12 = vpop.f32.mrb[61].mxu1  ;;  %v2946_v13 = vpop.f32.mrb[61].mxu0 }
 0x174   : > { %v2835_v14 = vadd.f32 %v2834_v12, %v2833_v4  ;;  %v2947_v34 = vadd.f32 %v2946_v13, %v2945_v6  ;;  %v2836_v10 = vpop.f32.mrb[62].mxu1  ;;  %v2948_v32 = vpop.f32.mrb[62].mxu0  ;;  %v3853_v18 = vsel %vm2017_vm0, %v1995_v7, -inf  ;;  %v1996_v22 = vadd.f32 %v3762_v23, %v1957_v2 }
 0x175   : > { %v2837_v28 = vpop.f32.mrb[63].mxu1  ;;  %v2949_v29 = vpop.f32.mrb[63].mxu0  ;;  %2074 = vmax.xlane.f32.xlu0 %v3853_v18 }
 0x176   : > { %v1294_v42 = vadd.f32 %v2835_v14, %v3748_v52  ;;  %v2838_v56 = vadd.f32 %v2837_v28, %v2836_v10  ;;  %v2950_v30 = vadd.f32 %v2949_v29, %v2948_v32  ;;  %v3860_v31 = vsel %vm2017_vm0, %v1996_v22, -inf }
 0x177   : > { %2076 = vmax.xlane.f32.xlu1 %v3860_v31 }
 0x178   : > { %v1958_v37 = vadd.f32 %v2947_v34, %v1294_v42  ;;  %v1297_v40 = vadd.f32 %v2838_v56, %v3752_v60 }
 0x17a   : > { %v1959_v20 = vadd.f32 %v2950_v30, %v1297_v40  ;;  %v2839_v16 = vpop.f32.mrb[64].mxu1  ;;  %v2951_v62 = vpop.f32.mrb[64].mxu0  ;;  %v1997_v46 = vadd.f32 %v3762_v23, %v1958_v37 }
 0x17b   : > { %v2840_v54 = vpop.f32.mrb[65].mxu1  ;;  %v2952_v26 = vpop.f32.mrb[65].mxu0 }
 0x17c   : > { %v2841_v55 = vadd.f32 %v2840_v54, %v2839_v16  ;;  %v2953_v52 = vadd.f32 %v2952_v26, %v2951_v62  ;;  %v2842_v24 = vpop.f32.mrb[66].mxu1  ;;  %v2954_v44 = vpop.f32.mrb[66].mxu0  ;;  %v3867_v58 = vsel %vm2017_vm0, %v1997_v46, -inf  ;;  %v1998_v0 = vadd.f32 %v3762_v23, %v1959_v20 }
 0x17d   : > { %v2843_v1 = vpop.f32.mrb[67].mxu1  ;;  %v2955_v2 = vpop.f32.mrb[67].mxu0  ;;  %2078 = vmax.xlane.f32.xlu0 %v3867_v58 }
 0x17e   : > { %v1302_v60 = vadd.f32 %v2841_v55, %v3694_v21  ;;  %v2844_v4 = vadd.f32 %v2843_v1, %v2842_v24  ;;  %v2956_v6 = vadd.f32 %v2955_v2, %v2954_v44  ;;  %v3874_v7 = vsel %vm2017_vm0, %v1998_v0, -inf }
 0x17f   : > { %2080 = vmax.xlane.f32.xlu1 %v3874_v7 }
 0x180   : > { %v1960_v12 = vadd.f32 %v2953_v52, %v1302_v60  ;;  %v1305_v13 = vadd.f32 %v2844_v4, %v3698_v27 }
 0x182   : > { %v1961_v14 = vadd.f32 %v2956_v6, %v1305_v13  ;;  %v2845_v34 = vpop.f32.mrb[68].mxu1  ;;  %v2957_v10 = vpop.f32.mrb[68].mxu0  ;;  %v1999_v32 = vadd.f32 %v3762_v23, %v1960_v12 }
 0x183   : > { %v2846_v22 = vpop.f32.mrb[69].mxu1  ;;  %v2958_v28 = vpop.f32.mrb[69].mxu0 }
 0x184   : > { %v2847_v29 = vadd.f32 %v2846_v22, %v2845_v34  ;;  %v2959_v21 = vadd.f32 %v2958_v28, %v2957_v10  ;;  %v2848_v42 = vpop.f32.mrb[70].mxu1  ;;  %v2960_v56 = vpop.f32.mrb[70].mxu0  ;;  %v3881_v30 = vsel %vm2017_vm0, %v1999_v32, -inf  ;;  %v2000_v37 = vadd.f32 %v3762_v23, %v1961_v14 }
 0x185   : > { %v2849_v40 = vpop.f32.mrb[71].mxu1  ;;  %v2961_v20 = vpop.f32.mrb[71].mxu0  ;;  %2082 = vmax.xlane.f32.xlu0 %v3881_v30 }
 0x186   : > { %v1310_v27 = vadd.f32 %v2847_v29, %v3702_v33  ;;  %v2850_v16 = vadd.f32 %v2849_v40, %v2848_v42  ;;  %v2962_v62 = vadd.f32 %v2961_v20, %v2960_v56  ;;  %v3888_v46 = vsel %vm2017_vm0, %v2000_v37, -inf }
 0x187   : > { %2084 = vmax.xlane.f32.xlu1 %v3888_v46 }
 0x188   : > { %v1962_v54 = vadd.f32 %v2959_v21, %v1310_v27  ;;  %v1313_v26 = vadd.f32 %v2850_v16, %v3706_v39 }
 0x18a   : > { %v1963_v55 = vadd.f32 %v2962_v62, %v1313_v26  ;;  %v2851_v52 = vpop.f32.mrb[72].mxu1  ;;  %v2963_v24 = vpop.f32.mrb[72].mxu0  ;;  %v2001_v44 = vadd.f32 %v3762_v23, %v1962_v54 }
 0x18b   : > { %v2852_v0 = vpop.f32.mrb[73].mxu1  ;;  %v2964_v1 = vpop.f32.mrb[73].mxu0 }
 0x18c   : > { %v2853_v2 = vadd.f32 %v2852_v0, %v2851_v52  ;;  %v2965_v33 = vadd.f32 %v2964_v1, %v2963_v24  ;;  %v2854_v60 = vpop.f32.mrb[74].mxu1  ;;  %v2966_v4 = vpop.f32.mrb[74].mxu0  ;;  %v3895_v6 = vsel %vm2017_vm0, %v2001_v44, -inf  ;;  %v2002_v12 = vadd.f32 %v3762_v23, %v1963_v55 }
 0x18d   : > { %v2855_v13 = vpop.f32.mrb[75].mxu1  ;;  %v2967_v14 = vpop.f32.mrb[75].mxu0  ;;  %2086 = vmax.xlane.f32.xlu0 %v3895_v6 }
 0x18e   : > { %v1318_v39 = vadd.f32 %v2853_v2, %v3710_v45  ;;  %v2856_v34 = vadd.f32 %v2855_v13, %v2854_v60  ;;  %v2968_v10 = vadd.f32 %v2967_v14, %v2966_v4  ;;  %v3902_v32 = vsel %vm2017_vm0, %v2002_v12, -inf }
 0x18f   : > { %2088 = vmax.xlane.f32.xlu1 %v3902_v32 }
 0x190   : > { %v1964_v22 = vadd.f32 %v2965_v33, %v1318_v39  ;;  %v1321_v28 = vadd.f32 %v2856_v34, %v3714_v51 }
 0x192   : > { %v1965_v29 = vadd.f32 %v2968_v10, %v1321_v28  ;;  %v2857_v21 = vpop.f32.mrb[76].mxu1  ;;  %v2969_v42 = vpop.f32.mrb[76].mxu0  ;;  %v2003_v56 = vadd.f32 %v3762_v23, %v1964_v22 }
 0x193   : > { %v2858_v37 = vpop.f32.mrb[77].mxu1  ;;  %v2970_v40 = vpop.f32.mrb[77].mxu0 }
 0x194   : > { %v2859_v20 = vadd.f32 %v2858_v37, %v2857_v21  ;;  %v2971_v45 = vadd.f32 %v2970_v40, %v2969_v42  ;;  %v2860_v27 = vpop.f32.mrb[78].mxu1  ;;  %v2972_v16 = vpop.f32.mrb[78].mxu0  ;;  %v3909_v62 = vsel %vm2017_vm0, %v2003_v56, -inf  ;;  %v2004_v54 = vadd.f32 %v3762_v23, %v1965_v29 }
 0x195   : > { %v2861_v26 = vpop.f32.mrb[79].mxu1  ;;  %v2973_v55 = vpop.f32.mrb[79].mxu0  ;;  %2090 = vmax.xlane.f32.xlu0 %v3909_v62 }
 0x196   : > { %v1326_v51 = vadd.f32 %v2859_v20, %v3718_v57  ;;  %v2862_v52 = vadd.f32 %v2861_v26, %v2860_v27  ;;  %v2974_v24 = vadd.f32 %v2973_v55, %v2972_v16  ;;  %v3916_v44 = vsel %vm2017_vm0, %v2004_v54, -inf }
 0x197   : > { %2092 = vmax.xlane.f32.xlu1 %v3916_v44 }
 0x198   : > { %v1966_v0 = vadd.f32 %v2971_v45, %v1326_v51  ;;  %v1329_v1 = vadd.f32 %v2862_v52, %v3722_v63 }
 0x19a   : > { %v1967_v2 = vadd.f32 %v2974_v24, %v1329_v1  ;;  %v2863_v33 = vpop.f32.mrb[80].mxu1  ;;  %v2975_v60 = vpop.f32.mrb[80].mxu0  ;;  %v2005_v4 = vadd.f32 %v3762_v23, %v1966_v0 }
 0x19b   : > { %v2864_v12 = vpop.f32.mrb[81].mxu1  ;;  %v2976_v13 = vpop.f32.mrb[81].mxu0 }
 0x19c   : > { %v2865_v14 = vadd.f32 %v2864_v12, %v2863_v33  ;;  %v2977_v57 = vadd.f32 %v2976_v13, %v2975_v60  ;;  %v2866_v39 = vpop.f32.mrb[82].mxu1  ;;  %v2978_v34 = vpop.f32.mrb[82].mxu0  ;;  %v3923_v10 = vsel %vm2017_vm0, %v2005_v4, -inf  ;;  %v2006_v22 = vadd.f32 %v3762_v23, %v1967_v2 }
 0x19d   : > { %v2867_v28 = vpop.f32.mrb[83].mxu1  ;;  %v2979_v29 = vpop.f32.mrb[83].mxu0  ;;  %2094 = vmax.xlane.f32.xlu0 %v3923_v10 }
 0x19e   : > { %v1334_v63 = vadd.f32 %v2865_v14, %v3726_v5  ;;  %v2868_v21 = vadd.f32 %v2867_v28, %v2866_v39  ;;  %v2980_v42 = vadd.f32 %v2979_v29, %v2978_v34  ;;  %v3930_v56 = vsel %vm2017_vm0, %v2006_v22, -inf }
 0x19f   : > { %2096 = vmax.xlane.f32.xlu1 %v3930_v56 }
 0x1a0   : > { %v1968_v37 = vadd.f32 %v2977_v57, %v1334_v63  ;;  %v1337_v40 = vadd.f32 %v2868_v21, %v3730_v11 }
 0x1a2   : > { %v1969_v20 = vadd.f32 %v2980_v42, %v1337_v40  ;;  %v2869_v45 = vpop.f32.mrb[84].mxu1  ;;  %v2981_v27 = vpop.f32.mrb[84].mxu0  ;;  %v2007_v16 = vadd.f32 %v3762_v23, %v1968_v37 }
 0x1a3   : > { %v2870_v54 = vpop.f32.mrb[85].mxu1  ;;  %v2982_v26 = vpop.f32.mrb[85].mxu0 }
 0x1a4   : > { %v2871_v55 = vadd.f32 %v2870_v54, %v2869_v45  ;;  %v2983_v5 = vadd.f32 %v2982_v26, %v2981_v27  ;;  %v2872_v51 = vpop.f32.mrb[86].mxu1  ;;  %v2984_v52 = vpop.f32.mrb[86].mxu0  ;;  %v3937_v24 = vsel %vm2017_vm0, %v2007_v16, -inf  ;;  %v2008_v0 = vadd.f32 %v3762_v23, %v1969_v20 }
 0x1a5   : > { %v2873_v1 = vpop.f32.mrb[87].mxu1  ;;  %v2985_v2 = vpop.f32.mrb[87].mxu0  ;;  %2098 = vmax.xlane.f32.xlu0 %v3937_v24 }
 0x1a6   : > { %v1342_v11 = vadd.f32 %v2871_v55, %v3734_v17  ;;  %v2874_v33 = vadd.f32 %v2873_v1, %v2872_v51  ;;  %v2986_v60 = vadd.f32 %v2985_v2, %v2984_v52  ;;  %v3944_v4 = vsel %vm2017_vm0, %v2008_v0, -inf }
 0x1a7   : > { %2100 = vmax.xlane.f32.xlu1 %v3944_v4 }
 0x1a8   : > { %v1970_v12 = vadd.f32 %v2983_v5, %v1342_v11  ;;  %v1345_v13 = vadd.f32 %v2874_v33, %v3738_v25 }
 0x1aa   : > { %v1971_v14 = vadd.f32 %v2986_v60, %v1345_v13  ;;  %v2875_v57 = vpop.f32.mrb[88].mxu1  ;;  %v2987_v39 = vpop.f32.mrb[88].mxu0  ;;  %v2009_v34 = vadd.f32 %v3762_v23, %v1970_v12 }
 0x1ab   : > { %v2876_v22 = vpop.f32.mrb[89].mxu1  ;;  %v2988_v28 = vpop.f32.mrb[89].mxu0 }
 0x1ac   : > { %v2877_v29 = vadd.f32 %v2876_v22, %v2875_v57  ;;  %v2989_v17 = vadd.f32 %v2988_v28, %v2987_v39  ;;  %v2878_v63 = vpop.f32.mrb[90].mxu1  ;;  %v2990_v21 = vpop.f32.mrb[90].mxu0  ;;  %v3951_v42 = vsel %vm2017_vm0, %v2009_v34, -inf  ;;  %v2010_v37 = vadd.f32 %v3762_v23, %v1971_v14 }
 0x1ad   : > { %v2879_v40 = vpop.f32.mrb[91].mxu1  ;;  %v2991_v20 = vpop.f32.mrb[91].mxu0  ;;  %2102 = vmax.xlane.f32.xlu0 %v3951_v42 }
 0x1ae   : > { %v1350_v25 = vadd.f32 %v2877_v29, %v3742_v35  ;;  %v2880_v45 = vadd.f32 %v2879_v40, %v2878_v63  ;;  %v2992_v27 = vadd.f32 %v2991_v20, %v2990_v21  ;;  %v3958_v16 = vsel %vm2017_vm0, %v2010_v37, -inf }
 0x1af   : > { %2104 = vmax.xlane.f32.xlu1 %v3958_v16 }
 0x1b0   : > { %v1972_v54 = vadd.f32 %v2989_v17, %v1350_v25  ;;  %v1353_v26 = vadd.f32 %v2880_v45, %v3746_v43 }
 0x1b2   : > { %v1973_v55 = vadd.f32 %v2992_v27, %v1353_v26  ;;  %v2881_v5 = vpop.f32.mrb[92].mxu1  ;;  %v2993_v51 = vpop.f32.mrb[92].mxu0  ;;  %v2011_v52 = vadd.f32 %v3762_v23, %v1972_v54 }
 0x1b3   : > { %v2882_v0 = vpop.f32.mrb[93].mxu1  ;;  %v2994_v1 = vpop.f32.mrb[93].mxu0 }
 0x1b4   : > { %v2883_v2 = vadd.f32 %v2882_v0, %v2881_v5  ;;  %v2995_v35 = vadd.f32 %v2994_v1, %v2993_v51  ;;  %v2884_v11 = vpop.f32.mrb[94].mxu1  ;;  %v2996_v33 = vpop.f32.mrb[94].mxu0  ;;  %v3965_v60 = vsel %vm2017_vm0, %v2011_v52, -inf  ;;  %v2012_v12 = vadd.f32 %v3762_v23, %v1973_v55 }
 0x1b5   : > { %v2885_v13 = vpop.f32.mrb[95].mxu1  ;;  %v2997_v14 = vpop.f32.mrb[95].mxu0  ;;  %2106 = vmax.xlane.f32.xlu0 %v3965_v60 }
 0x1b6   : > { %v1358_v43 = vadd.f32 %v2883_v2, %v3750_v53  ;;  %v2886_v57 = vadd.f32 %v2885_v13, %v2884_v11  ;;  %v2998_v39 = vadd.f32 %v2997_v14, %v2996_v33  ;;  %v3972_v34 = vsel %vm2017_vm0, %v2012_v12, -inf }
 0x1b7   : > { %2108 = vmax.xlane.f32.xlu1 %v3972_v34 }
 0x1b8   : > { %v1974_v22 = vadd.f32 %v2995_v35, %v1358_v43  ;;  %v1361_v28 = vadd.f32 %v2886_v57, %v3754_v61 }
 0x1ba   : > { %v1975_v29 = vadd.f32 %v2998_v39, %v1361_v28  ;;  %v2013_v17 = vadd.f32 %v3762_v23, %v1974_v22 }
 0x1bc   : > { %v3979_v63 = vsel %vm2017_vm0, %v2013_v17, -inf  ;;  %v2014_v53 = vadd.f32 %v3762_v23, %v1975_v29 }
 0x1bd   : > { %2110 = vmax.xlane.f32.xlu0 %v3979_v63 }
 0x1be   : > { %v3985_v21 = vsel %vm2017_vm0, %v2014_v53, -inf }
 0x1bf   : > { %2112 = vmax.xlane.f32.xlu1 %v3985_v21 }
 0x1d2   : > { %v2051_v37 = vpop.xlane.xlu0 %2050 }
 0x1d3   : > { %v3989_v61 = vsub.f32 %v3769_v49, %v2051_v37 }
 0x1d5   : > { %v2146_v40 = vmul.f32 1.442695, %v3989_v61 }
 0x1d6   : > { %v2053_v20 = vpop.xlane.xlu0 %2052 }
 0x1d7   : > { %3231 = vpow2.f32 %v2146_v40  ;;  %v3993_v25 = vsub.f32 %v3777_v3, %v2053_v20 }
 0x1d9   : > { %v2148_v23 = vmul.f32 1.442695, %v3993_v25 }
 0x1da   : > { %v2055_v45 = vpop.xlane.xlu1 %2054 }
 0x1db   : > { %3233 = vpow2.f32 %v2148_v23  ;;  %v3997_v15 = vsub.f32 %v3783_v38, %v2055_v45 }
 0x1dd   : > { %v2150_v27 = vmul.f32 1.442695, %v3997_v15 }
 0x1de   : > { %v2057_v54 = vpop.xlane.xlu1 %2056 }
 0x1df   : > { %3235 = vpow2.f32 %v2150_v27  ;;  %v4001_v49 = vsub.f32 %v3791_v41, %v2057_v54 }
 0x1e1   : > { %v3232_v26 = vpop.eup %3231  ;;  %v2152_v55 = vmul.f32 1.442695, %v4001_v49 }
 0x1e2   : > { %2210 = vadd.xlane.f32.xlu0 %v3232_v26  ;;  %v2059_v3 = vpop.xlane.xlu0 %2058 }
 0x1e3   : > { %3237 = vpow2.f32 %v2152_v55  ;;  %v4005_v5 = vsub.f32 %v3797_v50, %v2059_v3 }
 0x1e4   : > { %v2061_v51 = vpop.xlane.xlu1 %2060 }
 0x1e5   : > { %v3234_v52 = vpop.eup %3233  ;;  %v2154_v38 = vmul.f32 1.442695, %v4005_v5  ;;  %v4009_v0 = vsub.f32 %v3804_v9, %v2061_v51 }
 0x1e6   : > { %2212 = vadd.xlane.f32.xlu1 %v3234_v52 }
 0x1e7   : > { %3239 = vpow2.f32 %v2154_v38  ;;  %v2156_v41 = vmul.f32 1.442695, %v4009_v0 }
 0x1e9   : > { %v3236_v1 = vpop.eup %3235  ;;  %3241 = vpow2.f32 %v2156_v41 }
 0x1ea   : > { %2214 = vadd.xlane.f32.xlu0 %v3236_v1  ;;  %v2063_v2 = vpop.xlane.xlu0 %2062 }
 0x1eb   : > { %v4013_v35 = vsub.f32 %v3811_v36, %v2063_v2 }
 0x1ec   : > { %v2065_v50 = vpop.xlane.xlu1 %2064 }
 0x1ed   : > { %v3238_v11 = vpop.eup %3237  ;;  %v2158_v33 = vmul.f32 1.442695, %v4013_v35  ;;  %v4017_v12 = vsub.f32 %v3818_v48, %v2065_v50 }
 0x1ee   : > { %2216 = vadd.xlane.f32.xlu1 %v3238_v11 }
 0x1ef   : > { %3243 = vpow2.f32 %v2158_v33  ;;  %v2160_v9 = vmul.f32 1.442695, %v4017_v12 }
 0x1f1   : > { %v3240_v13 = vpop.eup %3239  ;;  %3245 = vpow2.f32 %v2160_v9 }
 0x1f2   : > { %2218 = vadd.xlane.f32.xlu0 %v3240_v13  ;;  %v2067_v14 = vpop.xlane.xlu0 %2066 }
 0x1f3   : > { %v3242_v43 = vpop.eup %3241  ;;  %v4021_v57 = vsub.f32 %v3825_v8, %v2067_v14 }
 0x1f4   : > { %v2069_v36 = vpop.xlane.xlu1 %2068  ;;  %2220 = vadd.xlane.f32.xlu1 %v3242_v43 }
 0x1f5   : > { %v2162_v39 = vmul.f32 1.442695, %v4021_v57  ;;  %v4025_v22 = vsub.f32 %v3832_v19, %v2069_v36 }
 0x1f7   : > { %3247 = vpow2.f32 %v2162_v39  ;;  %v2164_v48 = vmul.f32 1.442695, %v4025_v22 }
 0x1f9   : > { %v3244_v28 = vpop.eup %3243  ;;  %3249 = vpow2.f32 %v2164_v48 }
 0x1fa   : > { %2222 = vadd.xlane.f32.xlu0 %v3244_v28  ;;  %v2071_v29 = vpop.xlane.xlu0 %2070 }
 0x1fb   : > { %v3246_v17 = vpop.eup %3245  ;;  %v4029_v53 = vsub.f32 %v3839_v47, %v2071_v29 }
 0x1fc   : > { %v2073_v8 = vpop.xlane.xlu1 %2072  ;;  %2224 = vadd.xlane.f32.xlu1 %v3246_v17 }
 0x1fd   : > { %v2166_v37 = vmul.f32 1.442695, %v4029_v53  ;;  %v4033_v40 = vsub.f32 %v3846_v59, %v2073_v8 }
 0x1ff   : > { %3251 = vpow2.f32 %v2166_v37  ;;  %v2168_v19 = vmul.f32 1.442695, %v4033_v40 }
 0x201   : > { %v3248_v20 = vpop.eup %3247  ;;  %3253 = vpow2.f32 %v2168_v19 }
 0x202   : > { %2226 = vadd.xlane.f32.xlu0 %v3248_v20  ;;  %v2075_v23 = vpop.xlane.xlu0 %2074 }
 0x203   : > { %v3250_v45 = vpop.eup %3249  ;;  %v4037_v27 = vsub.f32 %v3853_v18, %v2075_v23 }
 0x204   : > { %v2077_v47 = vpop.xlane.xlu1 %2076  ;;  %2228 = vadd.xlane.f32.xlu1 %v3250_v45 }
 0x205   : > { %v2170_v54 = vmul.f32 1.442695, %v4037_v27  ;;  %v4041_v26 = vsub.f32 %v3860_v31, %v2077_v47 }
 0x207   : > { %3255 = vpow2.f32 %v2170_v54  ;;  %v2172_v59 = vmul.f32 1.442695, %v4041_v26 }
 0x209   : > { %v3252_v55 = vpop.eup %3251  ;;  %3257 = vpow2.f32 %v2172_v59 }
 0x20a   : > { %2230 = vadd.xlane.f32.xlu0 %v3252_v55  ;;  %v2079_v3 = vpop.xlane.xlu0 %2078 }
 0x20b   : > { %v3254_v51 = vpop.eup %3253  ;;  %v4045_v52 = vsub.f32 %v3867_v58, %v2079_v3 }
 0x20c   : > { %v2081_v18 = vpop.xlane.xlu1 %2080  ;;  %2232 = vadd.xlane.f32.xlu1 %v3254_v51 }
 0x20d   : > { %v2174_v38 = vmul.f32 1.442695, %v4045_v52  ;;  %v4049_v41 = vsub.f32 %v3874_v7, %v2081_v18 }
 0x20f   : > { %3259 = vpow2.f32 %v2174_v38  ;;  %v2176_v31 = vmul.f32 1.442695, %v4049_v41 }
 0x211   : > { %v3256_v1 = vpop.eup %3255  ;;  %3261 = vpow2.f32 %v2176_v31 }
 0x212   : > { %2234 = vadd.xlane.f32.xlu0 %v3256_v1  ;;  %v2083_v2 = vpop.xlane.xlu0 %2082 }
 0x213   : > { %v3258_v50 = vpop.eup %3257  ;;  %v4053_v11 = vsub.f32 %v3881_v30, %v2083_v2 }
 0x214   : > { %v2085_v58 = vpop.xlane.xlu1 %2084  ;;  %2236 = vadd.xlane.f32.xlu1 %v3258_v50 }
 0x215   : > { %v2178_v33 = vmul.f32 1.442695, %v4053_v11  ;;  %v4057_v9 = vsub.f32 %v3888_v46, %v2085_v58 }
 0x217   : > { %3263 = vpow2.f32 %v2178_v33  ;;  %v2180_v7 = vmul.f32 1.442695, %v4057_v9 }
 0x219   : > { %v3260_v13 = vpop.eup %3259  ;;  %3265 = vpow2.f32 %v2180_v7 }
 0x21a   : > { %2238 = vadd.xlane.f32.xlu0 %v3260_v13  ;;  %v2087_v14 = vpop.xlane.xlu0 %2086 }
 0x21b   : > { %v3262_v43 = vpop.eup %3261  ;;  %v4061_v36 = vsub.f32 %v3895_v6, %v2087_v14 }
 0x21c   : > { %v2089_v30 = vpop.xlane.xlu1 %2088  ;;  %2240 = vadd.xlane.f32.xlu1 %v3262_v43 }
 0x21d   : > { %v2182_v39 = vmul.f32 1.442695, %v4061_v36  ;;  %v4065_v48 = vsub.f32 %v3902_v32, %v2089_v30 }
 0x21f   : > { %3267 = vpow2.f32 %v2182_v39  ;;  %v2184_v46 = vmul.f32 1.442695, %v4065_v48 }
 0x221   : > { %v3264_v28 = vpop.eup %3263  ;;  %3269 = vpow2.f32 %v2184_v46 }
 0x222   : > { %2242 = vadd.xlane.f32.xlu0 %v3264_v28  ;;  %v2091_v29 = vpop.xlane.xlu0 %2090 }
 0x223   : > { %v3266_v17 = vpop.eup %3265  ;;  %v4069_v8 = vsub.f32 %v3909_v62, %v2091_v29 }
 0x224   : > { %v2093_v6 = vpop.xlane.xlu1 %2092  ;;  %2244 = vadd.xlane.f32.xlu1 %v3266_v17 }
 0x225   : > { %v2186_v37 = vmul.f32 1.442695, %v4069_v8  ;;  %v4073_v19 = vsub.f32 %v3916_v44, %v2093_v6 }
 0x227   : > { %3271 = vpow2.f32 %v2186_v37  ;;  %v2188_v32 = vmul.f32 1.442695, %v4073_v19 }
 0x229   : > { %v3268_v20 = vpop.eup %3267  ;;  %3273 = vpow2.f32 %v2188_v32 }
 0x22a   : > { %2246 = vadd.xlane.f32.xlu0 %v3268_v20  ;;  %v2095_v23 = vpop.xlane.xlu0 %2094 }
 0x22b   : > { %v3270_v45 = vpop.eup %3269  ;;  %v4077_v47 = vsub.f32 %v3923_v10, %v2095_v23 }
 0x22c   : > { %v2097_v62 = vpop.xlane.xlu1 %2096  ;;  %2248 = vadd.xlane.f32.xlu1 %v3270_v45 }
 0x22d   : > { %v2190_v54 = vmul.f32 1.442695, %v4077_v47  ;;  %v4081_v59 = vsub.f32 %v3930_v56, %v2097_v62 }
 0x22f   : > { %3275 = vpow2.f32 %v2190_v54  ;;  %v2192_v44 = vmul.f32 1.442695, %v4081_v59 }
 0x231   : > { %v3272_v55 = vpop.eup %3271  ;;  %3277 = vpow2.f32 %v2192_v44 }
 0x232   : > { %2250 = vadd.xlane.f32.xlu0 %v3272_v55  ;;  %v2099_v3 = vpop.xlane.xlu0 %2098 }
 0x233   : > { %v3274_v51 = vpop.eup %3273  ;;  %v4085_v18 = vsub.f32 %v3937_v24, %v2099_v3 }
 0x234   : > { %v2101_v10 = vpop.xlane.xlu1 %2100  ;;  %2252 = vadd.xlane.f32.xlu1 %v3274_v51 }
 0x235   : > { %v2194_v38 = vmul.f32 1.442695, %v4085_v18  ;;  %v4089_v31 = vsub.f32 %v3944_v4, %v2101_v10 }
 0x237   : > { %3279 = vpow2.f32 %v2194_v38  ;;  %v2196_v56 = vmul.f32 1.442695, %v4089_v31 }
 0x239   : > { %v3276_v1 = vpop.eup %3275  ;;  %3281 = vpow2.f32 %v2196_v56 }
 0x23a   : > { %2254 = vadd.xlane.f32.xlu0 %v3276_v1  ;;  %v2103_v2 = vpop.xlane.xlu0 %2102 }
 0x23b   : > { %v3278_v50 = vpop.eup %3277  ;;  %v4093_v58 = vsub.f32 %v3951_v42, %v2103_v2 }
 0x23c   : > { %v2105_v24 = vpop.xlane.xlu1 %2104  ;;  %2256 = vadd.xlane.f32.xlu1 %v3278_v50 }
 0x23d   : > { %v2198_v33 = vmul.f32 1.442695, %v4093_v58  ;;  %v4097_v7 = vsub.f32 %v3958_v16, %v2105_v24 }
 0x23f   : > { %3283 = vpow2.f32 %v2198_v33  ;;  %v2200_v4 = vmul.f32 1.442695, %v4097_v7 }
 0x241   : > { %v3280_v13 = vpop.eup %3279  ;;  %3285 = vpow2.f32 %v2200_v4 }
 0x242   : > { %2258 = vadd.xlane.f32.xlu0 %v3280_v13  ;;  %v2107_v14 = vpop.xlane.xlu0 %2106 }
 0x243   : > { %v3282_v43 = vpop.eup %3281  ;;  %v4101_v30 = vsub.f32 %v3965_v60, %v2107_v14 }
 0x244   : > { %v2109_v42 = vpop.xlane.xlu1 %2108  ;;  %2260 = vadd.xlane.f32.xlu1 %v3282_v43 }
 0x245   : > { %v2202_v39 = vmul.f32 1.442695, %v4101_v30  ;;  %v4105_v46 = vsub.f32 %v3972_v34, %v2109_v42 }
 0x247   : > { %3287 = vpow2.f32 %v2202_v39  ;;  %v2204_v16 = vmul.f32 1.442695, %v4105_v46 }
 0x249   : > { %v3284_v28 = vpop.eup %3283  ;;  %3289 = vpow2.f32 %v2204_v16 }
 0x24a   : > { %2262 = vadd.xlane.f32.xlu0 %v3284_v28  ;;  %v2111_v29 = vpop.xlane.xlu0 %2110 }
 0x24b   : > { %v3286_v17 = vpop.eup %3285  ;;  %v4109_v6 = vsub.f32 %v3979_v63, %v2111_v29 }
 0x24c   : > { %v2113_v60 = vpop.xlane.xlu1 %2112  ;;  %2264 = vadd.xlane.f32.xlu1 %v3286_v17 }
 0x24d   : > { %v2206_v37 = vmul.f32 1.442695, %v4109_v6  ;;  %v4113_v32 = vsub.f32 %v3985_v21, %v2113_v60 }
 0x24f   : > { %3291 = vpow2.f32 %v2206_v37  ;;  %v2208_v34 = vmul.f32 1.442695, %v4113_v32 }
 0x251   : > { %v3288_v20 = vpop.eup %3287  ;;  %3293 = vpow2.f32 %v2208_v34 }
 0x252   : > { %2266 = vadd.xlane.f32.xlu0 %v3288_v20 }
 0x253   : > { %v3290_v23 = vpop.eup %3289 }
 0x254   : > { %2268 = vadd.xlane.f32.xlu1 %v3290_v23 }
 0x259   : > { %v3292_v45 = vpop.eup %3291 }
 0x25a   : > { %2270 = vadd.xlane.f32.xlu0 %v3292_v45 }
 0x25b   : > { %v3294_v63 = vpop.eup %3293 }
 0x25c   : > { %2272 = vadd.xlane.f32.xlu1 %v3294_v63 }
 0x26f   : > { %v2211_v62 = vpop.xlane.xlu0 %2210 }
 0x270   : > { %3295 = vlog2.f32 %v2211_v62 }
 0x273   : > { %v2213_v54 = vpop.xlane.xlu1 %2212 }
 0x274   : > { %3297 = vlog2.f32 %v2213_v54 }
 0x277   : > { %v2215_v44 = vpop.xlane.xlu0 %2214 }
 0x278   : > { %3299 = vlog2.f32 %v2215_v44 }
 0x27a   : > { %v3296_v21 = vpop.eup %3295 }
 0x27b   : > { %v2275_v55 = vmul.f32 0.6931472, %v3296_v21  ;;  %v2217_v3 = vpop.xlane.xlu1 %2216 }
 0x27c   : > { %3301 = vlog2.f32 %v2217_v3 }
 0x27d   : > { %v2338_v51 = vsub.f32 %v3989_v61, %v2275_v55 }
 0x27e   : > { %v3298_v10 = vpop.eup %3297 }
 0x27f   : > { %2370 = vst [vmem:[%s4121_s7] sm:$0xff] %v2338_v51  ;;  %v2277_v38 = vmul.f32 0.6931472, %v3298_v10  ;;  %v2219_v56 = vpop.xlane.xlu0 %2218 }
 0x280   : > { %3303 = vlog2.f32 %v2219_v56 }
 0x281   : > { %v2339_v1 = vsub.f32 %v3993_v25, %v2277_v38  ;;  %v2221_v2 = vpop.xlane.xlu1 %2220 }
 0x282   : > { %v3300_v50 = vpop.eup %3299  ;;  %3305 = vlog2.f32 %v2221_v2 }
 0x283   : > { %2371 = vst [vmem:[%s4121_s7 + $0x8] sm:$0xff] %v2339_v1  ;;  %v2279_v24 = vmul.f32 0.6931472, %v3300_v50 }
 0x285   : > { %v2340_v33 = vsub.f32 %v3997_v15, %v2279_v24 }
 0x286   : > { %v3302_v4 = vpop.eup %3301 }
 0x287   : > { %2372 = vst [vmem:[%s4121_s7 + $0x10] sm:$0xff] %v2340_v33  ;;  %v2281_v13 = vmul.f32 0.6931472, %v3302_v4  ;;  %v2223_v61 = vpop.xlane.xlu0 %2222 }
 0x288   : > { %3307 = vlog2.f32 %v2223_v61 }
 0x289   : > { %v2341_v14 = vsub.f32 %v4001_v49, %v2281_v13  ;;  %v2225_v43 = vpop.xlane.xlu1 %2224 }
 0x28a   : > { %v3304_v42 = vpop.eup %3303  ;;  %3309 = vlog2.f32 %v2225_v43 }
 0x28b   : > { %2373 = vst [vmem:[%s4121_s7 + $0x18] sm:$0xff] %v2341_v14  ;;  %v2283_v25 = vmul.f32 0.6931472, %v3304_v42 }
 0x28c   : > { %v3306_v39 = vpop.eup %3305 }
 0x28d   : > { %v2342_v16 = vsub.f32 %v4005_v5, %v2283_v25  ;;  %v2285_v28 = vmul.f32 0.6931472, %v3306_v39 }
 0x28f   : > { %2374 = vst [vmem:[%s4121_s7 + $0x20] sm:$0xff] %v2342_v16  ;;  %v2343_v15 = vsub.f32 %v4009_v0, %v2285_v28  ;;  %v2227_v29 = vpop.xlane.xlu0 %2226 }
 0x290   : > { %3311 = vlog2.f32 %v2227_v29 }
 0x291   : > { %2375 = vst [vmem:[%s4121_s7 + $0x28] sm:$0xff] %v2343_v15  ;;  %v2229_v17 = vpop.xlane.xlu1 %2228 }
 0x292   : > { %v3308_v60 = vpop.eup %3307  ;;  %3313 = vlog2.f32 %v2229_v17 }
 0x293   : > { %v2287_v49 = vmul.f32 0.6931472, %v3308_v60 }
 0x294   : > { %v3310_v37 = vpop.eup %3309 }
 0x295   : > { %v2344_v34 = vsub.f32 %v4013_v35, %v2287_v49  ;;  %v2289_v20 = vmul.f32 0.6931472, %v3310_v37 }
 0x297   : > { %2376 = vst [vmem:[%s4121_s7 + $0x30] sm:$0xff] %v2344_v34  ;;  %v2345_v5 = vsub.f32 %v4017_v12, %v2289_v20  ;;  %v2231_v23 = vpop.xlane.xlu0 %2230 }
 0x298   : > { %3315 = vlog2.f32 %v2231_v23 }
 0x299   : > { %2377 = vst [vmem:[%s4121_s7 + $0x38] sm:$0xff] %v2345_v5  ;;  %v2233_v0 = vpop.xlane.xlu1 %2232 }
 0x29a   : > { %v3312_v45 = vpop.eup %3311  ;;  %3317 = vlog2.f32 %v2233_v0 }
 0x29b   : > { %v2291_v63 = vmul.f32 0.6931472, %v3312_v45 }
 0x29c   : > { %v3314_v62 = vpop.eup %3313 }
 0x29d   : > { %v2346_v54 = vsub.f32 %v4021_v57, %v2291_v63  ;;  %v2293_v44 = vmul.f32 0.6931472, %v3314_v62 }
 0x29f   : > { %2378 = vst [vmem:[%s4121_s7 + $0x40] sm:$0xff] %v2346_v54  ;;  %v2347_v35 = vsub.f32 %v4025_v22, %v2293_v44  ;;  %v2235_v21 = vpop.xlane.xlu0 %2234 }
 0x2a0   : > { %3319 = vlog2.f32 %v2235_v21 }
 0x2a1   : > { %2379 = vst [vmem:[%s4121_s7 + $0x48] sm:$0xff] %v2347_v35  ;;  %v2237_v12 = vpop.xlane.xlu1 %2236 }
 0x2a2   : > { %v3316_v55 = vpop.eup %3315  ;;  %3321 = vlog2.f32 %v2237_v12 }
 0x2a3   : > { %v2295_v3 = vmul.f32 0.6931472, %v3316_v55 }
 0x2a4   : > { %v3318_v51 = vpop.eup %3317 }
 0x2a5   : > { %v2348_v10 = vsub.f32 %v4029_v53, %v2295_v3  ;;  %v2297_v38 = vmul.f32 0.6931472, %v3318_v51 }
 0x2a7   : > { %2380 = vst [vmem:[%s4121_s7 + $0x50] sm:$0xff] %v2348_v10  ;;  %v2349_v57 = vsub.f32 %v4033_v40, %v2297_v38  ;;  %v2239_v56 = vpop.xlane.xlu0 %2238 }
 0x2a8   : > { %3323 = vlog2.f32 %v2239_v56 }
 0x2a9   : > { %2381 = vst [vmem:[%s4121_s7 + $0x58] sm:$0xff] %v2349_v57  ;;  %v2241_v22 = vpop.xlane.xlu1 %2240 }
 0x2aa   : > { %v3320_v1 = vpop.eup %3319  ;;  %3325 = vlog2.f32 %v2241_v22 }
 0x2ab   : > { %v2299_v2 = vmul.f32 0.6931472, %v3320_v1 }
 0x2ac   : > { %v3322_v50 = vpop.eup %3321 }
 0x2ad   : > { %v2350_v24 = vsub.f32 %v4037_v27, %v2299_v2  ;;  %v2301_v33 = vmul.f32 0.6931472, %v3322_v50 }
 0x2af   : > { %2382 = vst [vmem:[%s4121_s7 + $0x60] sm:$0xff] %v2350_v24  ;;  %v2351_v53 = vsub.f32 %v4041_v26, %v2301_v33  ;;  %v2243_v4 = vpop.xlane.xlu0 %2242 }
 0x2b0   : > { %3327 = vlog2.f32 %v2243_v4 }
 0x2b1   : > { %2383 = vst [vmem:[%s4121_s7 + $0x68] sm:$0xff] %v2351_v53  ;;  %v2245_v40 = vpop.xlane.xlu1 %2244 }
 0x2b2   : > { %v3324_v13 = vpop.eup %3323  ;;  %3329 = vlog2.f32 %v2245_v40 }
 0x2b3   : > { %v2303_v61 = vmul.f32 0.6931472, %v3324_v13 }
 0x2b4   : > { %v3326_v14 = vpop.eup %3325 }
 0x2b5   : > { %v2352_v43 = vsub.f32 %v4045_v52, %v2303_v61  ;;  %v2305_v42 = vmul.f32 0.6931472, %v3326_v14 }
 0x2b7   : > { %2384 = vst [vmem:[%s4121_s7 + $0x70] sm:$0xff] %v2352_v43  ;;  %v2353_v27 = vsub.f32 %v4049_v41, %v2305_v42  ;;  %v2247_v25 = vpop.xlane.xlu0 %2246 }
 0x2b8   : > { %3331 = vlog2.f32 %v2247_v25 }
 0x2b9   : > { %2385 = vst [vmem:[%s4121_s7 + $0x78] sm:$0xff] %v2353_v27  ;;  %v2249_v26 = vpop.xlane.xlu1 %2248 }
 0x2ba   : > { %v3328_v39 = vpop.eup %3327  ;;  %3333 = vlog2.f32 %v2249_v26 }
 0x2bb   : > { %v2307_v16 = vmul.f32 0.6931472, %v3328_v39 }
 0x2bc   : > { %v3330_v28 = vpop.eup %3329 }
 0x2bd   : > { %v2354_v15 = vsub.f32 %v4053_v11, %v2307_v16  ;;  %v2309_v29 = vmul.f32 0.6931472, %v3330_v28 }
 0x2bf   : > { %2386 = vst [vmem:[%s4121_s7 + $0x80] sm:$0xff] %v2354_v15  ;;  %v2355_v52 = vsub.f32 %v4057_v9, %v2309_v29  ;;  %v2251_v17 = vpop.xlane.xlu0 %2250 }
 0x2c0   : > { %3335 = vlog2.f32 %v2251_v17 }
 0x2c1   : > { %2387 = vst [vmem:[%s4121_s7 + $0x88] sm:$0xff] %v2355_v52  ;;  %v2253_v41 = vpop.xlane.xlu1 %2252 }
 0x2c2   : > { %v3332_v60 = vpop.eup %3331  ;;  %3337 = vlog2.f32 %v2253_v41 }
 0x2c3   : > { %v2311_v49 = vmul.f32 0.6931472, %v3332_v60 }
 0x2c4   : > { %v3334_v37 = vpop.eup %3333 }
 0x2c5   : > { %v2356_v34 = vsub.f32 %v4061_v36, %v2311_v49  ;;  %v2313_v20 = vmul.f32 0.6931472, %v3334_v37 }
 0x2c7   : > { %2388 = vst [vmem:[%s4121_s7 + $0x90] sm:$0xff] %v2356_v34  ;;  %v2357_v11 = vsub.f32 %v4065_v48, %v2313_v20  ;;  %v2255_v5 = vpop.xlane.xlu0 %2254 }
 0x2c8   : > { %3339 = vlog2.f32 %v2255_v5 }
 0x2c9   : > { %2389 = vst [vmem:[%s4121_s7 + $0x98] sm:$0xff] %v2357_v11  ;;  %v2257_v9 = vpop.xlane.xlu1 %2256 }
 0x2ca   : > { %v3336_v23 = vpop.eup %3335  ;;  %3341 = vlog2.f32 %v2257_v9 }
 0x2cb   : > { %v2315_v0 = vmul.f32 0.6931472, %v3336_v23 }
 0x2cc   : > { %v3338_v45 = vpop.eup %3337 }
 0x2cd   : > { %v2358_v63 = vsub.f32 %v4069_v8, %v2315_v0  ;;  %v2317_v62 = vmul.f32 0.6931472, %v3338_v45 }
 0x2cf   : > { %2390 = vst [vmem:[%s4121_s7 + $0xa0] sm:$0xff] %v2358_v63  ;;  %v2359_v36 = vsub.f32 %v4073_v19, %v2317_v62  ;;  %v2259_v54 = vpop.xlane.xlu0 %2258 }
 0x2d0   : > { %3343 = vlog2.f32 %v2259_v54 }
 0x2d1   : > { %2391 = vst [vmem:[%s4121_s7 + $0xa8] sm:$0xff] %v2359_v36  ;;  %v2261_v48 = vpop.xlane.xlu1 %2260 }
 0x2d2   : > { %v3340_v44 = vpop.eup %3339  ;;  %3345 = vlog2.f32 %v2261_v48 }
 0x2d3   : > { %v2319_v35 = vmul.f32 0.6931472, %v3340_v44 }
 0x2d4   : > { %v3342_v21 = vpop.eup %3341 }
 0x2d5   : > { %v2360_v12 = vsub.f32 %v4077_v47, %v2319_v35  ;;  %v2321_v55 = vmul.f32 0.6931472, %v3342_v21 }
 0x2d7   : > { %2392 = vst [vmem:[%s4121_s7 + $0xb0] sm:$0xff] %v2360_v12  ;;  %v2361_v8 = vsub.f32 %v4081_v59, %v2321_v55  ;;  %v2263_v3 = vpop.xlane.xlu0 %2262 }
 0x2d8   : > { %3347 = vlog2.f32 %v2263_v3 }
 0x2d9   : > { %2393 = vst [vmem:[%s4121_s7 + $0xb8] sm:$0xff] %v2361_v8  ;;  %v2265_v19 = vpop.xlane.xlu1 %2264 }
 0x2da   : > { %v3344_v51 = vpop.eup %3343  ;;  %3349 = vlog2.f32 %v2265_v19 }
 0x2db   : > { %v2323_v10 = vmul.f32 0.6931472, %v3344_v51 }
 0x2dc   : > { %v3346_v38 = vpop.eup %3345 }
 0x2dd   : > { %v2362_v57 = vsub.f32 %v4085_v18, %v2323_v10  ;;  %v2325_v56 = vmul.f32 0.6931472, %v3346_v38 }
 0x2df   : > { %2394 = vst [vmem:[%s4121_s7 + $0xc0] sm:$0xff] %v2362_v57  ;;  %v2363_v47 = vsub.f32 %v4089_v31, %v2325_v56  ;;  %v2267_v22 = vpop.xlane.xlu0 %2266 }
 0x2e0   : > { %3351 = vlog2.f32 %v2267_v22 }
 0x2e1   : > { %2395 = vst [vmem:[%s4121_s7 + $0xc8] sm:$0xff] %v2363_v47  ;;  %v2269_v59 = vpop.xlane.xlu1 %2268 }
 0x2e2   : > { %v3348_v1 = vpop.eup %3347  ;;  %3353 = vlog2.f32 %v2269_v59 }
 0x2e3   : > { %v2327_v2 = vmul.f32 0.6931472, %v3348_v1 }
 0x2e4   : > { %v3350_v50 = vpop.eup %3349 }
 0x2e5   : > { %v2364_v24 = vsub.f32 %v4093_v58, %v2327_v2  ;;  %v2329_v33 = vmul.f32 0.6931472, %v3350_v50 }
 0x2e7   : > { %2396 = vst [vmem:[%s4121_s7 + $0xd0] sm:$0xff] %v2364_v24  ;;  %v2365_v18 = vsub.f32 %v4097_v7, %v2329_v33  ;;  %v2271_v53 = vpop.xlane.xlu0 %2270 }
 0x2e8   : > { %3355 = vlog2.f32 %v2271_v53 }
 0x2e9   : > { %2397 = vst [vmem:[%s4121_s7 + $0xd8] sm:$0xff] %v2365_v18  ;;  %v2273_v31 = vpop.xlane.xlu1 %2272 }
 0x2ea   : > { %v3352_v4 = vpop.eup %3351  ;;  %3357 = vlog2.f32 %v2273_v31 }
 0x2eb   : > { %v2331_v40 = vmul.f32 0.6931472, %v3352_v4 }
 0x2ec   : > { %v3354_v13 = vpop.eup %3353 }
 0x2ed   : > { %v2366_v61 = vsub.f32 %v4101_v30, %v2331_v40  ;;  %v2333_v14 = vmul.f32 0.6931472, %v3354_v13 }
 0x2ef   : > { %2398 = vst [vmem:[%s4121_s7 + $0xe0] sm:$0xff] %v2366_v61  ;;  %v2367_v58 = vsub.f32 %v4105_v46, %v2333_v14 }
 0x2f1   : > { %2399 = vst [vmem:[%s4121_s7 + $0xe8] sm:$0xff] %v2367_v58 }
 0x2f2   : > { %v3356_v43 = vpop.eup %3355 }
 0x2f3   : > { %v2335_v42 = vmul.f32 0.6931472, %v3356_v43 }
 0x2f4   : > { %v3358_v7 = vpop.eup %3357 }
 0x2f5   : > { %v2368_v27 = vsub.f32 %v4109_v6, %v2335_v42  ;;  %v2337_v25 = vmul.f32 0.6931472, %v3358_v7 }
 0x2f7   : > { %2400 = vst [vmem:[%s4121_s7 + $0xf0] sm:$0xff] %v2368_v27  ;;  %v2369_v26 = vsub.f32 %v4113_v32, %v2337_v25 }
 0x2f9   : > { %2401 = vst [vmem:[%s4121_s7 + $0xf8] sm:$0xff] %v2369_v26 }
 0x2fa PF: > { %s16_s23 = sadd.s32 1, %s3381_s23   ;;  %s4203_s21 = smov %s3377_s22 }
 0x2fb   : > { %p13_p5 = scmp.ge.s32.totalorder %s16_s23, 4   ;;  %s4204_s22 = smov %s4206_s3 }
 0x2fd   :  { %15 = sbr.rel (!%p13_p5) target bundleno = 2 (0x2), region = 88 }

// kernel: sage_forward.5
= control target key start
LH: loop header
LB: loop body
LE: loop exit
PB: predicated region body
PF: predicated region fallthrough
CT: control target
= control target key end

     0   :  { %s4132_s21 = smov 0   ;;  %s4134_s22 = smov 0   ;;  %s4765_s0 = inlined_call_operand.vmem [shape: bf16[512,512], index: 0, kind: input, shape index: {}]   ;;  %s4766_s1 = inlined_call_operand.vmem [shape: bf16[512,256], index: 1, kind: input, shape index: {}, may-alias: {1,2}]   ;;  %s4767_s2 = inlined_call_operand.vmem [shape: bf16[512,256], index: 2, kind: input, shape index: {}, may-alias: {1,2}]   ;;  %s4768_s3 = inlined_call_operand.vmem [shape: bf16[256,256], index: 3, kind: input, shape index: {}]   ;;  %s4769_s4 = inlined_call_operand.vmem [shape: bf16[256,256], index: 4, kind: input, shape index: {}]   ;;  %s4770_s5 = inlined_call_operand.vmem [shape: f32[1,256], index: 5, kind: input, shape index: {}]   ;;  %s4771_s6 = inlined_call_operand.vmem [shape: bf16[512,256], index: 6, kind: output, shape index: {}]  }
   0x1   :  { %s4136_s23 = smov 0  }
   0x2 LB: > { %s28_s24 = sadd.s32 1, %s4091_s22  ;;  %p3282_p0 = scmp.ge.s32.totalorder %s4095_s23, 1  ;;  %s4095_s23 = sphi %s4136_s23, %s16_s23   ;;  %s4091_s22 = sphi %s4134_s22, %s4773_s22   ;;  %s4087_s21 = sphi %s4132_s21, %s4772_s21  }
   0x3   : > { %p30_p1 = scmp.ge.s32.totalorder %s28_s24, 2  ;;  %p257_p2 = scmp.lt.s32.totalorder %s4095_s23, 3 }
   0x5   : > { %s4775_s24 = smov (%p30_p1, %s28_s24), 0  ;;  %p258_p3 = pnand %p3282_p0, %p257_p2 }
   0x6   : > { %v3737_v0 = vld [vmem:[%s4766_s1 + $0x4] ss:$8 sps:$4 sm:$0xff] (!%p258_p3)   ;;  %v3739_v1 = vld [vmem:[%s4766_s1] ss:$8 sps:$4 sm:$0xff] (!%p258_p3)   ;;  %v3740_v2 = vld [vmem:[%s4766_s1 + $0x14] ss:$8 sps:$4 sm:$0xff] (!%p258_p3)  }
   0x7   : > { %261 = sbr.rel (%p258_p3) target bundleno = 759 (0x2f7), region = 44  ;;  %1238 = vmatprep.subr.bf16.mxu0 (!%p258_p3), %v3737_v0  ;;  %v3742_v3 = vld [vmem:[%s4766_s1 + $0x10] ss:$8 sps:$4 sm:$0xff] (!%p258_p3)   ;;  %v3743_v4 = vld [vmem:[%s4766_s1 + $0x24] ss:$8 sps:$4 sm:$0xff] (!%p258_p3)   ;;  %s3283_s11 = sshll.u32 (!%p258_p3), %s4087_s21, 5 }
   0x8   : > { %1239 = vmatpush1.bf16.msra.mxu0 (!%p258_p3), %v3739_v1  ;;  %v3745_v5 = vld [vmem:[%s4766_s1 + $0x20] ss:$8 sps:$4 sm:$0xff] (!%p258_p3)   ;;  %v3746_v6 = vld [vmem:[%s4766_s1 + $0x34] ss:$8 sps:$4 sm:$0xff] (!%p258_p3)   ;;  %p307_p4 = scmp.lt.s32.totalorder (!%p258_p3), %s3283_s11, 63 }
   0x9   : > { %1240 = vmatprep.subr.bf16.mxu0 (!%p258_p3), %v3740_v2  ;;  %v3748_v7 = vld [vmem:[%s4766_s1 + $0x30] ss:$8 sps:$4 sm:$0xff] (!%p258_p3)   ;;  %v3749_v8 = vld [vmem:[%s4766_s1 + $0x44] ss:$8 sps:$4 sm:$0xff] (!%p258_p3)   ;;  %v3751_v9 = vld [vmem:[%s4766_s1 + $0x40] ss:$8 sps:$4 sm:$0xff] (!%p258_p3)  }
   0xa   : > { %v3752_v10 = vld [vmem:[%s4766_s1 + $0x54] ss:$8 sps:$4 sm:$0xff] (!%p258_p3)   ;;  %v3754_v11 = vld [vmem:[%s4766_s1 + $0x50] ss:$8 sps:$4 sm:$0xff] (!%p258_p3)   ;;  %v3755_v12 = vld [vmem:[%s4766_s1 + $0x64] ss:$8 sps:$4 sm:$0xff] (!%p258_p3)  }
   0xb   : > { %v3757_v14 = vld [vmem:[%s4766_s1 + $0x60] ss:$8 sps:$4 sm:$0xff] (!%p258_p3)   ;;  %v3758_v15 = vld [vmem:[%s4766_s1 + $0x74] ss:$8 sps:$4 sm:$0xff] (!%p258_p3)   ;;  %v3760_v16 = vld [vmem:[%s4766_s1 + $0x70] ss:$8 sps:$4 sm:$0xff] (!%p258_p3)  }
   0xc   : > { %1241 = vmatpush1.bf16.msra.mxu0 (!%p258_p3), %v3742_v3  ;;  %v3761_v17 = vld [vmem:[%s4766_s1 + $0x84] ss:$8 sps:$4 sm:$0xff] (!%p258_p3)   ;;  %v3763_v18 = vld [vmem:[%s4766_s1 + $0x80] ss:$8 sps:$4 sm:$0xff] (!%p258_p3)   ;;  %v3764_v19 = vld [vmem:[%s4766_s1 + $0x94] ss:$8 sps:$4 sm:$0xff] (!%p258_p3)  }
   0xd   : > { %1242 = vmatprep.subr.bf16.mxu0 (!%p258_p3), %v3743_v4  ;;  %v3766_v20 = vld [vmem:[%s4766_s1 + $0x90] ss:$8 sps:$4 sm:$0xff] (!%p258_p3)   ;;  %v3767_v21 = vld [vmem:[%s4766_s1 + $0xa4] ss:$8 sps:$4 sm:$0xff] (!%p258_p3)   ;;  %v3769_v22 = vld [vmem:[%s4766_s1 + $0xa0] ss:$8 sps:$4 sm:$0xff] (!%p258_p3)  }
   0xe   : > { %s4777_s11 = smov (!%p307_p4, %s3283_s11), 63  ;;  %v3770_v23 = vld [vmem:[%s4766_s1 + $0xb4] ss:$8 sps:$4 sm:$0xff]   ;;  %v3772_v24 = vld [vmem:[%s4766_s1 + $0xb0] ss:$8 sps:$4 sm:$0xff]  }
   0xf   : > { %s3550_s27 = sshll.u32 %s4777_s11, 4  ;;  %v3773_v25 = vld [vmem:[%s4766_s1 + $0xc4] ss:$8 sps:$4 sm:$0xff]   ;;  %v3775_v26 = vld [vmem:[%s4766_s1 + $0xc0] ss:$8 sps:$4 sm:$0xff]   ;;  %s3551_s29 = sshll.u32 %s4777_s11, 3 }
  0x10   : > { %1243 = vmatpush1.bf16.msra.mxu0 %v3745_v5  ;;  %s4192_s8 = scalar_lea.vmem %s4765_s0, %s3550_s27  ;;  %v3776_v27 = vld [vmem:[%s4766_s1 + $0xd4] ss:$8 sps:$4 sm:$0xff]   ;;  %v3778_v28 = vld [vmem:[%s4766_s1 + $0xd0] ss:$8 sps:$4 sm:$0xff]   ;;  %v3779_v29 = vld [vmem:[%s4766_s1 + $0xe4] ss:$8 sps:$4 sm:$0xff]   ;;  %s4477_s9 = scalar_lea.vmem %s4767_s2, %s3551_s29 }
  0x11   : > { %1244 = vmatprep.subr.bf16.mxu0 %v3746_v6  ;;  %v3787_v13 = vld [vmem:[%s4192_s8 + $0x4] ss:$16 sps:$4 sm:$0xff]   ;;  %v3781_v30 = vld [vmem:[%s4766_s1 + $0xe0] ss:$8 sps:$4 sm:$0xff]   ;;  %v3784_v32 = vld [vmem:[%s4766_s1 + $0xf0] ss:$8 sps:$4 sm:$0xff]   ;;  %s4662_s30 = scalar_lea.vmem %s4771_s6, %s3551_s29 }
  0x12   : > { %1270 = vmatprep.mubr.bf16.mxu0 %v3787_v13  ;;  %v3782_v31 = vld [vmem:[%s4766_s1 + $0xf4] ss:$8 sps:$4 sm:$0xff]   ;;  %v3790_v33 = vld [vmem:[%s4766_s1 + $0x104] ss:$8 sps:$4 sm:$0xff]   ;;  %v3785_v34 = vld [vmem:[%s4192_s8] ss:$16 sps:$4 sm:$0xff]  }
  0x13   : > { %v3788_v35 = vld [vmem:[%s4766_s1 + $0x100] ss:$8 sps:$4 sm:$0xff]   ;;  %v3791_v36 = vld [vmem:[%s4192_s8 + $0x24] ss:$16 sps:$4 sm:$0xff]   ;;  %v3794_v38 = vld [vmem:[%s4766_s1 + $0x110] ss:$8 sps:$4 sm:$0xff]  }
  0x14   : > { %1245 = vmatpush1.bf16.msra.mxu0 %v3748_v7  ;;  %v3796_v37 = vld [vmem:[%s4766_s1 + $0x114] ss:$8 sps:$4 sm:$0xff]   ;;  %v3802_v39 = vld [vmem:[%s4766_s1 + $0x124] ss:$8 sps:$4 sm:$0xff]   ;;  %v3793_v40 = vld [vmem:[%s4192_s8 + $0x20] ss:$16 sps:$4 sm:$0xff]  }
  0x15   : > { %1246 = vmatprep.subr.bf16.mxu0 %v3749_v8  ;;  %v3797_v41 = vld [vmem:[%s4192_s8 + $0x44] ss:$16 sps:$4 sm:$0xff]   ;;  %v3800_v42 = vld [vmem:[%s4766_s1 + $0x120] ss:$8 sps:$4 sm:$0xff]   ;;  %v3806_v44 = vld [vmem:[%s4766_s1 + $0x130] ss:$8 sps:$4 sm:$0xff]  }
  0x16   : > { %v3808_v43 = vld [vmem:[%s4766_s1 + $0x134] ss:$8 sps:$4 sm:$0xff]   ;;  %v3814_v45 = vld [vmem:[%s4766_s1 + $0x144] ss:$8 sps:$4 sm:$0xff]   ;;  %v3799_v46 = vld [vmem:[%s4192_s8 + $0x40] ss:$16 sps:$4 sm:$0xff]  }
  0x17   : > { %v3803_v47 = vld [vmem:[%s4192_s8 + $0x64] ss:$16 sps:$4 sm:$0xff]   ;;  %v3812_v48 = vld [vmem:[%s4766_s1 + $0x140] ss:$8 sps:$4 sm:$0xff]   ;;  %v3818_v50 = vld [vmem:[%s4766_s1 + $0x150] ss:$8 sps:$4 sm:$0xff]  }
  0x18   : > { %1247 = vmatpush1.bf16.msra.mxu0 %v3751_v9  ;;  %v3820_v49 = vld [vmem:[%s4766_s1 + $0x154] ss:$8 sps:$4 sm:$0xff]   ;;  %v3826_v51 = vld [vmem:[%s4766_s1 + $0x164] ss:$8 sps:$4 sm:$0xff]   ;;  %v3805_v52 = vld [vmem:[%s4192_s8 + $0x60] ss:$16 sps:$4 sm:$0xff]  }
  0x19   : > { %1248 = vmatprep.subr.bf16.mxu0 %v3752_v10  ;;  %v3809_v53 = vld [vmem:[%s4192_s8 + $0x84] ss:$16 sps:$4 sm:$0xff]   ;;  %v3824_v54 = vld [vmem:[%s4766_s1 + $0x160] ss:$8 sps:$4 sm:$0xff]   ;;  %v3830_v59 = vld [vmem:[%s4766_s1 + $0x170] ss:$8 sps:$4 sm:$0xff]  }
  0x1a   : > { %v3832_v55 = vld [vmem:[%s4766_s1 + $0x174] ss:$8 sps:$4 sm:$0xff]   ;;  %v3893_v56 = vld [vmem:[%s4769_s4 + $0x4] ss:$8 sps:$4 sm:$0xff]   ;;  %v3895_v57 = vld [vmem:[%s4769_s4] ss:$8 sps:$4 sm:$0xff]  }
  0x1b   : > { %v3896_v58 = vld [vmem:[%s4769_s4 + $0x14] ss:$8 sps:$4 sm:$0xff]   ;;  %v3838_v60 = vld [vmem:[%s4766_s1 + $0x184] ss:$8 sps:$4 sm:$0xff]   ;;  %v3900_v61 = vld [vmem:[%s4769_s4 + $0x10] ss:$8 sps:$4 sm:$0xff]   ;;  %2267 = vmatprep.subr.bf16.mxu1 %v3893_v56 }
  0x1c   : > { %1249 = vmatpush1.bf16.msra.mxu0 %v3754_v11  ;;  %v3811_v62 = vld [vmem:[%s4192_s8 + $0x80] ss:$16 sps:$4 sm:$0xff]   ;;  %v3815_v63 = vld [vmem:[%s4192_s8 + $0xa4] ss:$16 sps:$4 sm:$0xff]   ;;  %2268 = vmatpush1.bf16.msra.mxu1 %v3895_v57 }
  0x1d   : > { %1250 = vmatprep.subr.bf16.mxu0 %v3755_v12  ;;  %v3836_v0 = vld [vmem:[%s4766_s1 + $0x180] ss:$8 sps:$4 sm:$0xff]   ;;  %v3844_v1 = vld [vmem:[%s4766_s1 + $0x194] ss:$8 sps:$4 sm:$0xff]   ;;  %2269 = vmatprep.subr.bf16.mxu1 %v3896_v58  ;;  %v3902_v2 = vld [vmem:[%s4769_s4 + $0x24] ss:$8 sps:$4 sm:$0xff]  }
  0x1e   : > { %v3904_v3 = vld [vmem:[%s4769_s4 + $0x20] ss:$8 sps:$4 sm:$0xff]   ;;  %v3905_v4 = vld [vmem:[%s4769_s4 + $0x34] ss:$8 sps:$4 sm:$0xff]   ;;  %v3842_v5 = vld [vmem:[%s4766_s1 + $0x190] ss:$8 sps:$4 sm:$0xff]  }
  0x1f   : > { %v3850_v6 = vld [vmem:[%s4766_s1 + $0x1a4] ss:$8 sps:$4 sm:$0xff]   ;;  %v3909_v7 = vld [vmem:[%s4769_s4 + $0x30] ss:$8 sps:$4 sm:$0xff]   ;;  %v3848_v10 = vld [vmem:[%s4766_s1 + $0x1a0] ss:$8 sps:$4 sm:$0xff]  }
  0x20   : > { %1251 = vmatpush1.bf16.msra.mxu0 %v3757_v14  ;;  %2270 = vmatpush1.bf16.msra.mxu1 %v3900_v61  ;;  %v3817_v8 = vld [vmem:[%s4192_s8 + $0xa0] ss:$16 sps:$4 sm:$0xff]   ;;  %v3821_v9 = vld [vmem:[%s4192_s8 + $0xc4] ss:$16 sps:$4 sm:$0xff]  }
  0x21   : > { %1252 = vmatprep.subr.bf16.mxu0 %v3758_v15  ;;  %2271 = vmatprep.subr.bf16.mxu1 %v3902_v2  ;;  %v3856_v11 = vld [vmem:[%s4766_s1 + $0x1b4] ss:$8 sps:$4 sm:$0xff]   ;;  %v3911_v12 = vld [vmem:[%s4769_s4 + $0x44] ss:$8 sps:$4 sm:$0xff]   ;;  %v3913_v13 = vld [vmem:[%s4769_s4 + $0x40] ss:$8 sps:$4 sm:$0xff]  }
  0x22   : > { %v3914_v14 = vld [vmem:[%s4769_s4 + $0x54] ss:$8 sps:$4 sm:$0xff]   ;;  %v3854_v15 = vld [vmem:[%s4766_s1 + $0x1b0] ss:$8 sps:$4 sm:$0xff]   ;;  %v3967_v57 = vld [vmem:[%s4477_s9 + $0x4] ss:$8 sps:$4 sm:$0xff]  }
  0x23   : > { %v3857_v56 = vld [vmem:[%s4192_s8 + $0x184] ss:$16 sps:$4 sm:$0xff]   ;;  %v3965_v58 = vld [vmem:[%s4477_s9] ss:$8 sps:$4 sm:$0xff]   ;;  %2299 = vmatprep.mubr.bf16.mxu1 %v3967_v57 }
  0x24   : > { %1253 = vmatpush1.bf16.msra.mxu0 %v3760_v16  ;;  %2272 = vmatpush1.bf16.msra.mxu1 %v3904_v3  ;;  %v3862_v16 = vld [vmem:[%s4766_s1 + $0x1c4] ss:$8 sps:$4 sm:$0xff]   ;;  %v3859_v61 = vld [vmem:[%s4192_s8 + $0x180] ss:$16 sps:$4 sm:$0xff]   ;;  %v3979_v2 = vld [vmem:[%s4768_s3 + $0x14] ss:$8 sps:$4 sm:$0xff]  }
  0x25   : > { %1254 = vmatprep.subr.bf16.mxu0 %v3761_v17  ;;  %2273 = vmatprep.subr.bf16.mxu1 %v3905_v4  ;;  %v3918_v17 = vld [vmem:[%s4769_s4 + $0x50] ss:$8 sps:$4 sm:$0xff]   ;;  %v3869_v4 = vld [vmem:[%s4192_s8 + $0x1c4] ss:$16 sps:$4 sm:$0xff]  }
  0x26   : > { %v3865_v3 = vld [vmem:[%s4192_s8 + $0x1a0] ss:$16 sps:$4 sm:$0xff]   ;;  %v4066_v57 = vld [vmem:[%s4768_s3 + $0xe4] ss:$8 sps:$4 sm:$0xff]  }
  0x28   : > { %1255 = vmatpush1.bf16.msra.mxu0 %v3763_v18  ;;  %2274 = vmatpush1.bf16.msra.mxu1 %v3909_v7  ;;  %v3823_v18 = vld [vmem:[%s4192_s8 + $0xc0] ss:$16 sps:$4 sm:$0xff]  }
  0x29   : > { %1256 = vmatprep.subr.bf16.mxu0 %v3764_v19  ;;  %2275 = vmatprep.subr.bf16.mxu1 %v3911_v12  ;;  %v3827_v19 = vld [vmem:[%s4192_s8 + $0xe4] ss:$16 sps:$4 sm:$0xff]   ;;  %v3986_v7 = vld [vmem:[%s4768_s3 + $0x20] ss:$8 sps:$4 sm:$0xff]   ;;  %v3994_v12 = vld [vmem:[%s4477_s9 + $0x30] ss:$8 sps:$4 sm:$0xff]  }
  0x2c   : > { %1257 = vmatpush1.bf16.msra.mxu0 %v3766_v20  ;;  %2276 = vmatpush1.bf16.msra.mxu1 %v3913_v13  ;;  %v3860_v20 = vld [vmem:[%s4766_s1 + $0x1c0] ss:$8 sps:$4 sm:$0xff]   ;;  %v3995_v13 = vld [vmem:[%s4768_s3 + $0x30] ss:$8 sps:$4 sm:$0xff]  }
  0x2d   : > { %1258 = vmatprep.subr.bf16.mxu0 %v3767_v21  ;;  %2277 = vmatprep.subr.bf16.mxu1 %v3914_v14  ;;  %v3868_v21 = vld [vmem:[%s4766_s1 + $0x1d4] ss:$8 sps:$4 sm:$0xff]  }
  0x2e   : > { %v3997_v14 = vld [vmem:[%s4768_s3 + $0x34] ss:$8 sps:$4 sm:$0xff]  }
  0x30   : > { %1259 = vmatpush1.bf16.msra.mxu0 %v3769_v22  ;;  %2278 = vmatpush1.bf16.msra.mxu1 %v3918_v17  ;;  %v3920_v22 = vld [vmem:[%s4769_s4 + $0x64] ss:$8 sps:$4 sm:$0xff]  }
  0x31   : > { %1260 = vmatprep.subr.bf16.mxu0 %v3770_v23  ;;  %v3922_v23 = vld [vmem:[%s4769_s4 + $0x60] ss:$8 sps:$4 sm:$0xff]   ;;  %2279 = vmatprep.subr.bf16.mxu1 %v3920_v22  ;;  %v4001_v17 = vld [vmem:[%s4477_s9 + $0x44] ss:$8 sps:$4 sm:$0xff]   ;;  %v4012_v22 = vld [vmem:[%s4768_s3 + $0x54] ss:$8 sps:$4 sm:$0xff]  }
  0x34   : > { %1261 = vmatpush1.bf16.msra.mxu0 %v3772_v24  ;;  %v3923_v24 = vld [vmem:[%s4769_s4 + $0x74] ss:$8 sps:$4 sm:$0xff]   ;;  %2280 = vmatpush1.bf16.msra.mxu1 %v3922_v23  ;;  %v4010_v23 = vld [vmem:[%s4768_s3 + $0x50] ss:$8 sps:$4 sm:$0xff]  }
  0x35   : > { %1262 = vmatprep.subr.bf16.mxu0 %v3773_v25  ;;  %v3866_v25 = vld [vmem:[%s4766_s1 + $0x1d0] ss:$8 sps:$4 sm:$0xff]   ;;  %2281 = vmatprep.subr.bf16.mxu1 %v3923_v24 }
  0x36   : > { %v3881_v24 = vld [vmem:[%s4192_s8 + $0x8] ss:$16 sps:$4 sm:$0xff]  }
  0x38   : > { %1263 = vmatpush1.bf16.msra.mxu0 %v3775_v26  ;;  %v3874_v26 = vld [vmem:[%s4766_s1 + $0x1e4] ss:$8 sps:$4 sm:$0xff]  }
  0x39   : > { %1264 = vmatprep.subr.bf16.mxu0 %v3776_v27  ;;  %v3927_v27 = vld [vmem:[%s4769_s4 + $0x70] ss:$8 sps:$4 sm:$0xff]  }
  0x3a   : > { %2282 = vmatpush1.bf16.msra.mxu1 %v3927_v27  ;;  %v4009_v27 = vld [vmem:[%s4477_s9 + $0x50] ss:$8 sps:$4 sm:$0xff]  }
  0x3c   : > { %1265 = vmatpush1.bf16.msra.mxu0 %v3778_v28  ;;  %v3829_v28 = vld [vmem:[%s4192_s8 + $0xe0] ss:$16 sps:$4 sm:$0xff]  }
  0x3d   : > { %1266 = vmatprep.subr.bf16.mxu0 %v3779_v29  ;;  %v3833_v29 = vld [vmem:[%s4192_s8 + $0x104] ss:$16 sps:$4 sm:$0xff]  }
  0x40   : > { %1267 = vmatpush1.bf16.msra.mxu0 %v3781_v30  ;;  %v3872_v30 = vld [vmem:[%s4766_s1 + $0x1e0] ss:$8 sps:$4 sm:$0xff]  }
  0x41   : > { %1268 = vmatprep.subr.bf16.mxu0 %v3782_v31  ;;  %v3880_v31 = vld [vmem:[%s4766_s1 + $0x1f4] ss:$8 sps:$4 sm:$0xff]  }
  0x44   : > { %1269 = vmatpush1.bf16.msra.mxu0 %v3784_v32  ;;  %v3929_v32 = vld [vmem:[%s4769_s4 + $0x84] ss:$8 sps:$4 sm:$0xff]  }
  0x45   : > { %1431 = vmatprep.subr.bf16.mxu0 %v3790_v33  ;;  %v3931_v33 = vld [vmem:[%s4769_s4 + $0x80] ss:$8 sps:$4 sm:$0xff]   ;;  %2283 = vmatprep.subr.bf16.mxu1 %v3929_v32 }
  0x46   : > { %2284 = vmatpush1.bf16.msra.mxu1 %v3931_v33  ;;  %v3886_v32 = vld [vmem:[%s4192_s8 + $0x28] ss:$16 sps:$4 sm:$0xff]   ;;  %v4030_v33 = vld [vmem:[%s4768_s3 + $0x84] ss:$8 sps:$4 sm:$0xff]  }
  0x47   : > { %1271 = vmatmul.mubr.bf16.vlgmr.msra.gmra.mrb[0].mxu0 %v3785_v34  ;;  %v3932_v34 = vld [vmem:[%s4769_s4 + $0x94] ss:$8 sps:$4 sm:$0xff]  }
  0x48   : > { %1432 = vmatpush1.bf16.msra.mxu0 %v3788_v35  ;;  %1280 = vmatprep.mubr.bf16.mxu0 %v3791_v36  ;;  %v3878_v35 = vld [vmem:[%s4766_s1 + $0x1f0] ss:$8 sps:$4 sm:$0xff]  }
  0x49   : > { %1433 = vmatprep.subr.bf16.mxu0 %v3796_v37  ;;  %v3936_v36 = vld [vmem:[%s4769_s4 + $0x90] ss:$8 sps:$4 sm:$0xff]   ;;  %2285 = vmatprep.subr.bf16.mxu1 %v3932_v34  ;;  %v3887_v34 = vld [vmem:[%s4192_s8 + $0x4c] ss:$16 sps:$4 sm:$0xff]  }
  0x4a   : > { %v3835_v37 = vld [vmem:[%s4192_s8 + $0x100] ss:$16 sps:$4 sm:$0xff]   ;;  %2286 = vmatpush1.bf16.msra.mxu1 %v3936_v36  ;;  %v4019_v36 = vld [vmem:[%s4477_s9 + $0x74] ss:$8 sps:$4 sm:$0xff]  }
  0x4c   : > { %1434 = vmatpush1.bf16.msra.mxu0 %v3794_v38  ;;  %v3839_v38 = vld [vmem:[%s4192_s8 + $0x124] ss:$16 sps:$4 sm:$0xff]  }
  0x4d   : > { %1435 = vmatprep.subr.bf16.mxu0 %v3802_v39  ;;  %v3938_v39 = vld [vmem:[%s4769_s4 + $0xa4] ss:$8 sps:$4 sm:$0xff]  }
  0x4e   : > { %2287 = vmatprep.subr.bf16.mxu1 %v3938_v39  ;;  %v4034_v39 = vld [vmem:[%s4768_s3 + $0x90] ss:$8 sps:$4 sm:$0xff]  }
  0x4f   : > { %1281 = vmatmul.mubr.bf16.gmra.mrb[4].mxu0 %v3793_v40  ;;  %v3940_v40 = vld [vmem:[%s4769_s4 + $0xa0] ss:$8 sps:$4 sm:$0xff]  }
  0x50   : > { %1290 = vmatprep.mubr.bf16.mxu0 %v3797_v41  ;;  %1436 = vmatpush1.bf16.msra.mxu0 %v3800_v42  ;;  %v3941_v41 = vld [vmem:[%s4769_s4 + $0xb4] ss:$8 sps:$4 sm:$0xff]   ;;  %v3945_v42 = vld [vmem:[%s4769_s4 + $0xb0] ss:$8 sps:$4 sm:$0xff]  }
  0x51   : > { %1437 = vmatprep.subr.bf16.mxu0 %v3808_v43  ;;  %2288 = vmatpush1.bf16.msra.mxu1 %v3940_v40  ;;  %v3841_v43 = vld [vmem:[%s4192_s8 + $0x120] ss:$16 sps:$4 sm:$0xff]   ;;  %v3889_v40 = vld [vmem:[%s4192_s8 + $0x48] ss:$16 sps:$4 sm:$0xff]  }
  0x52   : > { %2289 = vmatprep.subr.bf16.mxu1 %v3941_v41  ;;  %v4042_v41 = vld [vmem:[%s4768_s3 + $0xa4] ss:$8 sps:$4 sm:$0xff]  }
  0x54   : > { %1438 = vmatpush1.bf16.msra.mxu0 %v3806_v44  ;;  %v3845_v44 = vld [vmem:[%s4192_s8 + $0x144] ss:$16 sps:$4 sm:$0xff]  }
  0x55   : > { %1439 = vmatprep.subr.bf16.mxu0 %v3814_v45  ;;  %2290 = vmatpush1.bf16.msra.mxu1 %v3945_v42  ;;  %v3947_v45 = vld [vmem:[%s4769_s4 + $0xc4] ss:$8 sps:$4 sm:$0xff]  }
  0x56   : > { %2291 = vmatprep.subr.bf16.mxu1 %v3947_v45  ;;  %v3890_v42 = vld [vmem:[%s4192_s8 + $0x6c] ss:$16 sps:$4 sm:$0xff]   ;;  %v4040_v45 = vld [vmem:[%s4768_s3 + $0xa0] ss:$8 sps:$4 sm:$0xff]  }
  0x57   : > { %1291 = vmatmul.mubr.bf16.gmra.mrb[8].mxu0 %v3799_v46  ;;  %v3949_v46 = vld [vmem:[%s4769_s4 + $0xc0] ss:$8 sps:$4 sm:$0xff]  }
  0x58   : > { %1300 = vmatprep.mubr.bf16.mxu0 %v3803_v47  ;;  %1440 = vmatpush1.bf16.msra.mxu0 %v3812_v48  ;;  %v3950_v47 = vld [vmem:[%s4769_s4 + $0xd4] ss:$8 sps:$4 sm:$0xff]   ;;  %v3954_v48 = vld [vmem:[%s4769_s4 + $0xd0] ss:$8 sps:$4 sm:$0xff]  }
  0x59   : > { %1441 = vmatprep.subr.bf16.mxu0 %v3820_v49  ;;  %2292 = vmatpush1.bf16.msra.mxu1 %v3949_v46  ;;  %v3847_v49 = vld [vmem:[%s4192_s8 + $0x140] ss:$16 sps:$4 sm:$0xff]   ;;  %v4048_v46 = vld [vmem:[%s4768_s3 + $0xb4] ss:$8 sps:$4 sm:$0xff]  }
  0x5a   : > { %2293 = vmatprep.subr.bf16.mxu1 %v3950_v47  ;;  %v4046_v47 = vld [vmem:[%s4768_s3 + $0xb0] ss:$8 sps:$4 sm:$0xff]  }
  0x5c   : > { %1442 = vmatpush1.bf16.msra.mxu0 %v3818_v50  ;;  %v3851_v50 = vld [vmem:[%s4192_s8 + $0x164] ss:$16 sps:$4 sm:$0xff]  }
  0x5d   : > { %1443 = vmatprep.subr.bf16.mxu0 %v3826_v51  ;;  %2294 = vmatpush1.bf16.msra.mxu1 %v3954_v48  ;;  %v3956_v51 = vld [vmem:[%s4769_s4 + $0xe4] ss:$8 sps:$4 sm:$0xff]   ;;  %v3892_v48 = vld [vmem:[%s4192_s8 + $0x68] ss:$16 sps:$4 sm:$0xff]  }
  0x5e   : > { %2295 = vmatprep.subr.bf16.mxu1 %v3956_v51  ;;  %v4027_v51 = vld [vmem:[%s4477_s9 + $0x80] ss:$8 sps:$4 sm:$0xff]  }
  0x5f   : > { %1301 = vmatmul.mubr.bf16.gmra.mrb[12].mxu0 %v3805_v52  ;;  %v3958_v52 = vld [vmem:[%s4769_s4 + $0xe0] ss:$8 sps:$4 sm:$0xff]  }
  0x60   : > { %1310 = vmatprep.mubr.bf16.mxu0 %v3809_v53  ;;  %1444 = vmatpush1.bf16.msra.mxu0 %v3824_v54  ;;  %v3959_v53 = vld [vmem:[%s4769_s4 + $0xf4] ss:$8 sps:$4 sm:$0xff]   ;;  %v3963_v54 = vld [vmem:[%s4769_s4 + $0xf0] ss:$8 sps:$4 sm:$0xff]  }
  0x61   : > { %1445 = vmatprep.subr.bf16.mxu0 %v3832_v55  ;;  %2296 = vmatpush1.bf16.msra.mxu1 %v3958_v52  ;;  %v3853_v55 = vld [vmem:[%s4192_s8 + $0x160] ss:$16 sps:$4 sm:$0xff]   ;;  %v4031_v52 = vld [vmem:[%s4477_s9 + $0x94] ss:$8 sps:$4 sm:$0xff]  }
  0x62   : > { %2297 = vmatprep.subr.bf16.mxu1 %v3959_v53  ;;  %v4052_v53 = vld [vmem:[%s4768_s3 + $0xc0] ss:$8 sps:$4 sm:$0xff]  }
  0x64   : > { %1446 = vmatpush1.bf16.msra.mxu0 %v3830_v59  ;;  %v3968_v59 = vld [vmem:[%s4768_s3] ss:$8 sps:$4 sm:$0xff]  }
  0x65   : > { %1447 = vmatprep.subr.bf16.mxu0 %v3838_v60  ;;  %2298 = vmatpush1.bf16.msra.mxu1 %v3963_v54  ;;  %v3970_v60 = vld [vmem:[%s4768_s3 + $0x4] ss:$8 sps:$4 sm:$0xff]   ;;  %v4060_v54 = vld [vmem:[%s4768_s3 + $0xd4] ss:$8 sps:$4 sm:$0xff]  }
  0x66   : > { %2620 = vmatprep.subr.bf16.mxu1 %v3970_v60  ;;  %v4037_v60 = vld [vmem:[%s4477_s9 + $0xa4] ss:$8 sps:$4 sm:$0xff]  }
  0x67   : > { %1311 = vmatmul.mubr.bf16.gmra.mrb[16].mxu0 %v3811_v62  ;;  %v3863_v62 = vld [vmem:[%s4192_s8 + $0x1a4] ss:$16 sps:$4 sm:$0xff]  }
  0x68   : > { %1320 = vmatprep.mubr.bf16.mxu0 %v3815_v63  ;;  %1448 = vmatpush1.bf16.msra.mxu0 %v3836_v0  ;;  %v3974_v63 = vld [vmem:[%s4477_s9 + $0x14] ss:$8 sps:$4 sm:$0xff]   ;;  %v3976_v0 = vld [vmem:[%s4477_s9 + $0x10] ss:$8 sps:$4 sm:$0xff]  }
  0x69   : > { %1449 = vmatprep.subr.bf16.mxu0 %v3844_v1  ;;  %2300 = vmatmul.mubr.bf16.vlgmr.msra.gmra.mrb[0].mxu1 %v3965_v58  ;;  %v3977_v1 = vld [vmem:[%s4768_s3 + $0x10] ss:$8 sps:$4 sm:$0xff]   ;;  %v3907_v58 = vld [vmem:[%s4192_s8 + $0xac] ss:$16 sps:$4 sm:$0xff]  }
  0x6a   : > { %2621 = vmatpush1.bf16.msra.mxu1 %v3968_v59  ;;  %2309 = vmatprep.mubr.bf16.mxu1 %v3974_v63  ;;  %v4033_v59 = vld [vmem:[%s4477_s9 + $0x90] ss:$8 sps:$4 sm:$0xff]  }
  0x6b   : > { %2622 = vmatprep.subr.bf16.mxu1 %v3979_v2  ;;  %v4070_v63 = vld [vmem:[%s4768_s3 + $0xf0] ss:$8 sps:$4 sm:$0xff]   ;;  %v4039_v2 = vld [vmem:[%s4477_s9 + $0xa0] ss:$8 sps:$4 sm:$0xff]  }
  0x6c   : > { %1450 = vmatpush1.bf16.msra.mxu0 %v3842_v5  ;;  %v3983_v5 = vld [vmem:[%s4477_s9 + $0x24] ss:$8 sps:$4 sm:$0xff]  }
  0x6d   : > { %1451 = vmatprep.subr.bf16.mxu0 %v3850_v6  ;;  %v3985_v6 = vld [vmem:[%s4477_s9 + $0x20] ss:$8 sps:$4 sm:$0xff]  }
  0x6e   : > { %2623 = vmatpush1.bf16.msra.mxu1 %v3977_v1  ;;  %v3916_v1 = vld [vmem:[%s4192_s8 + $0xcc] ss:$16 sps:$4 sm:$0xff]  }
  0x6f   : > { %1321 = vmatmul.mubr.bf16.gmra.mrb[20].mxu0 %v3817_v8  ;;  %v3988_v8 = vld [vmem:[%s4768_s3 + $0x24] ss:$8 sps:$4 sm:$0xff]  }
  0x70   : > { %1330 = vmatprep.mubr.bf16.mxu0 %v3821_v9  ;;  %1452 = vmatpush1.bf16.msra.mxu0 %v3848_v10  ;;  %v3871_v9 = vld [vmem:[%s4192_s8 + $0x1c0] ss:$16 sps:$4 sm:$0xff]   ;;  %v3875_v10 = vld [vmem:[%s4192_s8 + $0x1e4] ss:$16 sps:$4 sm:$0xff]  }
  0x71   : > { %1453 = vmatprep.subr.bf16.mxu0 %v3856_v11  ;;  %2310 = vmatmul.mubr.bf16.gmra.mrb[4].mxu1 %v3976_v0  ;;  %v3992_v11 = vld [vmem:[%s4477_s9 + $0x34] ss:$8 sps:$4 sm:$0xff]   ;;  %v3910_v0 = vld [vmem:[%s4192_s8 + $0xa8] ss:$16 sps:$4 sm:$0xff]  }
  0x72   : > { %2319 = vmatprep.mubr.bf16.mxu1 %v3983_v5  ;;  %2624 = vmatprep.subr.bf16.mxu1 %v3988_v8  ;;  %v3925_v5 = vld [vmem:[%s4192_s8 + $0xec] ss:$16 sps:$4 sm:$0xff]   ;;  %v3928_v8 = vld [vmem:[%s4192_s8 + $0xe8] ss:$16 sps:$4 sm:$0xff]  }
  0x73   : > { %2625 = vmatpush1.bf16.msra.mxu1 %v3986_v7  ;;  %v4049_v7 = vld [vmem:[%s4477_s9 + $0xc4] ss:$8 sps:$4 sm:$0xff]  }
  0x74   : > { %1454 = vmatpush1.bf16.msra.mxu0 %v3854_v15  ;;  %2626 = vmatprep.subr.bf16.mxu1 %v3997_v14  ;;  %v3877_v15 = vld [vmem:[%s4192_s8 + $0x1e0] ss:$16 sps:$4 sm:$0xff]  }
  0x75   : > { %1455 = vmatprep.subr.bf16.mxu0 %v3862_v16  ;;  %v3883_v16 = vld [vmem:[%s4192_s8 + $0xc] ss:$16 sps:$4 sm:$0xff]   ;;  %v4057_v14 = vld [vmem:[%s4477_s9 + $0xd0] ss:$8 sps:$4 sm:$0xff]  }
  0x77   : > { %1331 = vmatmul.mubr.bf16.gmra.mrb[24].mxu0 %v3823_v18  ;;  %2627 = vmatpush1.bf16.msra.mxu1 %v3995_v13  ;;  %v4003_v18 = vld [vmem:[%s4477_s9 + $0x40] ss:$8 sps:$4 sm:$0xff]   ;;  %v3943_v13 = vld [vmem:[%s4192_s8 + $0x12c] ss:$16 sps:$4 sm:$0xff]  }
  0x78   : > { %1340 = vmatprep.mubr.bf16.mxu0 %v3827_v19  ;;  %1456 = vmatpush1.bf16.msra.mxu0 %v3860_v20  ;;  %v4004_v19 = vld [vmem:[%s4768_s3 + $0x40] ss:$8 sps:$4 sm:$0xff]   ;;  %v4006_v20 = vld [vmem:[%s4768_s3 + $0x44] ss:$8 sps:$4 sm:$0xff]  }
  0x79   : > { %1457 = vmatprep.subr.bf16.mxu0 %v3868_v21  ;;  %2320 = vmatmul.mubr.bf16.gmra.mrb[8].mxu1 %v3985_v6  ;;  %v4007_v21 = vld [vmem:[%s4477_s9 + $0x54] ss:$8 sps:$4 sm:$0xff]   ;;  %v4045_v6 = vld [vmem:[%s4477_s9 + $0xb0] ss:$8 sps:$4 sm:$0xff]  }
  0x7a   : > { %2329 = vmatprep.mubr.bf16.mxu1 %v3992_v11  ;;  %2628 = vmatprep.subr.bf16.mxu1 %v4006_v20  ;;  %v4055_v11 = vld [vmem:[%s4477_s9 + $0xd4] ss:$8 sps:$4 sm:$0xff]   ;;  %v3955_v20 = vld [vmem:[%s4192_s8 + $0x148] ss:$16 sps:$4 sm:$0xff]  }
  0x7b   : > { %2629 = vmatpush1.bf16.msra.mxu1 %v4004_v19  ;;  %v4067_v19 = vld [vmem:[%s4477_s9 + $0xf4] ss:$8 sps:$4 sm:$0xff]  }
  0x7c   : > { %1458 = vmatpush1.bf16.msra.mxu0 %v3866_v25  ;;  %2630 = vmatprep.subr.bf16.mxu1 %v4012_v22  ;;  %v4018_v25 = vld [vmem:[%s4768_s3 + $0x64] ss:$8 sps:$4 sm:$0xff]   ;;  %v4069_v22 = vld [vmem:[%s4477_s9 + $0xf0] ss:$8 sps:$4 sm:$0xff]  }
  0x7d   : > { %1459 = vmatprep.subr.bf16.mxu0 %v3874_v26  ;;  %v3884_v26 = vld [vmem:[%s4192_s8 + $0x2c] ss:$16 sps:$4 sm:$0xff]  }
  0x7f   : > { %1341 = vmatmul.mubr.bf16.gmra.mrb[28].mxu0 %v3829_v28  ;;  %2631 = vmatpush1.bf16.msra.mxu1 %v4010_v23  ;;  %v4013_v28 = vld [vmem:[%s4477_s9 + $0x64] ss:$8 sps:$4 sm:$0xff]   ;;  %v3964_v23 = vld [vmem:[%s4192_s8 + $0x168] ss:$16 sps:$4 sm:$0xff]  }
  0x80   : > { %1350 = vmatprep.mubr.bf16.mxu0 %v3833_v29  ;;  %1460 = vmatpush1.bf16.msra.mxu0 %v3872_v30  ;;  %v4016_v29 = vld [vmem:[%s4768_s3 + $0x60] ss:$8 sps:$4 sm:$0xff]   ;;  %v4024_v30 = vld [vmem:[%s4768_s3 + $0x74] ss:$8 sps:$4 sm:$0xff]  }
  0x81   : > { %1461 = vmatprep.subr.bf16.mxu0 %v3880_v31  ;;  %2330 = vmatmul.mubr.bf16.gmra.mrb[12].mxu1 %v3994_v12  ;;  %v4022_v31 = vld [vmem:[%s4768_s3 + $0x70] ss:$8 sps:$4 sm:$0xff]  }
  0x82   : > { %2339 = vmatprep.mubr.bf16.mxu1 %v4001_v17  ;;  %2632 = vmatprep.subr.bf16.mxu1 %v4018_v25  ;;  %v3937_v12 = vld [vmem:[%s4192_s8 + $0x108] ss:$16 sps:$4 sm:$0xff]   ;;  %v3952_v17 = vld [vmem:[%s4192_s8 + $0x14c] ss:$16 sps:$4 sm:$0xff]  }
  0x83   : > { %2633 = vmatpush1.bf16.msra.mxu1 %v4016_v29  ;;  %v3973_v25 = vld [vmem:[%s4192_s8 + $0x188] ss:$16 sps:$4 sm:$0xff]  }
  0x84   : > { %1462 = vmatpush1.bf16.msra.mxu0 %v3878_v35  ;;  %2634 = vmatprep.subr.bf16.mxu1 %v4024_v30  ;;  %v4015_v35 = vld [vmem:[%s4477_s9 + $0x60] ss:$8 sps:$4 sm:$0xff]   ;;  %v3998_v30 = vld [vmem:[%s4192_s8 + $0x1ec] ss:$16 sps:$4 sm:$0xff]  }
  0x85   : > { %v3991_v29 = vld [vmem:[%s4192_s8 + $0x1c8] ss:$16 sps:$4 sm:$0xff]  }
  0x87   : > { %1351 = vmatmul.mubr.bf16.gmra.mrb[32].mxu0 %v3835_v37  ;;  %2635 = vmatpush1.bf16.msra.mxu1 %v4022_v31  ;;  %v4028_v37 = vld [vmem:[%s4768_s3 + $0x80] ss:$8 sps:$4 sm:$0xff]  }
  0x88   : > { %1360 = vmatprep.mubr.bf16.mxu0 %v3839_v38  ;;  %2636 = vmatprep.subr.bf16.mxu1 %v4030_v33  ;;  %v4036_v38 = vld [vmem:[%s4768_s3 + $0x94] ss:$8 sps:$4 sm:$0xff]   ;;  %v4000_v31 = vld [vmem:[%s4192_s8 + $0x1e8] ss:$16 sps:$4 sm:$0xff]  }
  0x89   : > { %2340 = vmatmul.mubr.bf16.gmra.mrb[16].mxu1 %v4003_v18  ;;  %v4063_v18 = vld [vmem:[%s4477_s9 + $0xe0] ss:$8 sps:$4 sm:$0xff]  }
  0x8a   : > { %2349 = vmatprep.mubr.bf16.mxu1 %v4007_v21  ;;  %v3961_v21 = vld [vmem:[%s4192_s8 + $0x16c] ss:$16 sps:$4 sm:$0xff]  }
  0x8b   : > { %2637 = vmatpush1.bf16.msra.mxu1 %v4028_v37 }
  0x8c   : > { %2638 = vmatprep.subr.bf16.mxu1 %v4036_v38 }
  0x8f   : > { %1361 = vmatmul.mubr.bf16.gmra.mrb[36].mxu0 %v3841_v43  ;;  %v4021_v43 = vld [vmem:[%s4477_s9 + $0x70] ss:$8 sps:$4 sm:$0xff]   ;;  %2639 = vmatpush1.bf16.msra.mxu1 %v4034_v39 }
  0x90   : > { %1370 = vmatprep.mubr.bf16.mxu0 %v3845_v44  ;;  %v4025_v44 = vld [vmem:[%s4477_s9 + $0x84] ss:$8 sps:$4 sm:$0xff]   ;;  %2640 = vmatprep.subr.bf16.mxu1 %v4042_v41 }
  0x91   : > { %2350 = vmatmul.mubr.bf16.gmra.mrb[20].mxu1 %v4009_v27  ;;  %v3982_v27 = vld [vmem:[%s4192_s8 + $0x1a8] ss:$16 sps:$4 sm:$0xff]  }
  0x92   : > { %2359 = vmatprep.mubr.bf16.mxu1 %v4013_v28  ;;  %v3989_v28 = vld [vmem:[%s4192_s8 + $0x1cc] ss:$16 sps:$4 sm:$0xff]  }
  0x93   : > { %2641 = vmatpush1.bf16.msra.mxu1 %v4040_v45 }
  0x94   : > { %2642 = vmatprep.subr.bf16.mxu1 %v4048_v46 }
  0x97   : > { %1371 = vmatmul.mubr.bf16.gmra.mrb[40].mxu0 %v3847_v49  ;;  %v4054_v49 = vld [vmem:[%s4768_s3 + $0xc4] ss:$8 sps:$4 sm:$0xff]   ;;  %2643 = vmatpush1.bf16.msra.mxu1 %v4046_v47 }
  0x98   : > { %1380 = vmatprep.mubr.bf16.mxu0 %v3851_v50  ;;  %v3898_v50 = vld [vmem:[%s4192_s8 + $0x8c] ss:$16 sps:$4 sm:$0xff]   ;;  %2644 = vmatprep.subr.bf16.mxu1 %v4054_v49 }
  0x99   : > { %2360 = vmatmul.mubr.bf16.gmra.mrb[24].mxu1 %v4015_v35 }
  0x9a   : > { %2369 = vmatprep.mubr.bf16.mxu1 %v4019_v36 }
  0x9b   : > { %2645 = vmatpush1.bf16.msra.mxu1 %v4052_v53 }
  0x9c   : > { %2646 = vmatprep.subr.bf16.mxu1 %v4060_v54 }
  0x9f   : > { %1381 = vmatmul.mubr.bf16.gmra.mrb[44].mxu0 %v3853_v55  ;;  %v4058_v55 = vld [vmem:[%s4768_s3 + $0xd0] ss:$8 sps:$4 sm:$0xff]  }
  0xa0   : > { %1390 = vmatprep.mubr.bf16.mxu0 %v3857_v56  ;;  %v3901_v56 = vld [vmem:[%s4192_s8 + $0x88] ss:$16 sps:$4 sm:$0xff]   ;;  %2647 = vmatpush1.bf16.msra.mxu1 %v4058_v55 }
  0xa1   : > { %2370 = vmatmul.mubr.bf16.gmra.mrb[28].mxu1 %v4021_v43  ;;  %2648 = vmatprep.subr.bf16.mxu1 %v4066_v57 }
  0xa2   : > { %2379 = vmatprep.mubr.bf16.mxu1 %v4025_v44 }
  0xa7   : > { %1391 = vmatmul.mubr.bf16.gmra.mrb[48].mxu0 %v3859_v61  ;;  %v4064_v61 = vld [vmem:[%s4768_s3 + $0xe0] ss:$8 sps:$4 sm:$0xff]  }
  0xa8   : > { %1400 = vmatprep.mubr.bf16.mxu0 %v3863_v62  ;;  %v4072_v62 = vld [vmem:[%s4768_s3 + $0xf4] ss:$8 sps:$4 sm:$0xff]   ;;  %2649 = vmatpush1.bf16.msra.mxu1 %v4064_v61 }
  0xa9   : > { %2380 = vmatmul.mubr.bf16.gmra.mrb[32].mxu1 %v4027_v51  ;;  %2650 = vmatprep.subr.bf16.mxu1 %v4072_v62 }
  0xaa   : > { %2389 = vmatprep.mubr.bf16.mxu1 %v4031_v52 }
  0xac   : > { %2651 = vmatpush1.bf16.msra.mxu1 %v4070_v63 }
  0xaf   : > { %1401 = vmatmul.mubr.bf16.gmra.mrb[52].mxu0 %v3865_v3  ;;  %v4043_v3 = vld [vmem:[%s4477_s9 + $0xb4] ss:$8 sps:$4 sm:$0xff]  }
  0xb0   : > { %1410 = vmatprep.mubr.bf16.mxu0 %v3869_v4  ;;  %v3919_v4 = vld [vmem:[%s4192_s8 + $0xc8] ss:$16 sps:$4 sm:$0xff]  }
  0xb1   : > { %2390 = vmatmul.mubr.bf16.gmra.mrb[36].mxu1 %v4033_v59 }
  0xb2   : > { %2399 = vmatprep.mubr.bf16.mxu1 %v4037_v60 }
  0xb7   : > { %1411 = vmatmul.mubr.bf16.gmra.mrb[56].mxu0 %v3871_v9  ;;  %v3934_v9 = vld [vmem:[%s4192_s8 + $0x10c] ss:$16 sps:$4 sm:$0xff]  }
  0xb8   : > { %1420 = vmatprep.mubr.bf16.mxu0 %v3875_v10  ;;  %v4051_v10 = vld [vmem:[%s4477_s9 + $0xc0] ss:$8 sps:$4 sm:$0xff]  }
  0xb9   : > { %2400 = vmatmul.mubr.bf16.gmra.mrb[40].mxu1 %v4039_v2 }
  0xba   : > { %2409 = vmatprep.mubr.bf16.mxu1 %v4043_v3 }
  0xbf   : > { %1421 = vmatmul.mubr.bf16.gmra.mrb[60].mxu0 %v3877_v15  ;;  %v4061_v15 = vld [vmem:[%s4477_s9 + $0xe4] ss:$8 sps:$4 sm:$0xff]  }
  0xc0   : > { %1463 = vmatprep.mubr.bf16.mxu0 %v3883_v16  ;;  %v3946_v16 = vld [vmem:[%s4192_s8 + $0x128] ss:$16 sps:$4 sm:$0xff]  }
  0xc1   : > { %2410 = vmatmul.mubr.bf16.gmra.mrb[44].mxu1 %v4045_v6 }
  0xc2   : > { %2419 = vmatprep.mubr.bf16.mxu1 %v4049_v7 }
  0xc7   : > { %1464 = vmatmul.mubr.bf16.vlgmr.msra.gmra.mrb[0].mxu0 %v3881_v24  ;;  %v3971_v24 = vld [vmem:[%s4192_s8 + $0x18c] ss:$16 sps:$4 sm:$0xff]  }
  0xc8   : > { %1473 = vmatprep.mubr.bf16.mxu0 %v3884_v26  ;;  %v3980_v26 = vld [vmem:[%s4192_s8 + $0x1ac] ss:$16 sps:$4 sm:$0xff]  }
  0xc9   : > { %2420 = vmatmul.mubr.bf16.gmra.mrb[48].mxu1 %v4051_v10 }
  0xca   : > { %2429 = vmatprep.mubr.bf16.mxu1 %v4055_v11 }
  0xcf   : > { %1474 = vmatmul.mubr.bf16.gmra.mrb[4].mxu0 %v3886_v32 }
  0xd0   : > { %1483 = vmatprep.mubr.bf16.mxu0 %v3887_v34 }
  0xd1   : > { %2430 = vmatmul.mubr.bf16.gmra.mrb[52].mxu1 %v4057_v14 }
  0xd2   : > { %2439 = vmatprep.mubr.bf16.mxu1 %v4061_v15 }
  0xd7   : > { %1484 = vmatmul.mubr.bf16.gmra.mrb[8].mxu0 %v3889_v40 }
  0xd8   : > { %1493 = vmatprep.mubr.bf16.mxu0 %v3890_v42 }
  0xd9   : > { %2440 = vmatmul.mubr.bf16.gmra.mrb[56].mxu1 %v4063_v18 }
  0xda   : > { %2449 = vmatprep.mubr.bf16.mxu1 %v4067_v19 }
  0xdf   : > { %1494 = vmatmul.mubr.bf16.gmra.mrb[12].mxu0 %v3892_v48 }
  0xe0   : > { %1503 = vmatprep.mubr.bf16.mxu0 %v3898_v50 }
  0xe1   : > { %2450 = vmatmul.mubr.bf16.gmra.mrb[60].mxu1 %v4069_v22 }
  0xe7   : > { %1504 = vmatmul.mubr.bf16.gmra.mrb[16].mxu0 %v3901_v56 }
  0xe8   : > { %1513 = vmatprep.mubr.bf16.mxu0 %v3907_v58 }
  0xef   : > { %1514 = vmatmul.mubr.bf16.gmra.mrb[20].mxu0 %v3910_v0 }
  0xf0   : > { %1523 = vmatprep.mubr.bf16.mxu0 %v3916_v1 }
  0xf7   : > { %1524 = vmatmul.mubr.bf16.gmra.mrb[24].mxu0 %v3919_v4 }
  0xf8   : > { %1533 = vmatprep.mubr.bf16.mxu0 %v3925_v5 }
  0xff   : > { %1534 = vmatmul.mubr.bf16.gmra.mrb[28].mxu0 %v3928_v8 }
 0x100   : > { %1543 = vmatprep.mubr.bf16.mxu0 %v3934_v9 }
 0x107   : > { %1544 = vmatmul.mubr.bf16.gmra.mrb[32].mxu0 %v3937_v12 }
 0x108   : > { %1553 = vmatprep.mubr.bf16.mxu0 %v3943_v13 }
 0x10f   : > { %1554 = vmatmul.mubr.bf16.gmra.mrb[36].mxu0 %v3946_v16 }
 0x110   : > { %1563 = vmatprep.mubr.bf16.mxu0 %v3952_v17 }
 0x117   : > { %1564 = vmatmul.mubr.bf16.gmra.mrb[40].mxu0 %v3955_v20 }
 0x118   : > { %1573 = vmatprep.mubr.bf16.mxu0 %v3961_v21 }
 0x11f   : > { %1574 = vmatmul.mubr.bf16.gmra.mrb[44].mxu0 %v3964_v23 }
 0x120   : > { %1583 = vmatprep.mubr.bf16.mxu0 %v3971_v24 }
 0x127   : > { %1584 = vmatmul.mubr.bf16.gmra.mrb[48].mxu0 %v3973_v25 }
 0x128   : > { %1593 = vmatprep.mubr.bf16.mxu0 %v3980_v26 }
 0x12f   : > { %1594 = vmatmul.mubr.bf16.gmra.mrb[52].mxu0 %v3982_v27 }
 0x130   : > { %1603 = vmatprep.mubr.bf16.mxu0 %v3989_v28 }
 0x137   : > { %1604 = vmatmul.mubr.bf16.gmra.mrb[56].mxu0 %v3991_v29 }
 0x138   : > { %1613 = vmatprep.mubr.bf16.mxu0 %v3998_v30 }
 0x13f   : > { %1614 = vmatmul.mubr.bf16.gmra.mrb[60].mxu0 %v4000_v31 }
 0x19a   : > { %v1465_v32 = vpop.f32.mrb[0].mxu0 }
 0x19b   : > { %v1467_v33 = vpop.f32.mrb[1].mxu0 }
 0x19c   : > { %v1469_v34 = vpop.f32.mrb[2].mxu0 }
 0x19d   : > { %v1819_v35 = vpack.c.bf16 %v1469_v34, %v1465_v32  ;;  %v1471_v36 = vpop.f32.mrb[3].mxu0 }
 0x19e   : > { %v1820_v37 = vpack.c.bf16 %v1471_v36, %v1467_v33 }
 0x1a0   : > { %2652 = vmatprep.mubr.bf16.mxu1 %v1820_v37 }
 0x1a1   : > { %2653 = vmatmul.mubr.bf16.vlgmr.msra.gmra.mrb[0].mxu1 %v1819_v35 }
 0x1a2   : > { %v1475_v38 = vpop.f32.mrb[4].mxu0 }
 0x1a3   : > { %v1477_v39 = vpop.f32.mrb[5].mxu0 }
 0x1a4   : > { %v1479_v40 = vpop.f32.mrb[6].mxu0 }
 0x1a5   : > { %v1821_v41 = vpack.c.bf16 %v1479_v40, %v1475_v38  ;;  %v1481_v42 = vpop.f32.mrb[7].mxu0 }
 0x1a6   : > { %v1822_v43 = vpack.c.bf16 %v1481_v42, %v1477_v39 }
 0x1a8   : > { %2662 = vmatprep.mubr.bf16.mxu1 %v1822_v43 }
 0x1a9   : > { %2663 = vmatmul.mubr.bf16.gmra.mrb[4].mxu1 %v1821_v41 }
 0x1aa   : > { %v1485_v44 = vpop.f32.mrb[8].mxu0 }
 0x1ab   : > { %v1487_v45 = vpop.f32.mrb[9].mxu0 }
 0x1ac   : > { %v1489_v46 = vpop.f32.mrb[10].mxu0 }
 0x1ad   : > { %v1823_v47 = vpack.c.bf16 %v1489_v46, %v1485_v44  ;;  %v1491_v48 = vpop.f32.mrb[11].mxu0 }
 0x1ae   : > { %v1824_v49 = vpack.c.bf16 %v1491_v48, %v1487_v45 }
 0x1b0   : > { %2672 = vmatprep.mubr.bf16.mxu1 %v1824_v49 }
 0x1b1   : > { %2673 = vmatmul.mubr.bf16.gmra.mrb[8].mxu1 %v1823_v47 }
 0x1b2   : > { %v1495_v50 = vpop.f32.mrb[12].mxu0 }
 0x1b3   : > { %v1497_v51 = vpop.f32.mrb[13].mxu0 }
 0x1b4   : > { %v1499_v52 = vpop.f32.mrb[14].mxu0 }
 0x1b5   : > { %v1825_v53 = vpack.c.bf16 %v1499_v52, %v1495_v50  ;;  %v1501_v54 = vpop.f32.mrb[15].mxu0 }
 0x1b6   : > { %v1826_v55 = vpack.c.bf16 %v1501_v54, %v1497_v51 }
 0x1b8   : > { %2682 = vmatprep.mubr.bf16.mxu1 %v1826_v55 }
 0x1b9   : > { %2683 = vmatmul.mubr.bf16.gmra.mrb[12].mxu1 %v1825_v53 }
 0x1ba   : > { %v1505_v56 = vpop.f32.mrb[16].mxu0 }
 0x1bb   : > { %v1507_v57 = vpop.f32.mrb[17].mxu0 }
 0x1bc   : > { %v1509_v58 = vpop.f32.mrb[18].mxu0 }
 0x1bd   : > { %v1827_v59 = vpack.c.bf16 %v1509_v58, %v1505_v56  ;;  %v1511_v60 = vpop.f32.mrb[19].mxu0 }
 0x1be   : > { %v1828_v61 = vpack.c.bf16 %v1511_v60, %v1507_v57 }
 0x1c0   : > { %2692 = vmatprep.mubr.bf16.mxu1 %v1828_v61 }
 0x1c1   : > { %2693 = vmatmul.mubr.bf16.gmra.mrb[16].mxu1 %v1827_v59 }
 0x1c2   : > { %v1515_v62 = vpop.f32.mrb[20].mxu0 }
 0x1c3   : > { %v1517_v63 = vpop.f32.mrb[21].mxu0 }
 0x1c4   : > { %v1519_v0 = vpop.f32.mrb[22].mxu0 }
 0x1c5   : > { %v1829_v1 = vpack.c.bf16 %v1519_v0, %v1515_v62  ;;  %v1521_v2 = vpop.f32.mrb[23].mxu0  ;;  %v2815_v0 = vlaneseq }
 0x1c6   : > { %v1830_v3 = vpack.c.bf16 %v1521_v2, %v1517_v63 }
 0x1c8   : > { %2702 = vmatprep.mubr.bf16.mxu1 %v1830_v3  ;;  %v2813_v3 = vld [vmem:[%s4770_s5] sm:$0x3] }
 0x1c9   : > { %2703 = vmatmul.mubr.bf16.gmra.mrb[20].mxu1 %v1829_v1  ;;  %v2816_v1 = vshrl.u32 %v2815_v0, 7 }
 0x1ca   : > { %v1525_v4 = vpop.f32.mrb[24].mxu0 }
 0x1cb   : > { %v1527_v5 = vpop.f32.mrb[25].mxu0  ;;  %v2817_v2 = vsub.s32 0, %v2816_v1 }
 0x1cc   : > { %v1529_v6 = vpop.f32.mrb[26].mxu0 }
 0x1cd   : > { %v1831_v7 = vpack.c.bf16 %v1529_v6, %v1525_v4  ;;  %v1531_v8 = vpop.f32.mrb[27].mxu0  ;;  %v2821_v4 = vsub.s32 1, %v2816_v1 }
 0x1ce   : > { %v1832_v9 = vpack.c.bf16 %v1531_v8, %v1527_v5  ;;  %v4649_v5 = vrot.slane %v2813_v3, %v2817_v2 }
 0x1cf   : > { %v4651_v6 = vrot.slane %v2813_v3, %v2821_v4 }
 0x1d0   : > { %2712 = vmatprep.mubr.bf16.mxu1 %v1832_v9 }
 0x1d1   : > { %2713 = vmatmul.mubr.bf16.gmra.mrb[24].mxu1 %v1831_v7 }
 0x1d2   : > { %v1535_v10 = vpop.f32.mrb[28].mxu0 }
 0x1d3   : > { %v1537_v11 = vpop.f32.mrb[29].mxu0 }
 0x1d4   : > { %v1539_v12 = vpop.f32.mrb[30].mxu0 }
 0x1d5   : > { %v1833_v13 = vpack.c.bf16 %v1539_v12, %v1535_v10  ;;  %v1541_v14 = vpop.f32.mrb[31].mxu0 }
 0x1d6   : > { %v1834_v15 = vpack.c.bf16 %v1541_v14, %v1537_v11 }
 0x1d8   : > { %2722 = vmatprep.mubr.bf16.mxu1 %v1834_v15 }
 0x1d9   : > { %2723 = vmatmul.mubr.bf16.gmra.mrb[28].mxu1 %v1833_v13 }
 0x1da   : > { %v1545_v16 = vpop.f32.mrb[32].mxu0 }
 0x1db   : > { %v1547_v17 = vpop.f32.mrb[33].mxu0 }
 0x1dc   : > { %v1549_v18 = vpop.f32.mrb[34].mxu0 }
 0x1dd   : > { %v1835_v19 = vpack.c.bf16 %v1549_v18, %v1545_v16  ;;  %v1551_v20 = vpop.f32.mrb[35].mxu0 }
 0x1de   : > { %v1836_v21 = vpack.c.bf16 %v1551_v20, %v1547_v17 }
 0x1e0   : > { %2732 = vmatprep.mubr.bf16.mxu1 %v1836_v21 }
 0x1e1   : > { %2733 = vmatmul.mubr.bf16.gmra.mrb[32].mxu1 %v1835_v19 }
 0x1e2   : > { %v1555_v22 = vpop.f32.mrb[36].mxu0 }
 0x1e3   : > { %v1557_v23 = vpop.f32.mrb[37].mxu0 }
 0x1e4   : > { %v1559_v24 = vpop.f32.mrb[38].mxu0 }
 0x1e5   : > { %v1837_v25 = vpack.c.bf16 %v1559_v24, %v1555_v22  ;;  %v1561_v26 = vpop.f32.mrb[39].mxu0 }
 0x1e6   : > { %v1838_v27 = vpack.c.bf16 %v1561_v26, %v1557_v23 }
 0x1e8   : > { %2742 = vmatprep.mubr.bf16.mxu1 %v1838_v27 }
 0x1e9   : > { %2743 = vmatmul.mubr.bf16.gmra.mrb[36].mxu1 %v1837_v25 }
 0x1ea   : > { %v1565_v28 = vpop.f32.mrb[40].mxu0 }
 0x1eb   : > { %v1567_v29 = vpop.f32.mrb[41].mxu0 }
 0x1ec   : > { %v1569_v30 = vpop.f32.mrb[42].mxu0 }
 0x1ed   : > { %v1839_v31 = vpack.c.bf16 %v1569_v30, %v1565_v28  ;;  %v1571_v32 = vpop.f32.mrb[43].mxu0 }
 0x1ee   : > { %v1840_v33 = vpack.c.bf16 %v1571_v32, %v1567_v29 }
 0x1f0   : > { %2752 = vmatprep.mubr.bf16.mxu1 %v1840_v33 }
 0x1f1   : > { %2753 = vmatmul.mubr.bf16.gmra.mrb[40].mxu1 %v1839_v31 }
 0x1f2   : > { %v1575_v34 = vpop.f32.mrb[44].mxu0 }
 0x1f3   : > { %v1577_v35 = vpop.f32.mrb[45].mxu0 }
 0x1f4   : > { %v1579_v36 = vpop.f32.mrb[46].mxu0 }
 0x1f5   : > { %v1841_v37 = vpack.c.bf16 %v1579_v36, %v1575_v34  ;;  %v1581_v38 = vpop.f32.mrb[47].mxu0 }
 0x1f6   : > { %v1842_v39 = vpack.c.bf16 %v1581_v38, %v1577_v35 }
 0x1f8   : > { %2762 = vmatprep.mubr.bf16.mxu1 %v1842_v39 }
 0x1f9   : > { %2763 = vmatmul.mubr.bf16.gmra.mrb[44].mxu1 %v1841_v37 }
 0x1fa   : > { %v1585_v40 = vpop.f32.mrb[48].mxu0 }
 0x1fb   : > { %v1587_v41 = vpop.f32.mrb[49].mxu0 }
 0x1fc   : > { %v1589_v42 = vpop.f32.mrb[50].mxu0 }
 0x1fd   : > { %v1843_v43 = vpack.c.bf16 %v1589_v42, %v1585_v40  ;;  %v1591_v44 = vpop.f32.mrb[51].mxu0 }
 0x1fe   : > { %v1844_v45 = vpack.c.bf16 %v1591_v44, %v1587_v41 }
 0x200   : > { %2772 = vmatprep.mubr.bf16.mxu1 %v1844_v45 }
 0x201   : > { %2773 = vmatmul.mubr.bf16.gmra.mrb[48].mxu1 %v1843_v43 }
 0x202   : > { %v1595_v46 = vpop.f32.mrb[52].mxu0 }
 0x203   : > { %v1597_v47 = vpop.f32.mrb[53].mxu0 }
 0x204   : > { %v1599_v48 = vpop.f32.mrb[54].mxu0 }
 0x205   : > { %v1845_v49 = vpack.c.bf16 %v1599_v48, %v1595_v46  ;;  %v1601_v50 = vpop.f32.mrb[55].mxu0 }
 0x206   : > { %v1846_v51 = vpack.c.bf16 %v1601_v50, %v1597_v47 }
 0x208   : > { %2782 = vmatprep.mubr.bf16.mxu1 %v1846_v51 }
 0x209   : > { %2783 = vmatmul.mubr.bf16.gmra.mrb[52].mxu1 %v1845_v49 }
 0x20a   : > { %v1605_v52 = vpop.f32.mrb[56].mxu0 }
 0x20b   : > { %v1607_v53 = vpop.f32.mrb[57].mxu0 }
 0x20c   : > { %v1609_v54 = vpop.f32.mrb[58].mxu0 }
 0x20d   : > { %v1847_v55 = vpack.c.bf16 %v1609_v54, %v1605_v52  ;;  %v1611_v56 = vpop.f32.mrb[59].mxu0 }
 0x20e   : > { %v1848_v57 = vpack.c.bf16 %v1611_v56, %v1607_v53 }
 0x210   : > { %2792 = vmatprep.mubr.bf16.mxu1 %v1848_v57 }
 0x211   : > { %2793 = vmatmul.mubr.bf16.gmra.mrb[56].mxu1 %v1847_v55 }
 0x212   : > { %v1615_v58 = vpop.f32.mrb[60].mxu0 }
 0x213   : > { %v1617_v59 = vpop.f32.mrb[61].mxu0 }
 0x214   : > { %v1619_v60 = vpop.f32.mrb[62].mxu0 }
 0x215   : > { %v1849_v61 = vpack.c.bf16 %v1619_v60, %v1615_v58  ;;  %v1621_v62 = vpop.f32.mrb[63].mxu0 }
 0x216   : > { %v1850_v63 = vpack.c.bf16 %v1621_v62, %v1617_v59 }
 0x218   : > { %2802 = vmatprep.mubr.bf16.mxu1 %v1850_v63 }
 0x219   : > { %2803 = vmatmul.mubr.bf16.gmra.mrb[60].mxu1 %v1849_v61 }
 0x274   : > { %v2654_v7 = vpop.f32.mrb[0].mxu1 }
 0x275   : > { %v2825_v8 = vadd.f32 %v4649_v5, %v2654_v7  ;;  %v2656_v9 = vpop.f32.mrb[1].mxu1 }
 0x276   : > { %v2826_v10 = vadd.f32 %v4651_v6, %v2656_v9  ;;  %v2658_v11 = vpop.f32.mrb[2].mxu1 }
 0x277   : > { %v2889_v12 = vmax.f32 %v2825_v8, 0.0  ;;  %v2827_v13 = vadd.f32 %v4649_v5, %v2658_v11  ;;  %v2660_v14 = vpop.f32.mrb[3].mxu1 }
 0x278   : > { %v2890_v15 = vmax.f32 %v2826_v10, 0.0  ;;  %v2828_v16 = vadd.f32 %v4651_v6, %v2660_v14 }
 0x279   : > { %v2891_v17 = vmax.f32 %v2827_v13, 0.0 }
 0x27a   : > { %v3553_v18 = vpack.c.bf16 %v2890_v15, %v2889_v12  ;;  %v2892_v19 = vmax.f32 %v2828_v16, 0.0 }
 0x27c   : > { %3145 = vst [vmem:[%s4662_s30] sm:$0xff] %v3553_v18  ;;  %v3554_v20 = vpack.c.bf16 %v2892_v19, %v2891_v17  ;;  %v2664_v21 = vpop.f32.mrb[4].mxu1 }
 0x27d   : > { %v2829_v22 = vadd.f32 %v4649_v5, %v2664_v21  ;;  %v2666_v23 = vpop.f32.mrb[5].mxu1 }
 0x27e   : > { %3146 = vst [vmem:[%s4662_s30 + $0x8] sm:$0xff] %v3554_v20  ;;  %v2830_v24 = vadd.f32 %v4651_v6, %v2666_v23  ;;  %v2668_v25 = vpop.f32.mrb[6].mxu1 }
 0x27f   : > { %v2893_v26 = vmax.f32 %v2829_v22, 0.0  ;;  %v2831_v27 = vadd.f32 %v4649_v5, %v2668_v25  ;;  %v2670_v28 = vpop.f32.mrb[7].mxu1 }
 0x280   : > { %v2894_v29 = vmax.f32 %v2830_v24, 0.0  ;;  %v2832_v30 = vadd.f32 %v4651_v6, %v2670_v28 }
 0x281   : > { %v2895_v31 = vmax.f32 %v2831_v27, 0.0 }
 0x282   : > { %v3555_v32 = vpack.c.bf16 %v2894_v29, %v2893_v26  ;;  %v2896_v33 = vmax.f32 %v2832_v30, 0.0 }
 0x284   : > { %3147 = vst [vmem:[%s4662_s30 + $0x10] sm:$0xff] %v3555_v32  ;;  %v3556_v34 = vpack.c.bf16 %v2896_v33, %v2895_v31  ;;  %v2674_v35 = vpop.f32.mrb[8].mxu1 }
 0x285   : > { %v2833_v36 = vadd.f32 %v4649_v5, %v2674_v35  ;;  %v2676_v37 = vpop.f32.mrb[9].mxu1 }
 0x286   : > { %3148 = vst [vmem:[%s4662_s30 + $0x18] sm:$0xff] %v3556_v34  ;;  %v2834_v38 = vadd.f32 %v4651_v6, %v2676_v37  ;;  %v2678_v39 = vpop.f32.mrb[10].mxu1 }
 0x287   : > { %v2897_v40 = vmax.f32 %v2833_v36, 0.0  ;;  %v2835_v41 = vadd.f32 %v4649_v5, %v2678_v39  ;;  %v2680_v42 = vpop.f32.mrb[11].mxu1 }
 0x288   : > { %v2898_v43 = vmax.f32 %v2834_v38, 0.0  ;;  %v2836_v44 = vadd.f32 %v4651_v6, %v2680_v42 }
 0x289   : > { %v2899_v45 = vmax.f32 %v2835_v41, 0.0 }
 0x28a   : > { %v3557_v46 = vpack.c.bf16 %v2898_v43, %v2897_v40  ;;  %v2900_v47 = vmax.f32 %v2836_v44, 0.0 }
 0x28c   : > { %3149 = vst [vmem:[%s4662_s30 + $0x20] sm:$0xff] %v3557_v46  ;;  %v3558_v48 = vpack.c.bf16 %v2900_v47, %v2899_v45  ;;  %v2684_v49 = vpop.f32.mrb[12].mxu1 }
 0x28d   : > { %v2837_v50 = vadd.f32 %v4649_v5, %v2684_v49  ;;  %v2686_v51 = vpop.f32.mrb[13].mxu1 }
 0x28e   : > { %3150 = vst [vmem:[%s4662_s30 + $0x28] sm:$0xff] %v3558_v48  ;;  %v2838_v52 = vadd.f32 %v4651_v6, %v2686_v51  ;;  %v2688_v53 = vpop.f32.mrb[14].mxu1 }
 0x28f   : > { %v2901_v54 = vmax.f32 %v2837_v50, 0.0  ;;  %v2839_v55 = vadd.f32 %v4649_v5, %v2688_v53  ;;  %v2690_v56 = vpop.f32.mrb[15].mxu1 }
 0x290   : > { %v2902_v57 = vmax.f32 %v2838_v52, 0.0  ;;  %v2840_v58 = vadd.f32 %v4651_v6, %v2690_v56 }
 0x291   : > { %v2903_v59 = vmax.f32 %v2839_v55, 0.0 }
 0x292   : > { %v3559_v60 = vpack.c.bf16 %v2902_v57, %v2901_v54  ;;  %v2904_v61 = vmax.f32 %v2840_v58, 0.0 }
 0x294   : > { %3151 = vst [vmem:[%s4662_s30 + $0x30] sm:$0xff] %v3559_v60  ;;  %v3560_v62 = vpack.c.bf16 %v2904_v61, %v2903_v59  ;;  %v2694_v63 = vpop.f32.mrb[16].mxu1 }
 0x295   : > { %v2841_v0 = vadd.f32 %v4649_v5, %v2694_v63  ;;  %v2696_v1 = vpop.f32.mrb[17].mxu1 }
 0x296   : > { %3152 = vst [vmem:[%s4662_s30 + $0x38] sm:$0xff] %v3560_v62  ;;  %v2842_v2 = vadd.f32 %v4651_v6, %v2696_v1  ;;  %v2698_v3 = vpop.f32.mrb[18].mxu1 }
 0x297   : > { %v2905_v4 = vmax.f32 %v2841_v0, 0.0  ;;  %v2843_v7 = vadd.f32 %v4649_v5, %v2698_v3  ;;  %v2700_v8 = vpop.f32.mrb[19].mxu1 }
 0x298   : > { %v2906_v9 = vmax.f32 %v2842_v2, 0.0  ;;  %v2844_v10 = vadd.f32 %v4651_v6, %v2700_v8 }
 0x299   : > { %v2907_v11 = vmax.f32 %v2843_v7, 0.0 }
 0x29a   : > { %v3561_v12 = vpack.c.bf16 %v2906_v9, %v2905_v4  ;;  %v2908_v13 = vmax.f32 %v2844_v10, 0.0 }
 0x29c   : > { %3153 = vst [vmem:[%s4662_s30 + $0x40] sm:$0xff] %v3561_v12  ;;  %v3562_v14 = vpack.c.bf16 %v2908_v13, %v2907_v11  ;;  %v2704_v15 = vpop.f32.mrb[20].mxu1 }
 0x29d   : > { %v2845_v16 = vadd.f32 %v4649_v5, %v2704_v15  ;;  %v2706_v17 = vpop.f32.mrb[21].mxu1 }
 0x29e   : > { %3154 = vst [vmem:[%s4662_s30 + $0x48] sm:$0xff] %v3562_v14  ;;  %v2846_v18 = vadd.f32 %v4651_v6, %v2706_v17  ;;  %v2708_v19 = vpop.f32.mrb[22].mxu1 }
 0x29f   : > { %v2909_v20 = vmax.f32 %v2845_v16, 0.0  ;;  %v2847_v21 = vadd.f32 %v4649_v5, %v2708_v19  ;;  %v2710_v22 = vpop.f32.mrb[23].mxu1 }
 0x2a0   : > { %v2910_v23 = vmax.f32 %v2846_v18, 0.0  ;;  %v2848_v24 = vadd.f32 %v4651_v6, %v2710_v22 }
 0x2a1   : > { %v2911_v25 = vmax.f32 %v2847_v21, 0.0 }
 0x2a2   : > { %v3563_v26 = vpack.c.bf16 %v2910_v23, %v2909_v20  ;;  %v2912_v27 = vmax.f32 %v2848_v24, 0.0 }
 0x2a4   : > { %3155 = vst [vmem:[%s4662_s30 + $0x50] sm:$0xff] %v3563_v26  ;;  %v3564_v28 = vpack.c.bf16 %v2912_v27, %v2911_v25  ;;  %v2714_v29 = vpop.f32.mrb[24].mxu1 }
 0x2a5   : > { %v2849_v30 = vadd.f32 %v4649_v5, %v2714_v29  ;;  %v2716_v31 = vpop.f32.mrb[25].mxu1 }
 0x2a6   : > { %3156 = vst [vmem:[%s4662_s30 + $0x58] sm:$0xff] %v3564_v28  ;;  %v2850_v32 = vadd.f32 %v4651_v6, %v2716_v31  ;;  %v2718_v33 = vpop.f32.mrb[26].mxu1 }
 0x2a7   : > { %v2913_v34 = vmax.f32 %v2849_v30, 0.0  ;;  %v2851_v35 = vadd.f32 %v4649_v5, %v2718_v33  ;;  %v2720_v36 = vpop.f32.mrb[27].mxu1 }
 0x2a8   : > { %v2914_v37 = vmax.f32 %v2850_v32, 0.0  ;;  %v2852_v38 = vadd.f32 %v4651_v6, %v2720_v36 }
 0x2a9   : > { %v2915_v39 = vmax.f32 %v2851_v35, 0.0 }
 0x2aa   : > { %v3565_v40 = vpack.c.bf16 %v2914_v37, %v2913_v34  ;;  %v2916_v41 = vmax.f32 %v2852_v38, 0.0 }
 0x2ac   : > { %3157 = vst [vmem:[%s4662_s30 + $0x60] sm:$0xff] %v3565_v40  ;;  %v3566_v42 = vpack.c.bf16 %v2916_v41, %v2915_v39  ;;  %v2724_v43 = vpop.f32.mrb[28].mxu1 }
 0x2ad   : > { %v2853_v44 = vadd.f32 %v4649_v5, %v2724_v43  ;;  %v2726_v45 = vpop.f32.mrb[29].mxu1 }
 0x2ae   : > { %3158 = vst [vmem:[%s4662_s30 + $0x68] sm:$0xff] %v3566_v42  ;;  %v2854_v46 = vadd.f32 %v4651_v6, %v2726_v45  ;;  %v2728_v47 = vpop.f32.mrb[30].mxu1 }
 0x2af   : > { %v2917_v48 = vmax.f32 %v2853_v44, 0.0  ;;  %v2855_v49 = vadd.f32 %v4649_v5, %v2728_v47  ;;  %v2730_v50 = vpop.f32.mrb[31].mxu1 }
 0x2b0   : > { %v2918_v51 = vmax.f32 %v2854_v46, 0.0  ;;  %v2856_v52 = vadd.f32 %v4651_v6, %v2730_v50 }
 0x2b1   : > { %v2919_v53 = vmax.f32 %v2855_v49, 0.0 }
 0x2b2   : > { %v3567_v54 = vpack.c.bf16 %v2918_v51, %v2917_v48  ;;  %v2920_v55 = vmax.f32 %v2856_v52, 0.0 }
 0x2b4   : > { %3159 = vst [vmem:[%s4662_s30 + $0x70] sm:$0xff] %v3567_v54  ;;  %v3568_v56 = vpack.c.bf16 %v2920_v55, %v2919_v53  ;;  %v2734_v57 = vpop.f32.mrb[32].mxu1 }
 0x2b5   : > { %v2857_v58 = vadd.f32 %v4649_v5, %v2734_v57  ;;  %v2736_v59 = vpop.f32.mrb[33].mxu1 }
 0x2b6   : > { %3160 = vst [vmem:[%s4662_s30 + $0x78] sm:$0xff] %v3568_v56  ;;  %v2858_v60 = vadd.f32 %v4651_v6, %v2736_v59  ;;  %v2738_v61 = vpop.f32.mrb[34].mxu1 }
 0x2b7   : > { %v2921_v62 = vmax.f32 %v2857_v58, 0.0  ;;  %v2859_v63 = vadd.f32 %v4649_v5, %v2738_v61  ;;  %v2740_v0 = vpop.f32.mrb[35].mxu1 }
 0x2b8   : > { %v2922_v1 = vmax.f32 %v2858_v60, 0.0  ;;  %v2860_v2 = vadd.f32 %v4651_v6, %v2740_v0 }
 0x2b9   : > { %v2923_v3 = vmax.f32 %v2859_v63, 0.0 }
 0x2ba   : > { %v3569_v4 = vpack.c.bf16 %v2922_v1, %v2921_v62  ;;  %v2924_v7 = vmax.f32 %v2860_v2, 0.0 }
 0x2bc   : > { %3161 = vst [vmem:[%s4662_s30 + $0x80] sm:$0xff] %v3569_v4  ;;  %v3570_v8 = vpack.c.bf16 %v2924_v7, %v2923_v3  ;;  %v2744_v9 = vpop.f32.mrb[36].mxu1 }
 0x2bd   : > { %v2861_v10 = vadd.f32 %v4649_v5, %v2744_v9  ;;  %v2746_v11 = vpop.f32.mrb[37].mxu1 }
 0x2be   : > { %3162 = vst [vmem:[%s4662_s30 + $0x88] sm:$0xff] %v3570_v8  ;;  %v2862_v12 = vadd.f32 %v4651_v6, %v2746_v11  ;;  %v2748_v13 = vpop.f32.mrb[38].mxu1 }
 0x2bf   : > { %v2925_v14 = vmax.f32 %v2861_v10, 0.0  ;;  %v2863_v15 = vadd.f32 %v4649_v5, %v2748_v13  ;;  %v2750_v16 = vpop.f32.mrb[39].mxu1 }
 0x2c0   : > { %v2926_v17 = vmax.f32 %v2862_v12, 0.0  ;;  %v2864_v18 = vadd.f32 %v4651_v6, %v2750_v16 }
 0x2c1   : > { %v2927_v19 = vmax.f32 %v2863_v15, 0.0 }
 0x2c2   : > { %v3571_v20 = vpack.c.bf16 %v2926_v17, %v2925_v14  ;;  %v2928_v21 = vmax.f32 %v2864_v18, 0.0 }
 0x2c4   : > { %3163 = vst [vmem:[%s4662_s30 + $0x90] sm:$0xff] %v3571_v20  ;;  %v3572_v22 = vpack.c.bf16 %v2928_v21, %v2927_v19  ;;  %v2754_v23 = vpop.f32.mrb[40].mxu1 }
 0x2c5   : > { %v2865_v24 = vadd.f32 %v4649_v5, %v2754_v23  ;;  %v2756_v25 = vpop.f32.mrb[41].mxu1 }
 0x2c6   : > { %3164 = vst [vmem:[%s4662_s30 + $0x98] sm:$0xff] %v3572_v22  ;;  %v2866_v26 = vadd.f32 %v4651_v6, %v2756_v25  ;;  %v2758_v27 = vpop.f32.mrb[42].mxu1 }
 0x2c7   : > { %v2929_v28 = vmax.f32 %v2865_v24, 0.0  ;;  %v2867_v29 = vadd.f32 %v4649_v5, %v2758_v27  ;;  %v2760_v30 = vpop.f32.mrb[43].mxu1 }
 0x2c8   : > { %v2930_v31 = vmax.f32 %v2866_v26, 0.0  ;;  %v2868_v32 = vadd.f32 %v4651_v6, %v2760_v30 }
 0x2c9   : > { %v2931_v33 = vmax.f32 %v2867_v29, 0.0 }
 0x2ca   : > { %v3573_v34 = vpack.c.bf16 %v2930_v31, %v2929_v28  ;;  %v2932_v35 = vmax.f32 %v2868_v32, 0.0 }
 0x2cc   : > { %3165 = vst [vmem:[%s4662_s30 + $0xa0] sm:$0xff] %v3573_v34  ;;  %v3574_v36 = vpack.c.bf16 %v2932_v35, %v2931_v33  ;;  %v2764_v37 = vpop.f32.mrb[44].mxu1 }
 0x2cd   : > { %v2869_v38 = vadd.f32 %v4649_v5, %v2764_v37  ;;  %v2766_v39 = vpop.f32.mrb[45].mxu1 }
 0x2ce   : > { %3166 = vst [vmem:[%s4662_s30 + $0xa8] sm:$0xff] %v3574_v36  ;;  %v2870_v40 = vadd.f32 %v4651_v6, %v2766_v39  ;;  %v2768_v41 = vpop.f32.mrb[46].mxu1 }
 0x2cf   : > { %v2933_v42 = vmax.f32 %v2869_v38, 0.0  ;;  %v2871_v43 = vadd.f32 %v4649_v5, %v2768_v41  ;;  %v2770_v44 = vpop.f32.mrb[47].mxu1 }
 0x2d0   : > { %v2934_v45 = vmax.f32 %v2870_v40, 0.0  ;;  %v2872_v46 = vadd.f32 %v4651_v6, %v2770_v44 }
 0x2d1   : > { %v2935_v47 = vmax.f32 %v2871_v43, 0.0 }
 0x2d2   : > { %v3575_v48 = vpack.c.bf16 %v2934_v45, %v2933_v42  ;;  %v2936_v49 = vmax.f32 %v2872_v46, 0.0 }
 0x2d4   : > { %3167 = vst [vmem:[%s4662_s30 + $0xb0] sm:$0xff] %v3575_v48  ;;  %v3576_v50 = vpack.c.bf16 %v2936_v49, %v2935_v47  ;;  %v2774_v51 = vpop.f32.mrb[48].mxu1 }
 0x2d5   : > { %v2873_v52 = vadd.f32 %v4649_v5, %v2774_v51  ;;  %v2776_v53 = vpop.f32.mrb[49].mxu1 }
 0x2d6   : > { %3168 = vst [vmem:[%s4662_s30 + $0xb8] sm:$0xff] %v3576_v50  ;;  %v2874_v54 = vadd.f32 %v4651_v6, %v2776_v53  ;;  %v2778_v55 = vpop.f32.mrb[50].mxu1 }
 0x2d7   : > { %v2937_v56 = vmax.f32 %v2873_v52, 0.0  ;;  %v2875_v57 = vadd.f32 %v4649_v5, %v2778_v55  ;;  %v2780_v58 = vpop.f32.mrb[51].mxu1 }
 0x2d8   : > { %v2938_v59 = vmax.f32 %v2874_v54, 0.0  ;;  %v2876_v60 = vadd.f32 %v4651_v6, %v2780_v58 }
 0x2d9   : > { %v2939_v61 = vmax.f32 %v2875_v57, 0.0 }
 0x2da   : > { %v3577_v62 = vpack.c.bf16 %v2938_v59, %v2937_v56  ;;  %v2940_v63 = vmax.f32 %v2876_v60, 0.0 }
 0x2dc   : > { %3169 = vst [vmem:[%s4662_s30 + $0xc0] sm:$0xff] %v3577_v62  ;;  %v3578_v0 = vpack.c.bf16 %v2940_v63, %v2939_v61  ;;  %v2784_v1 = vpop.f32.mrb[52].mxu1 }
 0x2dd   : > { %v2877_v2 = vadd.f32 %v4649_v5, %v2784_v1  ;;  %v2786_v3 = vpop.f32.mrb[53].mxu1 }
 0x2de   : > { %3170 = vst [vmem:[%s4662_s30 + $0xc8] sm:$0xff] %v3578_v0  ;;  %v2878_v4 = vadd.f32 %v4651_v6, %v2786_v3  ;;  %v2788_v7 = vpop.f32.mrb[54].mxu1 }
 0x2df   : > { %v2941_v8 = vmax.f32 %v2877_v2, 0.0  ;;  %v2879_v9 = vadd.f32 %v4649_v5, %v2788_v7  ;;  %v2790_v10 = vpop.f32.mrb[55].mxu1 }
 0x2e0   : > { %v2942_v11 = vmax.f32 %v2878_v4, 0.0  ;;  %v2880_v12 = vadd.f32 %v4651_v6, %v2790_v10 }
 0x2e1   : > { %v2943_v13 = vmax.f32 %v2879_v9, 0.0 }
 0x2e2   : > { %v3579_v14 = vpack.c.bf16 %v2942_v11, %v2941_v8  ;;  %v2944_v15 = vmax.f32 %v2880_v12, 0.0 }
 0x2e4   : > { %3171 = vst [vmem:[%s4662_s30 + $0xd0] sm:$0xff] %v3579_v14  ;;  %v3580_v16 = vpack.c.bf16 %v2944_v15, %v2943_v13  ;;  %v2794_v17 = vpop.f32.mrb[56].mxu1 }
 0x2e5   : > { %v2881_v18 = vadd.f32 %v4649_v5, %v2794_v17  ;;  %v2796_v19 = vpop.f32.mrb[57].mxu1 }
 0x2e6   : > { %3172 = vst [vmem:[%s4662_s30 + $0xd8] sm:$0xff] %v3580_v16  ;;  %v2882_v20 = vadd.f32 %v4651_v6, %v2796_v19  ;;  %v2798_v21 = vpop.f32.mrb[58].mxu1 }
 0x2e7   : > { %v2945_v22 = vmax.f32 %v2881_v18, 0.0  ;;  %v2883_v23 = vadd.f32 %v4649_v5, %v2798_v21  ;;  %v2800_v24 = vpop.f32.mrb[59].mxu1 }
 0x2e8   : > { %v2946_v25 = vmax.f32 %v2882_v20, 0.0  ;;  %v2884_v26 = vadd.f32 %v4651_v6, %v2800_v24 }
 0x2e9   : > { %v2947_v27 = vmax.f32 %v2883_v23, 0.0 }
 0x2ea   : > { %v3581_v28 = vpack.c.bf16 %v2946_v25, %v2945_v22  ;;  %v2948_v29 = vmax.f32 %v2884_v26, 0.0 }
 0x2ec   : > { %3173 = vst [vmem:[%s4662_s30 + $0xe0] sm:$0xff] %v3581_v28  ;;  %v3582_v30 = vpack.c.bf16 %v2948_v29, %v2947_v27  ;;  %v2804_v31 = vpop.f32.mrb[60].mxu1 }
 0x2ed   : > { %v2885_v32 = vadd.f32 %v4649_v5, %v2804_v31  ;;  %v2806_v33 = vpop.f32.mrb[61].mxu1 }
 0x2ee   : > { %3174 = vst [vmem:[%s4662_s30 + $0xe8] sm:$0xff] %v3582_v30  ;;  %v2886_v34 = vadd.f32 %v4651_v6, %v2806_v33  ;;  %v2808_v35 = vpop.f32.mrb[62].mxu1 }
 0x2ef   : > { %v2949_v36 = vmax.f32 %v2885_v32, 0.0  ;;  %v2887_v37 = vadd.f32 %v4649_v5, %v2808_v35  ;;  %v2810_v38 = vpop.f32.mrb[63].mxu1 }
 0x2f0   : > { %v2950_v39 = vmax.f32 %v2886_v34, 0.0  ;;  %v2888_v40 = vadd.f32 %v4651_v6, %v2810_v38 }
 0x2f1   : > { %v2951_v41 = vmax.f32 %v2887_v37, 0.0 }
 0x2f2   : > { %v3583_v42 = vpack.c.bf16 %v2950_v39, %v2949_v36  ;;  %v2952_v43 = vmax.f32 %v2888_v40, 0.0 }
 0x2f4   : > { %3175 = vst [vmem:[%s4662_s30 + $0xf0] sm:$0xff] %v3583_v42  ;;  %v3584_v44 = vpack.c.bf16 %v2952_v43, %v2951_v41 }
 0x2f6   : > { %3176 = vst [vmem:[%s4662_s30 + $0xf8] sm:$0xff] %v3584_v44 }
 0x2f7 PF: > { %s16_s23 = sadd.s32 1, %s4095_s23   ;;  %s4772_s21 = smov %s4091_s22 }
 0x2f8   : > { %p13_p5 = scmp.ge.s32.totalorder %s16_s23, 4   ;;  %s4773_s22 = smov %s4775_s24 }
 0x2fa   :  { %15 = sbr.rel (!%p13_p5) target bundleno = 2 (0x2), region = 88 }

</bundles_post_ra>
